<compile_context>
chip_gen: v6e
topology: v6e:2x2x1
jax: 0.10.0
libtpu: 0.0.40
codegen_flags: <defaults>
</compile_context>

<pallas_src>
import functools

import jax
import jax.numpy as jnp
from jax.experimental import pallas as pl
from jax.experimental.pallas import tpu as pltpu

_VMEM_LIMIT = 32 * 1024 * 1024


def _round_up(x, m):
    return (x + m - 1) // m * m


# ----------------------------- Pallas kernels ------------------------------

def _conv_bn_lrelu_kernel(p_ref, w_ref, b_ref, g_ref, beta_ref, o_ref, *,
                          eps, slope, pool):
    """Fused conv (im2col matmul) + bias + BatchNorm(batch stats) + LeakyReLU
    [+ 2x2 max-pool].

    p_ref:(M,K) bf16, w_ref:(K,C) bf16, b/g/beta:(1,C) f32, o_ref:(Mout,C) bf16.
    When pool=True the M rows arrive pre-grouped as 4 contiguous blocks holding
    the four 2x2 pooling partners, so pooling is a max over the leading group
    axis of a tile-aligned (4, M//4, C) reshape (no sublane relayout needed)."""
    z = jnp.dot(p_ref[...], w_ref[...], preferred_element_type=jnp.float32)
    z = z + b_ref[...]
    # Batch statistics over all rows (= N*H*W) per channel, f32, biased var
    # (PyTorch BatchNorm2d training-mode normalization).
    mean = jnp.mean(z, axis=0, keepdims=True)
    var = jnp.mean(jnp.square(z - mean), axis=0, keepdims=True)
    # Fold BN into one per-channel scale/shift -> single mul+add per element.
    scale = g_ref[...] * jax.lax.rsqrt(var + eps)          # (1,C) f32
    shift = beta_ref[...] - mean * scale                   # (1,C) f32
    y = z * scale + shift
    y = jnp.where(y >= 0.0, y, slope * y)                  # LeakyReLU(slope)
    y = y.astype(o_ref.dtype)
    if pool:
        m_out, c = o_ref.shape
        y = jnp.max(y.reshape(4, m_out, c), axis=0)        # MaxPool2d(2) in bf16
    o_ref[...] = y


def _fc_head_kernel(x_ref, w1_ref, b1_ref, w2_ref, b2_ref, w3_ref, b3_ref,
                    o_ref):
    """Fused fc1 + ReLU + fc2 + ReLU + fc3. bf16 matmul operands, f32 accum."""
    h = jnp.dot(x_ref[...], w1_ref[...], preferred_element_type=jnp.float32)
    h = jnp.maximum(h + b1_ref[...], 0.0)
    h = jnp.dot(h.astype(jnp.bfloat16), w2_ref[...],
                preferred_element_type=jnp.float32)
    h = jnp.maximum(h + b2_ref[...], 0.0)
    out = jnp.dot(h.astype(jnp.bfloat16), w3_ref[...],
                  preferred_element_type=jnp.float32)
    o_ref[...] = (out + b3_ref[...]).astype(o_ref.dtype)


# ----------------------------- Pallas wrappers ------------------------------

def conv_bn_lrelu(patches, w, bias, gamma, beta, *, pool=False,
                  eps=1e-5, slope=0.2):
    """Fused conv stage. patches:(M,K) bf16, w:(K,C) bf16, bias/gamma/beta:(1,C) f32.

    BN batch statistics require the whole M=N*H*W extent in one block, so the
    conv stages use a single whole-array block (tiny at these shapes).
    TODO(synk): switch to a two-pass (sum/sumsq then normalize) scheme to tile
    M for very large batch sizes."""
    M, K = patches.shape
    C = w.shape[1]
    m_out = M // 4 if pool else M
    return pl.pallas_call(
        functools.partial(_conv_bn_lrelu_kernel, eps=eps, slope=slope,
                          pool=pool),
        out_shape=jax.ShapeDtypeStruct((m_out, C), jnp.bfloat16),
        grid=(1,),
        in_specs=[
            pl.BlockSpec((M, K), lambda i: (0, 0)),
            pl.BlockSpec((K, C), lambda i: (0, 0)),
            pl.BlockSpec((1, C), lambda i: (0, 0)),
            pl.BlockSpec((1, C), lambda i: (0, 0)),
            pl.BlockSpec((1, C), lambda i: (0, 0)),
        ],
        out_specs=pl.BlockSpec((m_out, C), lambda i: (0, 0)),
        compiler_params=pltpu.CompilerParams(
            dimension_semantics=("arbitrary",),
            vmem_limit_bytes=_VMEM_LIMIT),
    )(patches, w, bias, gamma, beta)


def fc_head(x, w1, b1, w2, b2, w3, b3):
    """out = (relu(relu(x@w1+b1)@w2+b2))@w3+b3, one kernel, tiled over rows.

    Weight blocks use a constant index_map so they stay resident in VMEM
    across grid steps; the row axis is 'parallel' (megacore sharding)."""
    N, K1 = x.shape
    H1 = w1.shape[1]
    H2 = w2.shape[1]
    tile_m = min(256, _round_up(max(N, 1), 8))
    n_pad = _round_up(N, tile_m)
    if n_pad != N:
        x = jnp.pad(x, ((0, n_pad - N), (0, 0)))
    out = pl.pallas_call(
        _fc_head_kernel,
        out_shape=jax.ShapeDtypeStruct((n_pad, 1), jnp.float32),
        grid=(n_pad // tile_m,),
        in_specs=[
            pl.BlockSpec((tile_m, K1), lambda i: (i, 0)),
            pl.BlockSpec((K1, H1), lambda i: (0, 0)),
            pl.BlockSpec((1, H1), lambda i: (0, 0)),
            pl.BlockSpec((H1, H2), lambda i: (0, 0)),
            pl.BlockSpec((1, H2), lambda i: (0, 0)),
            pl.BlockSpec((H2, 1), lambda i: (0, 0)),
            pl.BlockSpec((1, 1), lambda i: (0, 0)),
        ],
        out_specs=pl.BlockSpec((tile_m, 1), lambda i: (i, 0)),
        compiler_params=pltpu.CompilerParams(
            dimension_semantics=("parallel",),
            vmem_limit_bytes=_VMEM_LIMIT),
    )(x, w1, b1, w2, b2, w3, b3)
    return out[:N]


# ------------------------------- JAX glue ----------------------------------

def im2col(x_nhwc, ksize=4, stride=2, pad=1):
    """Conv patches -> (N, Ho, Wo, ksize*ksize*C); columns ordered (kh,kw,cin)."""
    N, H, W, C = x_nhwc.shape
    xp = jnp.pad(x_nhwc, ((0, 0), (pad, pad), (pad, pad), (0, 0)))
    Ho = (H + 2 * pad - ksize) // stride + 1
    Wo = (W + 2 * pad - ksize) // stride + 1
    taps = []
    for kh in range(ksize):
        for kw in range(ksize):
            taps.append(
                xp[:, kh:kh + stride * Ho:stride, kw:kw + stride * Wo:stride, :])
    p = jnp.stack(taps, axis=3)                      # (N, Ho, Wo, k*k, C)
    return p.reshape(N, Ho, Wo, ksize * ksize * C), Ho, Wo


def conv_weight_to_matrix(w_oihw):
    """PyTorch conv weight (Cout,Cin,kh,kw) -> im2col matrix (kh*kw*Cin, Cout)."""
    cout, cin, kh, kw = w_oihw.shape
    return jnp.transpose(w_oihw, (2, 3, 1, 0)).reshape(kh * kw * cin, cout)


def init_params(key, input_ch=3, dim=24):
    """Random params in PyTorch-equivalent layouts (conv: OIHW, linear: (in,out))."""
    fc_size = 2 * dim * 4 ** 2  # 768 for dim=24
    ks = jax.random.split(key, 8)
    scale = 0.05
    return {
        "conv1_w": scale * jax.random.normal(ks[0], (dim, input_ch, 4, 4), jnp.float32),
        "conv1_b": scale * jax.random.normal(ks[1], (dim,), jnp.float32),
        "conv2_w": scale * jax.random.normal(ks[2], (2 * dim, dim, 4, 4), jnp.float32),
        "conv2_b": scale * jax.random.normal(ks[3], (2 * dim,), jnp.float32),
        "bn1_g": jnp.ones((dim,), jnp.float32),
        "bn1_b": jnp.zeros((dim,), jnp.float32),
        "bn2_g": jnp.ones((2 * dim,), jnp.float32),
        "bn2_b": jnp.zeros((2 * dim,), jnp.float32),
        "fc1_w": scale * jax.random.normal(ks[4], (fc_size, fc_size), jnp.float32),
        "fc1_b": jnp.zeros((fc_size,), jnp.float32),
        "fc2_w": scale * jax.random.normal(ks[5], (fc_size, fc_size // 4), jnp.float32),
        "fc2_b": jnp.zeros((fc_size // 4,), jnp.float32),
        "fc3_w": scale * jax.random.normal(ks[6], (fc_size // 4, 1), jnp.float32),
        "fc3_b": jnp.zeros((1,), jnp.float32),
    }


def prepare_params(raw, dim=24):
    """One-time packing/casting: conv weights -> im2col matrices (bf16), fc
    weights -> bf16, biases/BN affine -> (1,C) f32.  fc1 rows are permuted so
    that the NHWC-order flatten the kernels produce matches PyTorch's NCHW
    .view(N,-1) flatten exactly (permutation folded into the weight)."""
    c2, hh, ww = 2 * dim, 4, 4
    h_i, w_i, c_i = jnp.meshgrid(jnp.arange(hh), jnp.arange(ww),
                                 jnp.arange(c2), indexing="ij")
    perm = (c_i * hh * ww + h_i * ww + w_i).reshape(-1)    # NHWC idx -> NCHW idx
    f32, bf16 = jnp.float32, jnp.bfloat16
    return {
        "conv1_w": conv_weight_to_matrix(raw["conv1_w"]).astype(bf16),
        "conv1_b": raw["conv1_b"].reshape(1, -1).astype(f32),
        "conv2_w": conv_weight_to_matrix(raw["conv2_w"]).astype(bf16),
        "conv2_b": raw["conv2_b"].reshape(1, -1).astype(f32),
        "bn1_g": raw["bn1_g"].reshape(1, -1).astype(f32),
        "bn1_b": raw["bn1_b"].reshape(1, -1).astype(f32),
        "bn2_g": raw["bn2_g"].reshape(1, -1).astype(f32),
        "bn2_b": raw["bn2_b"].reshape(1, -1).astype(f32),
        "fc1_w": raw["fc1_w"][perm, :].astype(bf16),
        "fc1_b": raw["fc1_b"].reshape(1, -1).astype(f32),
        "fc2_w": raw["fc2_w"].astype(bf16),
        "fc2_b": raw["fc2_b"].reshape(1, -1).astype(f32),
        "fc3_w": raw["fc3_w"].astype(bf16),
        "fc3_b": raw["fc3_b"].reshape(1, -1).astype(f32),
    }


def discriminator_forward(x_nchw, params):
    N = x_nchw.shape[0]
    x = jnp.transpose(x_nchw, (0, 2, 3, 1)).astype(jnp.bfloat16)   # NHWC, bf16

    # ---- Stage 1: Conv(3->dim,k4,s2,p1) + BN + LeakyReLU(0.2) + MaxPool2d(2)
    # TODO(synk): fold im2col into the conv kernel (direct tap accumulation)
    # to avoid materializing the patch matrix in HBM at large batch.
    p1, ho1, wo1 = im2col(x)                                       # (N,16,16,48)
    k1 = p1.shape[-1]
    # Reorder rows so the four 2x2-pool partners form 4 contiguous row groups:
    # (hr, wr, n, ho/2, wo/2) -> kernel pools with a tile-aligned reshape+max.
    p1 = p1.reshape(N, ho1 // 2, 2, wo1 // 2, 2, k1)
    p1 = jnp.transpose(p1, (2, 4, 0, 1, 3, 5))                     # (2,2,N,8,8,K)
    patches1 = p1.reshape(4 * N * (ho1 // 2) * (wo1 // 2), k1)     # (4*N*64, 48)
    h1 = conv_bn_lrelu(patches1, params["conv1_w"], params["conv1_b"],
                       params["bn1_g"], params["bn1_b"], pool=True)
    dim = h1.shape[-1]
    pooled = h1.reshape(N, ho1 // 2, wo1 // 2, dim)                # (N,8,8,dim)

    # ---- Stage 2: Conv(dim->2dim,k4,s2,p1) + BN + LeakyReLU(0.2) ----
    p2, ho2, wo2 = im2col(pooled)                                  # (N,4,4,16*dim)
    patches2 = p2.reshape(N * ho2 * wo2, -1)
    h2 = conv_bn_lrelu(patches2, params["conv2_w"], params["conv2_b"],
                       params["bn2_g"], params["bn2_b"], pool=False)  # (N*16,2dim)

    # ---- Flatten (free contiguous reshape; NHWC order matched to PyTorch's
    # NCHW flatten via the fc1 row permutation) + fused FC head ----
    flat = h2.reshape(N, ho2 * wo2 * h2.shape[-1])                 # (N, 768) bf16
    return fc_head(flat, params["fc1_w"], params["fc1_b"],
                   params["fc2_w"], params["fc2_b"],
                   params["fc3_w"], params["fc3_b"])               # (N, 1) f32


if __name__ == "__main__":
    key = jax.random.PRNGKey(0)
    pkey, xkey = jax.random.split(key)
    raw_params = init_params(pkey, input_ch=3, dim=24)
    params = prepare_params(raw_params, dim=24)     # one-time pack / cast
    # fc_size = 2*dim*4^2 implies the spatial input is 32x32 (NCHW like PyTorch).
    x = jax.random.normal(xkey, (2, 3, 32, 32), jnp.float32)
    fwd = jax.jit(discriminator_forward)
    y = fwd(x, params)
    jax.block_until_ready(y)
    assert y.shape == (2, 1), y.shape
    print("KERNEL_OK")
</pallas_src>

<mosaic_0001>
module attributes {stable_mosaic.version = 11 : i64} {
  func.func @_conv_bn_lrelu_kernel(%arg0: i32, %arg1: memref<512x48xbf16, #tpu.memory_space<vmem>>, %arg2: memref<48x24xbf16, #tpu.memory_space<vmem>>, %arg3: memref<1x24xf32, #tpu.memory_space<vmem>>, %arg4: memref<1x24xf32, #tpu.memory_space<vmem>>, %arg5: memref<1x24xf32, #tpu.memory_space<vmem>>, %arg6: memref<128x24xbf16, #tpu.memory_space<vmem>>) attributes {dimension_semantics = [#tpu.dimension_semantics<arbitrary>], iteration_bounds = array<i64: 1>, scalar_prefetch = 0 : i64, scratch_operands = 0 : i64, tpu.core_type = #tpu.core_type<tc>, window_params = [{pipeline_mode = #tpu.pipeline_mode<synchronous>, transform_indices = @transform_0, window_bounds = array<i64: 512, 48>}, {pipeline_mode = #tpu.pipeline_mode<synchronous>, transform_indices = @transform_1, window_bounds = array<i64: 48, 24>}, {pipeline_mode = #tpu.pipeline_mode<synchronous>, transform_indices = @transform_2, window_bounds = array<i64: 1, 24>}, {pipeline_mode = #tpu.pipeline_mode<synchronous>, transform_indices = @transform_3, window_bounds = array<i64: 1, 24>}, {pipeline_mode = #tpu.pipeline_mode<synchronous>, transform_indices = @transform_4, window_bounds = array<i64: 1, 24>}, {pipeline_mode = #tpu.pipeline_mode<synchronous>, transform_indices = @transform_5, window_bounds = array<i64: 128, 24>}]} {
    %c0 = arith.constant 0 : index
    %c0_0 = arith.constant 0 : index
    %0 = vector.load %arg1[%c0, %c0_0] : memref<512x48xbf16, #tpu.memory_space<vmem>>, vector<512x48xbf16>
    %c0_1 = arith.constant 0 : index
    %c0_2 = arith.constant 0 : index
    %1 = vector.load %arg2[%c0_1, %c0_2] : memref<48x24xbf16, #tpu.memory_space<vmem>>, vector<48x24xbf16>
    %cst = arith.constant dense<0.000000e+00> : vector<512x24xf32>
    %2 = tpu.matmul %0, %1, %cst {dimension_numbers = #tpu.dot_dimension_numbers<[1], [0], [0], [1], [0, 0, 1, 1], [], []>} : vector<512x48xbf16>, vector<48x24xbf16>, vector<512x24xf32> -> vector<512x24xf32>
    %c0_3 = arith.constant 0 : index
    %c0_4 = arith.constant 0 : index
    %3 = vector.load %arg3[%c0_3, %c0_4] : memref<1x24xf32, #tpu.memory_space<vmem>>, vector<1x24xf32>
    %4 = vector.broadcast %3 : vector<1x24xf32> to vector<512x24xf32>
    %5 = arith.addf %2, %4 : vector<512x24xf32>
    %cst_5 = arith.constant dense<0.000000e+00> : vector<24xf32>
    %6 = vector.multi_reduction <add>, %5, %cst_5 [0] : vector<512x24xf32> to vector<24xf32>
    %7 = vector.shape_cast %6 : vector<24xf32> to vector<1x24xf32>
    %cst_6 = arith.constant 5.120000e+02 : f32
    %8 = vector.broadcast %cst_6 : f32 to vector<1x24xf32>
    %9 = arith.divf %7, %8 : vector<1x24xf32>
    %10 = vector.broadcast %9 : vector<1x24xf32> to vector<512x24xf32>
    %11 = arith.subf %5, %10 : vector<512x24xf32>
    %12 = arith.mulf %11, %11 : vector<512x24xf32>
    %cst_7 = arith.constant dense<0.000000e+00> : vector<24xf32>
    %13 = vector.multi_reduction <add>, %12, %cst_7 [0] : vector<512x24xf32> to vector<24xf32>
    %14 = vector.shape_cast %13 : vector<24xf32> to vector<1x24xf32>
    %cst_8 = arith.constant 5.120000e+02 : f32
    %15 = vector.broadcast %cst_8 : f32 to vector<1x24xf32>
    %16 = arith.divf %14, %15 : vector<1x24xf32>
    %c0_9 = arith.constant 0 : index
    %c0_10 = arith.constant 0 : index
    %17 = vector.load %arg4[%c0_9, %c0_10] : memref<1x24xf32, #tpu.memory_space<vmem>>, vector<1x24xf32>
    %cst_11 = arith.constant 9.99999974E-6 : f32
    %18 = vector.broadcast %cst_11 : f32 to vector<1x24xf32>
    %19 = arith.addf %16, %18 : vector<1x24xf32>
    %20 = math.rsqrt %19 : vector<1x24xf32>
    %21 = arith.mulf %17, %20 : vector<1x24xf32>
    %c0_12 = arith.constant 0 : index
    %c0_13 = arith.constant 0 : index
    %22 = vector.load %arg5[%c0_12, %c0_13] : memref<1x24xf32, #tpu.memory_space<vmem>>, vector<1x24xf32>
    %23 = arith.mulf %9, %21 : vector<1x24xf32>
    %24 = arith.subf %22, %23 : vector<1x24xf32>
    %25 = vector.broadcast %21 : vector<1x24xf32> to vector<512x24xf32>
    %26 = arith.mulf %5, %25 : vector<512x24xf32>
    %27 = vector.broadcast %24 : vector<1x24xf32> to vector<512x24xf32>
    %28 = arith.addf %26, %27 : vector<512x24xf32>
    %cst_14 = arith.constant 0.000000e+00 : f32
    %29 = vector.broadcast %cst_14 : f32 to vector<512x24xf32>
    %30 = arith.cmpf oge, %28, %29 : vector<512x24xf32>
    %cst_15 = arith.constant 2.000000e-01 : f32
    %31 = vector.broadcast %cst_15 : f32 to vector<512x24xf32>
    %32 = arith.mulf %31, %28 : vector<512x24xf32>
    %33 = arith.select %30, %28, %32 : vector<512x24xi1>, vector<512x24xf32>
    %34 = arith.truncf %33 : vector<512x24xf32> to vector<512x24xbf16>
    %35 = vector.shape_cast %34 : vector<512x24xbf16> to vector<4x128x24xbf16>
    %cst_16 = arith.constant dense<0xFF80> : vector<128x24xbf16>
    %36 = vector.multi_reduction <maximumf>, %35, %cst_16 [0] : vector<4x128x24xbf16> to vector<128x24xbf16>
    %c0_17 = arith.constant 0 : index
    %c0_18 = arith.constant 0 : index
    %37 = vector.load %arg6[%c0_17, %c0_18] : memref<128x24xbf16, #tpu.memory_space<vmem>>, vector<128x24xbf16>
    tpu.vector_store %arg6[%c0_17, %c0_18], %36 {strides = array<i32>} : memref<128x24xbf16, #tpu.memory_space<vmem>>, vector<128x24xbf16>,
    return
  }
  func.func @transform_0(%arg0: i32) -> (i32, i32) {
    %c0_i32 = arith.constant 0 : i32
    %c0_i32_0 = arith.constant 0 : i32
    %c0_i32_1 = arith.constant 0 : i32
    return %c0_i32, %c0_i32_0 : i32, i32
  }
  func.func @transform_1(%arg0: i32) -> (i32, i32) {
    %c0_i32 = arith.constant 0 : i32
    %c0_i32_0 = arith.constant 0 : i32
    %c0_i32_1 = arith.constant 0 : i32
    return %c0_i32, %c0_i32_0 : i32, i32
  }
  func.func @transform_2(%arg0: i32) -> (i32, i32) {
    %c0_i32 = arith.constant 0 : i32
    %c0_i32_0 = arith.constant 0 : i32
    %c0_i32_1 = arith.constant 0 : i32
    return %c0_i32, %c0_i32_0 : i32, i32
  }
  func.func @transform_3(%arg0: i32) -> (i32, i32) {
    %c0_i32 = arith.constant 0 : i32
    %c0_i32_0 = arith.constant 0 : i32
    %c0_i32_1 = arith.constant 0 : i32
    return %c0_i32, %c0_i32_0 : i32, i32
  }
  func.func @transform_4(%arg0: i32) -> (i32, i32) {
    %c0_i32 = arith.constant 0 : i32
    %c0_i32_0 = arith.constant 0 : i32
    %c0_i32_1 = arith.constant 0 : i32
    return %c0_i32, %c0_i32_0 : i32, i32
  }
  func.func @transform_5(%arg0: i32) -> (i32, i32) {
    %c0_i32 = arith.constant 0 : i32
    %c0_i32_0 = arith.constant 0 : i32
    %c0_i32_1 = arith.constant 0 : i32
    return %c0_i32, %c0_i32_0 : i32, i32
  }
}

module attributes {stable_mosaic.version = 11 : i64} {
  func.func @_conv_bn_lrelu_kernel(%arg0: i32, %arg1: memref<32x384xbf16, #tpu.memory_space<vmem>>, %arg2: memref<384x48xbf16, #tpu.memory_space<vmem>>, %arg3: memref<1x48xf32, #tpu.memory_space<vmem>>, %arg4: memref<1x48xf32, #tpu.memory_space<vmem>>, %arg5: memref<1x48xf32, #tpu.memory_space<vmem>>, %arg6: memref<32x48xbf16, #tpu.memory_space<vmem>>) attributes {dimension_semantics = [#tpu.dimension_semantics<arbitrary>], iteration_bounds = array<i64: 1>, scalar_prefetch = 0 : i64, scratch_operands = 0 : i64, tpu.core_type = #tpu.core_type<tc>, window_params = [{pipeline_mode = #tpu.pipeline_mode<synchronous>, transform_indices = @transform_0, window_bounds = array<i64: 32, 384>}, {pipeline_mode = #tpu.pipeline_mode<synchronous>, transform_indices = @transform_1, window_bounds = array<i64: 384, 48>}, {pipeline_mode = #tpu.pipeline_mode<synchronous>, transform_indices = @transform_2, window_bounds = array<i64: 1, 48>}, {pipeline_mode = #tpu.pipeline_mode<synchronous>, transform_indices = @transform_3, window_bounds = array<i64: 1, 48>}, {pipeline_mode = #tpu.pipeline_mode<synchronous>, transform_indices = @transform_4, window_bounds = array<i64: 1, 48>}, {pipeline_mode = #tpu.pipeline_mode<synchronous>, transform_indices = @transform_5, window_bounds = array<i64: 32, 48>}]} {
    %c0 = arith.constant 0 : index
    %c0_0 = arith.constant 0 : index
    %0 = vector.load %arg1[%c0, %c0_0] : memref<32x384xbf16, #tpu.memory_space<vmem>>, vector<32x384xbf16>
    %c0_1 = arith.constant 0 : index
    %c0_2 = arith.constant 0 : index
    %1 = vector.load %arg2[%c0_1, %c0_2] : memref<384x48xbf16, #tpu.memory_space<vmem>>, vector<384x48xbf16>
    %cst = arith.constant dense<0.000000e+00> : vector<32x48xf32>
    %2 = tpu.matmul %0, %1, %cst {dimension_numbers = #tpu.dot_dimension_numbers<[1], [0], [0], [1], [0, 0, 1, 1], [], []>} : vector<32x384xbf16>, vector<384x48xbf16>, vector<32x48xf32> -> vector<32x48xf32>
    %c0_3 = arith.constant 0 : index
    %c0_4 = arith.constant 0 : index
    %3 = vector.load %arg3[%c0_3, %c0_4] : memref<1x48xf32, #tpu.memory_space<vmem>>, vector<1x48xf32>
    %4 = vector.broadcast %3 : vector<1x48xf32> to vector<32x48xf32>
    %5 = arith.addf %2, %4 : vector<32x48xf32>
    %cst_5 = arith.constant dense<0.000000e+00> : vector<48xf32>
    %6 = vector.multi_reduction <add>, %5, %cst_5 [0] : vector<32x48xf32> to vector<48xf32>
    %7 = vector.shape_cast %6 : vector<48xf32> to vector<1x48xf32>
    %cst_6 = arith.constant 3.200000e+01 : f32
    %8 = vector.broadcast %cst_6 : f32 to vector<1x48xf32>
    %9 = arith.divf %7, %8 : vector<1x48xf32>
    %10 = vector.broadcast %9 : vector<1x48xf32> to vector<32x48xf32>
    %11 = arith.subf %5, %10 : vector<32x48xf32>
    %12 = arith.mulf %11, %11 : vector<32x48xf32>
    %cst_7 = arith.constant dense<0.000000e+00> : vector<48xf32>
    %13 = vector.multi_reduction <add>, %12, %cst_7 [0] : vector<32x48xf32> to vector<48xf32>
    %14 = vector.shape_cast %13 : vector<48xf32> to vector<1x48xf32>
    %cst_8 = arith.constant 3.200000e+01 : f32
    %15 = vector.broadcast %cst_8 : f32 to vector<1x48xf32>
    %16 = arith.divf %14, %15 : vector<1x48xf32>
    %c0_9 = arith.constant 0 : index
    %c0_10 = arith.constant 0 : index
    %17 = vector.load %arg4[%c0_9, %c0_10] : memref<1x48xf32, #tpu.memory_space<vmem>>, vector<1x48xf32>
    %cst_11 = arith.constant 9.99999974E-6 : f32
    %18 = vector.broadcast %cst_11 : f32 to vector<1x48xf32>
    %19 = arith.addf %16, %18 : vector<1x48xf32>
    %20 = math.rsqrt %19 : vector<1x48xf32>
    %21 = arith.mulf %17, %20 : vector<1x48xf32>
    %c0_12 = arith.constant 0 : index
    %c0_13 = arith.constant 0 : index
    %22 = vector.load %arg5[%c0_12, %c0_13] : memref<1x48xf32, #tpu.memory_space<vmem>>, vector<1x48xf32>
    %23 = arith.mulf %9, %21 : vector<1x48xf32>
    %24 = arith.subf %22, %23 : vector<1x48xf32>
    %25 = vector.broadcast %21 : vector<1x48xf32> to vector<32x48xf32>
    %26 = arith.mulf %5, %25 : vector<32x48xf32>
    %27 = vector.broadcast %24 : vector<1x48xf32> to vector<32x48xf32>
    %28 = arith.addf %26, %27 : vector<32x48xf32>
    %cst_14 = arith.constant 0.000000e+00 : f32
    %29 = vector.broadcast %cst_14 : f32 to vector<32x48xf32>
    %30 = arith.cmpf oge, %28, %29 : vector<32x48xf32>
    %cst_15 = arith.constant 2.000000e-01 : f32
    %31 = vector.broadcast %cst_15 : f32 to vector<32x48xf32>
    %32 = arith.mulf %31, %28 : vector<32x48xf32>
    %33 = arith.select %30, %28, %32 : vector<32x48xi1>, vector<32x48xf32>
    %34 = arith.truncf %33 : vector<32x48xf32> to vector<32x48xbf16>
    %c0_16 = arith.constant 0 : index
    %c0_17 = arith.constant 0 : index
    %35 = vector.load %arg6[%c0_16, %c0_17] : memref<32x48xbf16, #tpu.memory_space<vmem>>, vector<32x48xbf16>
    tpu.vector_store %arg6[%c0_16, %c0_17], %34 {strides = array<i32>} : memref<32x48xbf16, #tpu.memory_space<vmem>>, vector<32x48xbf16>,
    return
  }
  func.func @transform_0(%arg0: i32) -> (i32, i32) {
    %c0_i32 = arith.constant 0 : i32
    %c0_i32_0 = arith.constant 0 : i32
    %c0_i32_1 = arith.constant 0 : i32
    return %c0_i32, %c0_i32_0 : i32, i32
  }
  func.func @transform_1(%arg0: i32) -> (i32, i32) {
    %c0_i32 = arith.constant 0 : i32
    %c0_i32_0 = arith.constant 0 : i32
    %c0_i32_1 = arith.constant 0 : i32
    return %c0_i32, %c0_i32_0 : i32, i32
  }
  func.func @transform_2(%arg0: i32) -> (i32, i32) {
    %c0_i32 = arith.constant 0 : i32
    %c0_i32_0 = arith.constant 0 : i32
    %c0_i32_1 = arith.constant 0 : i32
    return %c0_i32, %c0_i32_0 : i32, i32
  }
  func.func @transform_3(%arg0: i32) -> (i32, i32) {
    %c0_i32 = arith.constant 0 : i32
    %c0_i32_0 = arith.constant 0 : i32
    %c0_i32_1 = arith.constant 0 : i32
    return %c0_i32, %c0_i32_0 : i32, i32
  }
  func.func @transform_4(%arg0: i32) -> (i32, i32) {
    %c0_i32 = arith.constant 0 : i32
    %c0_i32_0 = arith.constant 0 : i32
    %c0_i32_1 = arith.constant 0 : i32
    return %c0_i32, %c0_i32_0 : i32, i32
  }
  func.func @transform_5(%arg0: i32) -> (i32, i32) {
    %c0_i32 = arith.constant 0 : i32
    %c0_i32_0 = arith.constant 0 : i32
    %c0_i32_1 = arith.constant 0 : i32
    return %c0_i32, %c0_i32_0 : i32, i32
  }
}

module attributes {stable_mosaic.version = 11 : i64} {
  func.func @_fc_head_kernel(%arg0: i32, %arg1: memref<8x768xbf16, #tpu.memory_space<vmem>>, %arg2: memref<768x768xbf16, #tpu.memory_space<vmem>>, %arg3: memref<1x768xf32, #tpu.memory_space<vmem>>, %arg4: memref<768x192xbf16, #tpu.memory_space<vmem>>, %arg5: memref<1x192xf32, #tpu.memory_space<vmem>>, %arg6: memref<192x1xbf16, #tpu.memory_space<vmem>>, %arg7: memref<1x1xf32, #tpu.memory_space<vmem>>, %arg8: memref<8x1xf32, #tpu.memory_space<vmem>>) attributes {dimension_semantics = [#tpu.dimension_semantics<parallel>], iteration_bounds = array<i64: 1>, scalar_prefetch = 0 : i64, scratch_operands = 0 : i64, tpu.core_type = #tpu.core_type<tc>, window_params = [{transform_indices = @transform_0, window_bounds = array<i64: 8, 768>}, {pipeline_mode = #tpu.pipeline_mode<synchronous>, transform_indices = @transform_1, window_bounds = array<i64: 768, 768>}, {pipeline_mode = #tpu.pipeline_mode<synchronous>, transform_indices = @transform_2, window_bounds = array<i64: 1, 768>}, {pipeline_mode = #tpu.pipeline_mode<synchronous>, transform_indices = @transform_3, window_bounds = array<i64: 768, 192>}, {pipeline_mode = #tpu.pipeline_mode<synchronous>, transform_indices = @transform_4, window_bounds = array<i64: 1, 192>}, {pipeline_mode = #tpu.pipeline_mode<synchronous>, transform_indices = @transform_5, window_bounds = array<i64: 192, 1>}, {pipeline_mode = #tpu.pipeline_mode<synchronous>, transform_indices = @transform_6, window_bounds = array<i64: 1, 1>}, {transform_indices = @transform_7, window_bounds = array<i64: 8, 1>}]} {
    %c0 = arith.constant 0 : index
    %c0_0 = arith.constant 0 : index
    %0 = vector.load %arg1[%c0, %c0_0] : memref<8x768xbf16, #tpu.memory_space<vmem>>, vector<8x768xbf16>
    %c0_1 = arith.constant 0 : index
    %c0_2 = arith.constant 0 : index
    %1 = vector.load %arg2[%c0_1, %c0_2] : memref<768x768xbf16, #tpu.memory_space<vmem>>, vector<768x768xbf16>
    %cst = arith.constant dense<0.000000e+00> : vector<8x768xf32>
    %2 = tpu.matmul %0, %1, %cst {dimension_numbers = #tpu.dot_dimension_numbers<[1], [0], [0], [1], [0, 0, 1, 1], [], []>} : vector<8x768xbf16>, vector<768x768xbf16>, vector<8x768xf32> -> vector<8x768xf32>
    %c0_3 = arith.constant 0 : index
    %c0_4 = arith.constant 0 : index
    %3 = vector.load %arg3[%c0_3, %c0_4] : memref<1x768xf32, #tpu.memory_space<vmem>>, vector<1x768xf32>
    %4 = vector.broadcast %3 : vector<1x768xf32> to vector<8x768xf32>
    %5 = arith.addf %2, %4 : vector<8x768xf32>
    %cst_5 = arith.constant 0.000000e+00 : f32
    %6 = vector.broadcast %cst_5 : f32 to vector<8x768xf32>
    %7 = arith.maximumf %5, %6 : vector<8x768xf32>
    %8 = arith.truncf %7 : vector<8x768xf32> to vector<8x768xbf16>
    %c0_6 = arith.constant 0 : index
    %c0_7 = arith.constant 0 : index
    %9 = vector.load %arg4[%c0_6, %c0_7] : memref<768x192xbf16, #tpu.memory_space<vmem>>, vector<768x192xbf16>
    %cst_8 = arith.constant dense<0.000000e+00> : vector<8x192xf32>
    %10 = tpu.matmul %8, %9, %cst_8 {dimension_numbers = #tpu.dot_dimension_numbers<[1], [0], [0], [1], [0, 0, 1, 1], [], []>} : vector<8x768xbf16>, vector<768x192xbf16>, vector<8x192xf32> -> vector<8x192xf32>
    %c0_9 = arith.constant 0 : index
    %c0_10 = arith.constant 0 : index
    %11 = vector.load %arg5[%c0_9, %c0_10] : memref<1x192xf32, #tpu.memory_space<vmem>>, vector<1x192xf32>
    %12 = vector.broadcast %11 : vector<1x192xf32> to vector<8x192xf32>
    %13 = arith.addf %10, %12 : vector<8x192xf32>
    %cst_11 = arith.constant 0.000000e+00 : f32
    %14 = vector.broadcast %cst_11 : f32 to vector<8x192xf32>
    %15 = arith.maximumf %13, %14 : vector<8x192xf32>
    %16 = arith.truncf %15 : vector<8x192xf32> to vector<8x192xbf16>
    %c0_12 = arith.constant 0 : index
    %c0_13 = arith.constant 0 : index
    %17 = vector.load %arg6[%c0_12, %c0_13] : memref<192x1xbf16, #tpu.memory_space<vmem>>, vector<192x1xbf16>
    %cst_14 = arith.constant dense<0.000000e+00> : vector<8x1xf32>
    %18 = tpu.matmul %16, %17, %cst_14 {dimension_numbers = #tpu.dot_dimension_numbers<[1], [0], [0], [1], [0, 0, 1, 1], [], []>} : vector<8x192xbf16>, vector<192x1xbf16>, vector<8x1xf32> -> vector<8x1xf32>
    %c0_15 = arith.constant 0 : index
    %c0_16 = arith.constant 0 : index
    %19 = vector.load %arg7[%c0_15, %c0_16] : memref<1x1xf32, #tpu.memory_space<vmem>>, vector<1x1xf32>
    %20 = vector.broadcast %19 : vector<1x1xf32> to vector<8x1xf32>
    %21 = arith.addf %18, %20 : vector<8x1xf32>
    %c0_17 = arith.constant 0 : index
    %c0_18 = arith.constant 0 : index
    %22 = vector.load %arg8[%c0_17, %c0_18] : memref<8x1xf32, #tpu.memory_space<vmem>>, vector<8x1xf32>
    tpu.vector_store %arg8[%c0_17, %c0_18], %21 {strides = array<i32>} : memref<8x1xf32, #tpu.memory_space<vmem>>, vector<8x1xf32>,
    return
  }
  func.func @transform_0(%arg0: i32) -> (i32, i32) {
    %c0_i32 = arith.constant 0 : i32
    %c0_i32_0 = arith.constant 0 : i32
    return %arg0, %c0_i32 : i32, i32
  }
  func.func @transform_1(%arg0: i32) -> (i32, i32) {
    %c0_i32 = arith.constant 0 : i32
    %c0_i32_0 = arith.constant 0 : i32
    %c0_i32_1 = arith.constant 0 : i32
    return %c0_i32, %c0_i32_0 : i32, i32
  }
  func.func @transform_2(%arg0: i32) -> (i32, i32) {
    %c0_i32 = arith.constant 0 : i32
    %c0_i32_0 = arith.constant 0 : i32
    %c0_i32_1 = arith.constant 0 : i32
    return %c0_i32, %c0_i32_0 : i32, i32
  }
  func.func @transform_3(%arg0: i32) -> (i32, i32) {
    %c0_i32 = arith.constant 0 : i32
    %c0_i32_0 = arith.constant 0 : i32
    %c0_i32_1 = arith.constant 0 : i32
    return %c0_i32, %c0_i32_0 : i32, i32
  }
  func.func @transform_4(%arg0: i32) -> (i32, i32) {
    %c0_i32 = arith.constant 0 : i32
    %c0_i32_0 = arith.constant 0 : i32
    %c0_i32_1 = arith.constant 0 : i32
    return %c0_i32, %c0_i32_0 : i32, i32
  }
  func.func @transform_5(%arg0: i32) -> (i32, i32) {
    %c0_i32 = arith.constant 0 : i32
    %c0_i32_0 = arith.constant 0 : i32
    %c0_i32_1 = arith.constant 0 : i32
    return %c0_i32, %c0_i32_0 : i32, i32
  }
  func.func @transform_6(%arg0: i32) -> (i32, i32) {
    %c0_i32 = arith.constant 0 : i32
    %c0_i32_0 = arith.constant 0 : i32
    %c0_i32_1 = arith.constant 0 : i32
    return %c0_i32, %c0_i32_0 : i32, i32
  }
  func.func @transform_7(%arg0: i32) -> (i32, i32) {
    %c0_i32 = arith.constant 0 : i32
    %c0_i32_0 = arith.constant 0 : i32
    return %arg0, %c0_i32 : i32, i32
  }
}

</mosaic_0001>

<bundles_post_ra>
// kernel: discriminator_forward.3
= control target key start
LH: loop header
LB: loop body
LE: loop exit
PB: predicated region body
PF: predicated region fallthrough
CT: control target
= control target key end

     0   :  { %vm277_vm0 = vcmask 392192   ;;  %vm3921_vm1 = vcmask 195584   ;;  %s3853_s1 = inlined_call_operand.vmem [shape: bf16[48,24], index: 1, kind: input, shape index: {}]   ;;  %s3854_s0 = inlined_call_operand.vmem [shape: bf16[512,48], index: 0, kind: input, shape index: {}]   ;;  %s3855_s2 = inlined_call_operand.vmem [shape: f32[1,24], index: 2, kind: input, shape index: {}]   ;;  %s3856_s3 = inlined_call_operand.vmem [shape: f32[1,24], index: 3, kind: input, shape index: {}]   ;;  %s3857_s4 = inlined_call_operand.vmem [shape: f32[1,24], index: 4, kind: input, shape index: {}]   ;;  %s3858_s5 = inlined_call_operand.vmem [shape: bf16[128,24], index: 5, kind: output, shape index: {}]  }
   0x1   :  { %v1825_v0 = vld [vmem:[%s3853_s1 + $0x10] sm:$0xff]   ;;  %v1826_v1 = vld [vmem:[%s3853_s1 + $0x8] sm:$0xff]   ;;  %v1828_v2 = vld [vmem:[%s3854_s0] sm:$0xff]  }
   0x2   :  { %1749 = vmatprep.subr.bf16.mxu0 %v1825_v0  ;;  %1819 = vmatprep.subr.bf16.mxu1 %v1825_v0  ;;  %v1827_v3 = vld [vmem:[%s3853_s1] sm:$0xff]   ;;  %v1829_v4 = vld [vmem:[%s3854_s0 + $0x8] sm:$0xff]   ;;  %v1830_v5 = vld [vmem:[%s3854_s0 + $0x10] sm:$0xff]  }
   0x3   :  { %1750 = vmatpush3.bf16.msra.mxu0 %v1825_v0  ;;  %1822 = vmatpush3.bf16.msra.mxu1 %v1825_v0  ;;  %v1831_v6 = vld [vmem:[%s3854_s0 + $0x18] sm:$0xff]   ;;  %v1832_v7 = vld [vmem:[%s3854_s0 + $0x20] sm:$0xff]   ;;  %v1845_v9 = vld [vmem:[%s3854_s0 + $0x88] sm:$0xff]  }
   0x4   :  { %1751 = vmatprep.subr.bf16.mxu0 %v1826_v1  ;;  %1820 = vmatprep.subr.bf16.mxu1 %v1826_v1  ;;  %v1844_v8 = vld [vmem:[%s3854_s0 + $0x80] sm:$0xff]   ;;  %v1846_v10 = vld [vmem:[%s3854_s0 + $0x90] sm:$0xff]   ;;  %v1833_v11 = vld [vmem:[%s3854_s0 + $0x28] sm:$0xff]  }
   0x5   :  { %1755 = vmatprep.mubr.msk.bf16.mxu0 %vm277_vm0, %v1828_v2  ;;  %1787 = vmatprep.mubr.msk.bf16.mxu1 %vm277_vm0, %v1844_v8  ;;  %v1834_v12 = vld [vmem:[%s3854_s0 + $0x30] sm:$0xff]   ;;  %v1847_v13 = vld [vmem:[%s3854_s0 + $0x98] sm:$0xff]   ;;  %v1848_v14 = vld [vmem:[%s3854_s0 + $0xa0] sm:$0xff]  }
   0x6   :  { %v1835_v15 = vld [vmem:[%s3854_s0 + $0x38] sm:$0xff]   ;;  %v1849_v16 = vld [vmem:[%s3854_s0 + $0xa8] sm:$0xff]   ;;  %v1836_v17 = vld [vmem:[%s3854_s0 + $0x40] sm:$0xff]  }
   0x7   :  { %1752 = vmatpush3.bf16.msra.mxu0 %v1826_v1  ;;  %1823 = vmatpush3.bf16.msra.mxu1 %v1826_v1  ;;  %v1850_v18 = vld [vmem:[%s3854_s0 + $0xb0] sm:$0xff]   ;;  %v1837_v19 = vld [vmem:[%s3854_s0 + $0x48] sm:$0xff]   ;;  %v1851_v20 = vld [vmem:[%s3854_s0 + $0xb8] sm:$0xff]  }
   0x8   :  { %1753 = vmatprep.subr.bf16.mxu0 %v1827_v3  ;;  %1821 = vmatprep.subr.bf16.mxu1 %v1827_v3  ;;  %v1838_v21 = vld [vmem:[%s3854_s0 + $0x50] sm:$0xff]   ;;  %v1852_v22 = vld [vmem:[%s3854_s0 + $0xc0] sm:$0xff]   ;;  %v1839_v23 = vld [vmem:[%s3854_s0 + $0x58] sm:$0xff]  }
   0x9   :  { %v1853_v24 = vld [vmem:[%s3854_s0 + $0xc8] sm:$0xff]   ;;  %v1840_v25 = vld [vmem:[%s3854_s0 + $0x60] sm:$0xff]   ;;  %v1854_v26 = vld [vmem:[%s3854_s0 + $0xd0] sm:$0xff]  }
   0xa   :  { %v1841_v27 = vld [vmem:[%s3854_s0 + $0x68] sm:$0xff]   ;;  %v1855_v28 = vld [vmem:[%s3854_s0 + $0xd8] sm:$0xff]   ;;  %v1842_v29 = vld [vmem:[%s3854_s0 + $0x70] sm:$0xff]  }
   0xb   :  { %1754 = vmatpush3.bf16.msra.mxu0 %v1827_v3  ;;  %1824 = vmatpush3.bf16.msra.mxu1 %v1827_v3  ;;  %v1856_v30 = vld [vmem:[%s3854_s0 + $0xe0] sm:$0xff]   ;;  %v1843_v31 = vld [vmem:[%s3854_s0 + $0x78] sm:$0xff]   ;;  %v1857_v32 = vld [vmem:[%s3854_s0 + $0xe8] sm:$0xff]  }
   0xc   :  { %v1858_v33 = vld [vmem:[%s3854_s0 + $0xf0] sm:$0xff]   ;;  %v1859_v34 = vld [vmem:[%s3854_s0 + $0xf8] sm:$0xff]   ;;  %v2032_v37 = vld [vmem:[%s3855_s2] ss:$0 sm:$0xff] }
   0xe   :  { %1756 = vmatmul.mubr.msk.bf16.vlgmr.msra.gmra.mxu0 %vm277_vm0, %v1829_v4  ;;  %1788 = vmatmul.mubr.msk.bf16.vlgmr.msra.gmra.mxu1 %vm277_vm0, %v1845_v9 }
   0xf   :  { %1759 = vmatprep.mubr.msk.bf16.mxu0 %vm277_vm0, %v1830_v5  ;;  %1791 = vmatprep.mubr.msk.bf16.mxu1 %vm277_vm0, %v1846_v10 }
  0x16   :  { %1760 = vmatmul.mubr.msk.bf16.gmra.mxu0 %vm277_vm0, %v1831_v6  ;;  %1792 = vmatmul.mubr.msk.bf16.gmra.mxu1 %vm277_vm0, %v1847_v13 }
  0x17   :  { %1763 = vmatprep.mubr.msk.bf16.mxu0 %vm277_vm0, %v1832_v7  ;;  %1795 = vmatprep.mubr.msk.bf16.mxu1 %vm277_vm0, %v1848_v14 }
  0x1e   :  { %1764 = vmatmul.mubr.msk.bf16.gmra.mxu0 %vm277_vm0, %v1833_v11  ;;  %1796 = vmatmul.mubr.msk.bf16.gmra.mxu1 %vm277_vm0, %v1849_v16 }
  0x1f   :  { %1767 = vmatprep.mubr.msk.bf16.mxu0 %vm277_vm0, %v1834_v12  ;;  %1799 = vmatprep.mubr.msk.bf16.mxu1 %vm277_vm0, %v1850_v18 }
  0x26   :  { %1768 = vmatmul.mubr.msk.bf16.gmra.mxu0 %vm277_vm0, %v1835_v15  ;;  %1800 = vmatmul.mubr.msk.bf16.gmra.mxu1 %vm277_vm0, %v1851_v20 }
  0x27   :  { %1771 = vmatprep.mubr.msk.bf16.mxu0 %vm277_vm0, %v1836_v17  ;;  %1803 = vmatprep.mubr.msk.bf16.mxu1 %vm277_vm0, %v1852_v22 }
  0x2e   :  { %1772 = vmatmul.mubr.msk.bf16.gmra.mxu0 %vm277_vm0, %v1837_v19  ;;  %1804 = vmatmul.mubr.msk.bf16.gmra.mxu1 %vm277_vm0, %v1853_v24 }
  0x2f   :  { %1775 = vmatprep.mubr.msk.bf16.mxu0 %vm277_vm0, %v1838_v21  ;;  %1807 = vmatprep.mubr.msk.bf16.mxu1 %vm277_vm0, %v1854_v26 }
  0x36   :  { %1776 = vmatmul.mubr.msk.bf16.gmra.mxu0 %vm277_vm0, %v1839_v23  ;;  %1808 = vmatmul.mubr.msk.bf16.gmra.mxu1 %vm277_vm0, %v1855_v28 }
  0x37   :  { %1779 = vmatprep.mubr.msk.bf16.mxu0 %vm277_vm0, %v1840_v25  ;;  %1811 = vmatprep.mubr.msk.bf16.mxu1 %vm277_vm0, %v1856_v30 }
  0x3e   :  { %1780 = vmatmul.mubr.msk.bf16.gmra.mxu0 %vm277_vm0, %v1841_v27  ;;  %1812 = vmatmul.mubr.msk.bf16.gmra.mxu1 %vm277_vm0, %v1857_v32 }
  0x3f   :  { %1783 = vmatprep.mubr.msk.bf16.mxu0 %vm277_vm0, %v1842_v29  ;;  %1815 = vmatprep.mubr.msk.bf16.mxu1 %vm277_vm0, %v1858_v33 }
  0x46   :  { %1784 = vmatmul.mubr.msk.bf16.gmra.mxu0 %vm277_vm0, %v1843_v31  ;;  %1816 = vmatmul.mubr.msk.bf16.gmra.mxu1 %vm277_vm0, %v1859_v34 }
  0xce   :  { %v1757_v35 = vpop.f32.mrf.mxu0  ;;  %v2043_v44 = vpop.f32.mrf.mxu1 }
  0xcf   :  { %v2038_v41 = vadd.f32 %v1757_v35, %v2032_v37 }
  0xd0   :  { %v408_v36 = vpop.f32.mrf.mxu0  ;;  %v2052_v50 = vpop.f32.mrf.mxu1 }
  0xd1   :  { %v2035_v39 = vadd.f32 %v2032_v37, %v408_v36  ;;  %v667_v51 = vsel %vm3921_vm1, %v2038_v41, 0.0 }
  0xd2   :  { %v1758_v38 = vpop.f32.mrf.mxu0  ;;  %v2059_v55 = vpop.f32.mrf.mxu1 }
  0xd3   :  { %v664_v45 = vsel %vm3921_vm1, %v2035_v39, 0.0  ;;  %v2048_v46 = vadd.f32 %v1758_v38, %v2032_v37 }
  0xd4   :  { %v411_v40 = vpop.f32.mrf.mxu0  ;;  %v2063_v59 = vpop.f32.mrf.mxu1 }
  0xd5   :  { %v2041_v42 = vadd.f32 %v2032_v37, %v411_v40  ;;  %3945 = vst [vmem:[#allocation2_spill] sm:$0xff] %v2048_v46  ;;  %v669_v56 = vsel %vm3921_vm1, %v2048_v46, 0.0 }
  0xd6   :  { %v1761_v43 = vpop.f32.mrf.mxu0  ;;  %v2078_v5 = vpop.f32.mrf.mxu1 }
  0xd7   :  { %v665_v47 = vsel %vm3921_vm1, %v2041_v42, 0.0  ;;  %v2066_v60 = vadd.f32 %v1761_v43, %v2032_v37 }
  0xd8   :  { %v666_v48 = vadd.f32 %v665_v47, %v664_v45  ;;  %v424_v49 = vpop.f32.mrf.mxu0  ;;  %v2087_v13 = vpop.f32.mrf.mxu1 }
  0xd9   :  { %v2057_v52 = vadd.f32 %v2032_v37, %v424_v49  ;;  %v675_v6 = vsel %vm3921_vm1, %v2066_v60, 0.0 }
  0xda   :  { %v668_v53 = vadd.f32 %v667_v51, %v666_v48  ;;  %v1762_v54 = vpop.f32.mrf.mxu0  ;;  %v2102_v23 = vpop.f32.mrf.mxu1 }
  0xdb   :  { %3946 = vst [vmem:[#allocation3_spill] sm:$0xff] %v2057_v52  ;;  %v671_v61 = vsel %vm3921_vm1, %v2057_v52, 0.0  ;;  %v2074_v1 = vadd.f32 %v1762_v54, %v2032_v37 }
  0xdc   :  { %v670_v57 = vadd.f32 %v669_v56, %v668_v53  ;;  %v427_v58 = vpop.f32.mrf.mxu0  ;;  %v2111_v31 = vpop.f32.mrf.mxu1 }
  0xdd   :  { %v2071_v62 = vadd.f32 %v2032_v37, %v427_v58  ;;  %v677_v10 = vsel %vm3921_vm1, %v2074_v1, 0.0 }
  0xde   :  { %v672_v63 = vadd.f32 %v671_v61, %v670_v57  ;;  %v1765_v0 = vpop.f32.mrf.mxu0  ;;  %v2126_v47 = vpop.f32.mrf.mxu1 }
  0xdf   :  { %3947 = vst [vmem:[#allocation4_spill] sm:$0xff] %v2071_v62  ;;  %v673_v2 = vsel %vm3921_vm1, %v2071_v62, 0.0  ;;  %v2090_v14 = vadd.f32 %v1765_v0, %v2032_v37 }
  0xe0   :  { %v674_v3 = vadd.f32 %v673_v2, %v672_v63  ;;  %v440_v4 = vpop.f32.mrf.mxu0  ;;  %v2135_v58 = vpop.f32.mrf.mxu1 }
  0xe1   :  { %v2083_v7 = vadd.f32 %v2032_v37, %v440_v4  ;;  %v683_v24 = vsel %vm3921_vm1, %v2090_v14, 0.0 }
  0xe2   :  { %v676_v8 = vadd.f32 %v675_v6, %v674_v3  ;;  %v1766_v9 = vpop.f32.mrf.mxu0 }
  0xe3   :  { %v679_v15 = vsel %vm3921_vm1, %v2083_v7, 0.0  ;;  %v2098_v19 = vadd.f32 %v1766_v9, %v2032_v37 }
  0xe4   :  { %v678_v11 = vadd.f32 %v677_v10, %v676_v8  ;;  %v443_v12 = vpop.f32.mrf.mxu0  ;;  %v2150_v10 = vpop.f32.mrf.mxu1 }
  0xe5   :  { %v2095_v16 = vadd.f32 %v2032_v37, %v443_v12  ;;  %v685_v28 = vsel %vm3921_vm1, %v2098_v19, 0.0 }
  0xe6   :  { %v680_v17 = vadd.f32 %v679_v15, %v678_v11  ;;  %v1769_v18 = vpop.f32.mrf.mxu0 }
  0xe7   :  { %v681_v20 = vsel %vm3921_vm1, %v2095_v16, 0.0  ;;  %v2114_v32 = vadd.f32 %v1769_v18, %v2032_v37 }
  0xe8   :  { %v682_v21 = vadd.f32 %v681_v20, %v680_v17  ;;  %v456_v22 = vpop.f32.mrf.mxu0 }
  0xe9   :  { %v2107_v25 = vadd.f32 %v2032_v37, %v456_v22  ;;  %v691_v48 = vsel %vm3921_vm1, %v2114_v32, 0.0  ;;  %v2159_v22 = vpop.f32.mrf.mxu1 }
  0xea   :  { %v684_v26 = vadd.f32 %v683_v24, %v682_v21  ;;  %v1770_v27 = vpop.f32.mrf.mxu0 }
  0xeb   :  { %v687_v33 = vsel %vm3921_vm1, %v2107_v25, 0.0  ;;  %v2122_v38 = vadd.f32 %v1770_v27, %v2032_v37 }
  0xec   :  { %v686_v29 = vadd.f32 %v685_v28, %v684_v26  ;;  %v459_v30 = vpop.f32.mrf.mxu0 }
  0xed   :  { %v2119_v34 = vadd.f32 %v2032_v37, %v459_v30  ;;  %v693_v54 = vsel %vm3921_vm1, %v2122_v38, 0.0 }
  0xee   :  { %v688_v35 = vadd.f32 %v687_v33, %v686_v29  ;;  %v1773_v36 = vpop.f32.mrf.mxu0 }
  0xef   :  { %v689_v40 = vsel %vm3921_vm1, %v2119_v34, 0.0  ;;  %v2138_v61 = vadd.f32 %v1773_v36, %v2032_v37 }
  0xf0   :  { %v690_v43 = vadd.f32 %v689_v40, %v688_v35  ;;  %v472_v45 = vpop.f32.mrf.mxu0  ;;  %v2174_v40 = vpop.f32.mrf.mxu1 }
  0xf1   :  { %v2131_v49 = vadd.f32 %v2032_v37, %v472_v45  ;;  %v699_v11 = vsel %vm3921_vm1, %v2138_v61, 0.0 }
  0xf2   :  { %v692_v51 = vadd.f32 %v691_v48, %v690_v43  ;;  %v1774_v53 = vpop.f32.mrf.mxu0 }
  0xf3   :  { %v695_v63 = vsel %vm3921_vm1, %v2131_v49, 0.0  ;;  %v2146_v4 = vadd.f32 %v1774_v53, %v2032_v37 }
  0xf4   :  { %v694_v56 = vadd.f32 %v693_v54, %v692_v51  ;;  %v475_v57 = vpop.f32.mrf.mxu0 }
  0xf5   :  { %v2143_v0 = vadd.f32 %v2032_v37, %v475_v57  ;;  %v701_v18 = vsel %vm3921_vm1, %v2146_v4, 0.0  ;;  %v2183_v57 = vpop.f32.mrf.mxu1 }
  0xf6   :  { %v696_v2 = vadd.f32 %v695_v63, %v694_v56  ;;  %v1777_v3 = vpop.f32.mrf.mxu0 }
  0xf7   :  { %v697_v6 = vsel %vm3921_vm1, %v2143_v0, 0.0  ;;  %v2162_v24 = vadd.f32 %v1777_v3, %v2032_v37 }
  0xf8   :  { %v698_v8 = vadd.f32 %v697_v6, %v696_v2  ;;  %v488_v9 = vpop.f32.mrf.mxu0 }
  0xf9   :  { %v2155_v12 = vadd.f32 %v2032_v37, %v488_v9  ;;  %v707_v43 = vsel %vm3921_vm1, %v2162_v24, 0.0 }
  0xfa   :  { %v700_v15 = vadd.f32 %v699_v11, %v698_v8  ;;  %v1778_v17 = vpop.f32.mrf.mxu0 }
  0xfb   :  { %v703_v26 = vsel %vm3921_vm1, %v2155_v12, 0.0  ;;  %v2170_v30 = vadd.f32 %v1778_v17, %v2032_v37 }
  0xfc   :  { %v702_v20 = vadd.f32 %v701_v18, %v700_v15  ;;  %v491_v21 = vpop.f32.mrf.mxu0  ;;  %v2198_v18 = vpop.f32.mrf.mxu1 }
  0xfd   :  { %v2167_v27 = vadd.f32 %v2032_v37, %v491_v21  ;;  %v709_v53 = vsel %vm3921_vm1, %v2170_v30, 0.0 }
  0xfe   :  { %v704_v28 = vadd.f32 %v703_v26, %v702_v20  ;;  %v1781_v29 = vpop.f32.mrf.mxu0 }
  0xff   :  { %v705_v33 = vsel %vm3921_vm1, %v2167_v27, 0.0  ;;  %v2186_v63 = vadd.f32 %v1781_v29, %v2032_v37 }
 0x100   :  { %v706_v35 = vadd.f32 %v705_v33, %v704_v28  ;;  %v504_v36 = vpop.f32.mrf.mxu0 }
 0x101   :  { %v2179_v45 = vadd.f32 %v2032_v37, %v504_v36  ;;  %v715_v20 = vsel %vm3921_vm1, %v2186_v63, 0.0  ;;  %v587_v36 = vpop.f32.mrf.mxu1 }
 0x102   :  { %v708_v48 = vadd.f32 %v707_v43, %v706_v35  ;;  %v1782_v51 = vpop.f32.mrf.mxu0 }
 0x103   :  { %v711_v2 = vsel %vm3921_vm1, %v2179_v45, 0.0  ;;  %v2194_v9 = vadd.f32 %v1782_v51, %v2032_v37 }
 0x104   :  { %v710_v54 = vadd.f32 %v709_v53, %v708_v48  ;;  %v507_v56 = vpop.f32.mrf.mxu0 }
 0x105   :  { %v2191_v3 = vadd.f32 %v2032_v37, %v507_v56  ;;  %v717_v29 = vsel %vm3921_vm1, %v2194_v9, 0.0 }
 0x106   :  { %v712_v6 = vadd.f32 %v711_v2, %v710_v54  ;;  %v1785_v8 = vpop.f32.mrf.mxu0 }
 0x107   :  { %v713_v11 = vsel %vm3921_vm1, %v2191_v3, 0.0  ;;  %v2208_v43 = vadd.f32 %v1785_v8, %v2032_v37 }
 0x108   :  { %v714_v15 = vadd.f32 %v713_v11, %v712_v6  ;;  %v520_v17 = vpop.f32.mrf.mxu0  ;;  %v2220_v6 = vpop.f32.mrf.mxu1  ;;  %v2226_v11 = vadd.f32 %v2032_v37, %v2052_v50  ;;  %v2242_v50 = vadd.f32 %v2059_v55, %v2032_v37  ;;  %v2256_v55 = vadd.f32 %v2032_v37, %v2111_v31 }
 0x109   :  { %v2203_v21 = vadd.f32 %v2032_v37, %v520_v17  ;;  %v723_v8 = vsel %vm3921_vm1, %v2208_v43, 0.0 }
 0x10a   :  { %v716_v26 = vadd.f32 %v715_v20, %v714_v15  ;;  %v1786_v28 = vpop.f32.mrf.mxu0  ;;  %v2232_v20 = vadd.f32 %v2032_v37, %v2063_v59  ;;  %3948 = vst [vmem:[#allocation5_spill] sm:$0xff] %v2242_v50  ;;  %3949 = vst [vmem:[#allocation6_spill] sm:$0xff] %v2256_v55 }
 0x10b   :  { %v719_v48 = vsel %vm3921_vm1, %v2203_v21, 0.0  ;;  %v2216_v54 = vadd.f32 %v1786_v28, %v2032_v37  ;;  %v600_v28 = vpop.f32.mrf.mxu1 }
 0x10c   :  { %v718_v33 = vadd.f32 %v717_v29, %v716_v26  ;;  %v523_v35 = vpop.f32.mrf.mxu0  ;;  %v2236_v29 = vadd.f32 %v2043_v44, %v2032_v37  ;;  %v2250_v44 = vadd.f32 %v2032_v37, %v2087_v13  ;;  %v2266_v13 = vadd.f32 %v2102_v23, %v2032_v37 }
 0x10d   :  { %v2213_v51 = vadd.f32 %v2032_v37, %v523_v35  ;;  %v725_v17 = vsel %vm3921_vm1, %v2216_v54, 0.0  ;;  %v1806_v59 = vpop.f32.mrf.mxu1  ;;  %v2280_v23 = vadd.f32 %v2032_v37, %v2159_v22 }
 0x10e   :  { %v720_v53 = vadd.f32 %v719_v48, %v718_v33  ;;  %v727_v33 = vsel %vm3921_vm1, %v2226_v11, 0.0  ;;  %v729_v48 = vsel %vm3921_vm1, %v2232_v20, 0.0  ;;  %3951 = vst [vmem:[#allocation8_spill] sm:$0xff] %v2266_v13 }
 0x10f   :  { %v721_v56 = vsel %vm3921_vm1, %v2213_v51, 0.0  ;;  %3953 = vst [vmem:[#allocation10_spill] sm:$0xff] %v2280_v23 }
 0x110   :  { %v722_v2 = vadd.f32 %v721_v56, %v720_v53  ;;  %v731_v56 = vsel %vm3921_vm1, %v2236_v29, 0.0 }
 0x112   :  { %v724_v15 = vadd.f32 %v723_v8, %v722_v2  ;;  %v733_v8 = vsel %vm3921_vm1, %v2242_v50, 0.0 }
 0x114   :  { %v726_v26 = vadd.f32 %v725_v17, %v724_v15  ;;  %v603_v17 = vpop.f32.mrf.mxu1 }
 0x116   :  { %v728_v35 = vadd.f32 %v727_v33, %v726_v26  ;;  %v2260_v26 = vadd.f32 %v2078_v5, %v2032_v37  ;;  %v735_v33 = vsel %vm3921_vm1, %v2250_v44, 0.0  ;;  %v1809_v31 = vpop.f32.mrf.mxu1  ;;  %v2274_v5 = vadd.f32 %v2032_v37, %v2135_v58 }
 0x117   :  { %v2290_v58 = vadd.f32 %v2150_v10, %v2032_v37 }
 0x118   :  { %v730_v53 = vadd.f32 %v729_v48, %v728_v35  ;;  %3950 = vst [vmem:[#allocation7_spill] sm:$0xff] %v2260_v26  ;;  %v737_v48 = vsel %vm3921_vm1, %v2256_v55, 0.0  ;;  %3952 = vst [vmem:[#allocation9_spill] sm:$0xff] %v2274_v5 }
 0x11a   :  { %v732_v2 = vadd.f32 %v731_v56, %v730_v53  ;;  %v739_v56 = vsel %vm3921_vm1, %v2260_v26, 0.0 }
 0x11c   :  { %v734_v15 = vadd.f32 %v733_v8, %v732_v2  ;;  %v741_v8 = vsel %vm3921_vm1, %v2266_v13, 0.0 }
 0x11e   :  { %v736_v35 = vadd.f32 %v735_v33, %v734_v15  ;;  %v616_v33 = vpop.f32.mrf.mxu1 }
 0x120   :  { %v738_v53 = vadd.f32 %v737_v48, %v736_v35  ;;  %v2284_v35 = vadd.f32 %v2126_v47, %v2032_v37  ;;  %v743_v48 = vsel %vm3921_vm1, %v2274_v5, 0.0  ;;  %v1810_v22 = vpop.f32.mrf.mxu1  ;;  %v2298_v47 = vadd.f32 %v2032_v37, %v2183_v57 }
 0x121   :  { %v2313_v57 = vadd.f32 %v2198_v18, %v2032_v37 }
 0x122   :  { %v740_v2 = vadd.f32 %v739_v56, %v738_v53  ;;  %3954 = vst [vmem:[#allocation11_spill] sm:$0xff] %v2284_v35  ;;  %v745_v53 = vsel %vm3921_vm1, %v2280_v23, 0.0  ;;  %3955 = vst [vmem:[#allocation12_spill] sm:$0xff] %v2298_v47  ;;  %v619_v5 = vpop.f32.mrf.mxu1 }
 0x123   :  { %3957 = vst [vmem:[#allocation14_spill] sm:$0xff] %v2313_v57 }
 0x124   :  { %v742_v15 = vadd.f32 %v741_v8, %v740_v2  ;;  %v747_v2 = vsel %vm3921_vm1, %v2284_v35, 0.0 }
 0x126   :  { %v744_v26 = vadd.f32 %v743_v48, %v742_v15  ;;  %v749_v15 = vsel %vm3921_vm1, %v2290_v58, 0.0  ;;  %v2303_v48 = vadd.f32 %v2032_v37, %v587_v36  ;;  %v1813_v36 = vpop.f32.mrf.mxu1 }
 0x128   :  { %v746_v56 = vadd.f32 %v745_v53, %v744_v26  ;;  %3956 = vst [vmem:[#allocation13_spill] sm:$0xff] %v2303_v48  ;;  %v2307_v26 = vadd.f32 %v2174_v40, %v2032_v37  ;;  %v751_v53 = vsel %vm3921_vm1, %v2298_v47, 0.0  ;;  %v757_v47 = vsel %vm3921_vm1, %v2313_v57, 0.0 }
 0x12a   :  { %v748_v8 = vadd.f32 %v747_v2, %v746_v56  ;;  %v753_v56 = vsel %vm3921_vm1, %v2303_v48, 0.0  ;;  %v2329_v48 = vadd.f32 %v2220_v6, %v2032_v37 }
 0x12c   :  { %v750_v10 = vadd.f32 %v749_v15, %v748_v8  ;;  %v755_v8 = vsel %vm3921_vm1, %v2307_v26, 0.0  ;;  %v2320_v15 = vadd.f32 %v2032_v37, %v600_v28  ;;  %3960 = vst [vmem:[#allocation17_spill] sm:$0xff] %v2329_v48  ;;  %v2334_v28 = vadd.f32 %v1806_v59, %v2032_v37 }
 0x12e   :  { %v752_v35 = vadd.f32 %v751_v53, %v750_v10  ;;  %3958 = vst [vmem:[#allocation15_spill] sm:$0xff] %v2320_v15  ;;  %v2325_v10 = vadd.f32 %v2032_v37, %v603_v17  ;;  %v632_v53 = vpop.f32.mrf.mxu1  ;;  %3961 = vst [vmem:[#allocation18_spill] sm:$0xff] %v2334_v28  ;;  %v763_v17 = vsel %vm3921_vm1, %v2329_v48, 0.0  ;;  %v2354_v48 = vadd.f32 %v1810_v22, %v2032_v37 }
 0x130   :  { %v754_v2 = vadd.f32 %v753_v56, %v752_v35  ;;  %3959 = vst [vmem:[#allocation16_spill] sm:$0xff] %v2325_v10  ;;  %v759_v35 = vsel %vm3921_vm1, %v2320_v15, 0.0  ;;  %v1814_v57 = vpop.f32.mrf.mxu1  ;;  %v2349_v15 = vadd.f32 %v1809_v31, %v2032_v37  ;;  %3965 = vst [vmem:[#allocation22_spill] sm:$0xff] %v2354_v48 }
 0x132   :  { %v756_v40 = vadd.f32 %v755_v8, %v754_v2  ;;  %v761_v2 = vsel %vm3921_vm1, %v2325_v10, 0.0  ;;  %3964 = vst [vmem:[#allocation21_spill] sm:$0xff] %v2349_v15 }
 0x134   :  { %v758_v18 = vadd.f32 %v757_v47, %v756_v40  ;;  %v2341_v47 = vadd.f32 %v2032_v37, %v616_v33  ;;  %v765_v40 = vsel %vm3921_vm1, %v2334_v28, 0.0 }
 0x136   :  { %v760_v56 = vadd.f32 %v759_v35, %v758_v18  ;;  %3962 = vst [vmem:[#allocation19_spill] sm:$0xff] %v2341_v47  ;;  %v2346_v18 = vadd.f32 %v2032_v37, %v619_v5  ;;  %v635_v35 = vpop.f32.mrf.mxu1  ;;  %v771_v5 = vsel %vm3921_vm1, %v2349_v15, 0.0  ;;  %v2374_v15 = vadd.f32 %v1814_v57, %v2032_v37 }
 0x138   :  { %v762_v8 = vadd.f32 %v761_v2, %v760_v56  ;;  %3963 = vst [vmem:[#allocation20_spill] sm:$0xff] %v2346_v18  ;;  %v767_v56 = vsel %vm3921_vm1, %v2341_v47, 0.0  ;;  %v769_v33 = vsel %vm3921_vm1, %v2346_v18, 0.0  ;;  %v2369_v47 = vadd.f32 %v1813_v36, %v2032_v37  ;;  %3969 = vst [vmem:[#allocation26_spill] sm:$0xff] %v2374_v15 }
 0x139   :  { %v781_v36 = vsel %vm3921_vm1, %v2374_v15, 0.0 }
 0x13a   :  { %v764_v6 = vadd.f32 %v763_v17, %v762_v8  ;;  %v1817_v17 = vpop.f32.mrf.mxu1  ;;  %3968 = vst [vmem:[#allocation25_spill] sm:$0xff] %v2369_v47 }
 0x13c   :  { %v766_v59 = vadd.f32 %v765_v40, %v764_v6  ;;  %v2361_v6 = vadd.f32 %v2032_v37, %v632_v53  ;;  %v773_v40 = vsel %vm3921_vm1, %v2354_v48, 0.0 }
 0x13e   :  { %v768_v2 = vadd.f32 %v767_v56, %v766_v59  ;;  %3966 = vst [vmem:[#allocation23_spill] sm:$0xff] %v2361_v6  ;;  %v2366_v59 = vadd.f32 %v2032_v37, %v635_v35  ;;  %v648_v56 = vpop.f32.mrf.mxu1  ;;  %v779_v35 = vsel %vm3921_vm1, %v2369_v47, 0.0 }
 0x140   :  { %v770_v8 = vadd.f32 %v769_v33, %v768_v2  ;;  %3967 = vst [vmem:[#allocation24_spill] sm:$0xff] %v2366_v59  ;;  %v775_v2 = vsel %vm3921_vm1, %v2361_v6, 0.0  ;;  %v777_v53 = vsel %vm3921_vm1, %v2366_v59, 0.0 }
 0x142   :  { %v772_v31 = vadd.f32 %v771_v5, %v770_v8  ;;  %v1818_v5 = vpop.f32.mrf.mxu1 }
 0x144   :  { %v774_v22 = vadd.f32 %v773_v40, %v772_v31  ;;  %v2383_v40 = vadd.f32 %v2032_v37, %v648_v56 }
 0x146   :  { %v776_v33 = vadd.f32 %v775_v2, %v774_v22  ;;  %3970 = vst [vmem:[#allocation27_spill] sm:$0xff] %v2383_v40  ;;  %v651_v22 = vpop.f32.mrf.mxu1  ;;  %v783_v57 = vsel %vm3921_vm1, %v2383_v40, 0.0 }
 0x147   :  { %v2388_v2 = vadd.f32 %v2032_v37, %v651_v22 }
 0x148   :  { %v778_v8 = vadd.f32 %v777_v53, %v776_v33  ;;  %v2391_v53 = vadd.f32 %v1817_v17, %v2032_v37 }
 0x149   :  { %3971 = vst [vmem:[#allocation28_spill] sm:$0xff] %v2388_v2 }
 0x14a   :  { %v780_v31 = vadd.f32 %v779_v35, %v778_v8  ;;  %3972 = vst [vmem:[#allocation29_spill] sm:$0xff] %v2391_v53  ;;  %v785_v8 = vsel %vm3921_vm1, %v2388_v2, 0.0  ;;  %v787_v56 = vsel %vm3921_vm1, %v2391_v53, 0.0 }
 0x14c   :  { %v782_v6 = vadd.f32 %v781_v36, %v780_v31  ;;  %v2398_v31 = vadd.f32 %v1818_v5, %v2032_v37 }
 0x14e   :  { %v784_v33 = vadd.f32 %v783_v57, %v782_v6  ;;  %3973 = vst [vmem:[#allocation30_spill] sm:$0xff] %v2398_v31  ;;  %v789_v40 = vsel %vm3921_vm1, %v2398_v31, 0.0 }
 0x150   :  { %v786_v35 = vadd.f32 %v785_v8, %v784_v33 }
 0x152   :  { %v788_v36 = vadd.f32 %v787_v56, %v786_v35 }
 0x154   :  { %v790_v22 = vadd.f32 %v789_v40, %v788_v36 }
 0x156   :  { %v791_v15 = vrot.slane %v790_v22, 4 }
 0x158   :  { %v792_v6 = vadd.f32 %v791_v15, %v790_v22 }
 0x15a   :  { %v793_v57 = vrot.slane %v792_v6, 2 }
 0x15c   :  { %v794_v17 = vadd.f32 %v793_v57, %v792_v6 }
 0x15e   :  { %v795_v47 = vrot.slane %v794_v17, 1 }
 0x160   :  { %v796_v59 = vadd.f32 %v795_v47, %v794_v17 }
 0x162   :  { %v2402_v48 = vmul.f32 0.001953125, %v796_v59 }
 0x164   :  { %v799_v33 = vsub.f32 %v2035_v39, %v2402_v48  ;;  %v800_v37 = vsub.f32 %v2041_v42, %v2402_v48  ;;  %v801_v5 = vsub.f32 %v2038_v41, %v2402_v48  ;;  %v802_v40 = vsub.f32 %v2048_v46, %v2402_v48 }
 0x165   :  { %v803_v35 = vsub.f32 %v2057_v52, %v2402_v48  ;;  %v804_v59 = vsub.f32 %v2071_v62, %v2402_v48  ;;  %v805_v57 = vsub.f32 %v2066_v60, %v2402_v48  ;;  %v806_v52 = vsub.f32 %v2074_v1, %v2402_v48 }
 0x166   :  { %v863_v8 = vmul.f32 %v799_v33, %v799_v33  ;;  %v864_v15 = vmul.f32 %v800_v37, %v800_v37  ;;  %v865_v47 = vmul.f32 %v801_v5, %v801_v5  ;;  %v866_v56 = vmul.f32 %v802_v40, %v802_v40 }
 0x167   :  { %v867_v17 = vmul.f32 %v803_v35, %v803_v35  ;;  %v868_v5 = vmul.f32 %v804_v59, %v804_v59  ;;  %v807_v40 = vsub.f32 %v2083_v7, %v2402_v48  ;;  %v808_v35 = vsub.f32 %v2095_v16, %v2402_v48 }
 0x168   :  { %v927_v36 = vsel %vm3921_vm1, %v863_v8, 0.0  ;;  %v928_v22 = vsel %vm3921_vm1, %v864_v15, 0.0  ;;  %v930_v33 = vsel %vm3921_vm1, %v865_v47, 0.0  ;;  %v932_v46 = vsel %vm3921_vm1, %v866_v56, 0.0 }
 0x169   :  { %v929_v6 = vadd.f32 %v928_v22, %v927_v36  ;;  %v869_v8 = vmul.f32 %v805_v57, %v805_v57  ;;  %v934_v15 = vsel %vm3921_vm1, %v867_v17, 0.0  ;;  %v870_v22 = vmul.f32 %v806_v52, %v806_v52 }
 0x16a   :  { %v936_v47 = vsel %vm3921_vm1, %v868_v5, 0.0  ;;  %v809_v59 = vsub.f32 %v2090_v14, %v2402_v48  ;;  %v810_v57 = vsub.f32 %v2098_v19, %v2402_v48  ;;  %v811_v52 = vsub.f32 %v2107_v25, %v2402_v48 }
 0x16b   :  { %v931_v37 = vadd.f32 %v930_v33, %v929_v6  ;;  %v871_v33 = vmul.f32 %v807_v40, %v807_v40  ;;  %v812_v40 = vsub.f32 %v2119_v34, %v2402_v48 }
 0x16d   :  { %v933_v62 = vadd.f32 %v932_v46, %v931_v37  ;;  %v938_v46 = vsel %vm3921_vm1, %v869_v8, 0.0  ;;  %v872_v37 = vmul.f32 %v808_v35, %v808_v35  ;;  %v942_v5 = vsel %vm3921_vm1, %v871_v33, 0.0 }
 0x16e   :  { %v813_v35 = vsub.f32 %v2114_v32, %v2402_v48 }
 0x16f   :  { %v935_v36 = vadd.f32 %v934_v15, %v933_v62  ;;  %v940_v62 = vsel %vm3921_vm1, %v870_v22, 0.0  ;;  %v873_v15 = vmul.f32 %v809_v59, %v809_v59  ;;  %v944_v8 = vsel %vm3921_vm1, %v872_v37, 0.0 }
 0x170   :  { %v814_v59 = vsub.f32 %v2122_v38, %v2402_v48 }
 0x171   :  { %v937_v6 = vadd.f32 %v936_v47, %v935_v36  ;;  %v874_v47 = vmul.f32 %v810_v57, %v810_v57  ;;  %v946_v22 = vsel %vm3921_vm1, %v873_v15, 0.0  ;;  %v815_v57 = vsub.f32 %v2131_v49, %v2402_v48 }
 0x173   :  { %v939_v56 = vadd.f32 %v938_v46, %v937_v6  ;;  %v875_v46 = vmul.f32 %v811_v52, %v811_v52  ;;  %v948_v33 = vsel %vm3921_vm1, %v874_v47, 0.0  ;;  %v816_v52 = vsub.f32 %v2143_v0, %v2402_v48 }
 0x175   :  { %v941_v17 = vadd.f32 %v940_v62, %v939_v56  ;;  %v876_v62 = vmul.f32 %v812_v40, %v812_v40  ;;  %v950_v37 = vsel %vm3921_vm1, %v875_v46, 0.0  ;;  %v817_v40 = vsub.f32 %v2138_v61, %v2402_v48 }
 0x177   :  { %v943_v36 = vadd.f32 %v942_v5, %v941_v17  ;;  %v877_v5 = vmul.f32 %v813_v35, %v813_v35  ;;  %v952_v15 = vsel %vm3921_vm1, %v876_v62, 0.0  ;;  %v818_v35 = vsub.f32 %v2146_v4, %v2402_v48 }
 0x179   :  { %v945_v6 = vadd.f32 %v944_v8, %v943_v36  ;;  %v878_v8 = vmul.f32 %v814_v59, %v814_v59  ;;  %v954_v47 = vsel %vm3921_vm1, %v877_v5, 0.0  ;;  %v819_v59 = vsub.f32 %v2155_v12, %v2402_v48 }
 0x17b   :  { %v947_v56 = vadd.f32 %v946_v22, %v945_v6  ;;  %v879_v22 = vmul.f32 %v815_v57, %v815_v57  ;;  %v956_v46 = vsel %vm3921_vm1, %v878_v8, 0.0  ;;  %v820_v57 = vsub.f32 %v2167_v27, %v2402_v48 }
 0x17d   :  { %v949_v17 = vadd.f32 %v948_v33, %v947_v56  ;;  %v880_v33 = vmul.f32 %v816_v52, %v816_v52  ;;  %v958_v62 = vsel %vm3921_vm1, %v879_v22, 0.0  ;;  %v821_v52 = vsub.f32 %v2162_v24, %v2402_v48 }
 0x17f   :  { %v951_v36 = vadd.f32 %v950_v37, %v949_v17  ;;  %v881_v37 = vmul.f32 %v817_v40, %v817_v40  ;;  %v960_v5 = vsel %vm3921_vm1, %v880_v33, 0.0  ;;  %v822_v40 = vsub.f32 %v2170_v30, %v2402_v48 }
 0x181   :  { %v953_v6 = vadd.f32 %v952_v15, %v951_v36  ;;  %v882_v15 = vmul.f32 %v818_v35, %v818_v35  ;;  %v962_v8 = vsel %vm3921_vm1, %v881_v37, 0.0  ;;  %v823_v35 = vsub.f32 %v2179_v45, %v2402_v48 }
 0x183   :  { %v955_v56 = vadd.f32 %v954_v47, %v953_v6  ;;  %v883_v47 = vmul.f32 %v819_v59, %v819_v59  ;;  %v964_v22 = vsel %vm3921_vm1, %v882_v15, 0.0  ;;  %v824_v59 = vsub.f32 %v2191_v3, %v2402_v48 }
 0x185   :  { %v957_v17 = vadd.f32 %v956_v46, %v955_v56  ;;  %v884_v46 = vmul.f32 %v820_v57, %v820_v57  ;;  %v966_v33 = vsel %vm3921_vm1, %v883_v47, 0.0  ;;  %v825_v57 = vsub.f32 %v2186_v63, %v2402_v48 }
 0x187   :  { %v959_v36 = vadd.f32 %v958_v62, %v957_v17  ;;  %v885_v62 = vmul.f32 %v821_v52, %v821_v52  ;;  %v968_v37 = vsel %vm3921_vm1, %v884_v46, 0.0  ;;  %v826_v52 = vsub.f32 %v2194_v9, %v2402_v48 }
 0x189   :  { %v961_v6 = vadd.f32 %v960_v5, %v959_v36  ;;  %v886_v5 = vmul.f32 %v822_v40, %v822_v40  ;;  %v970_v15 = vsel %vm3921_vm1, %v885_v62, 0.0  ;;  %v827_v40 = vsub.f32 %v2203_v21, %v2402_v48 }
 0x18b   :  { %v963_v56 = vadd.f32 %v962_v8, %v961_v6  ;;  %v887_v8 = vmul.f32 %v823_v35, %v823_v35  ;;  %v972_v47 = vsel %vm3921_vm1, %v886_v5, 0.0  ;;  %v828_v35 = vsub.f32 %v2213_v51, %v2402_v48 }
 0x18d   :  { %v965_v17 = vadd.f32 %v964_v22, %v963_v56  ;;  %v888_v22 = vmul.f32 %v824_v59, %v824_v59  ;;  %v974_v46 = vsel %vm3921_vm1, %v887_v8, 0.0  ;;  %v829_v59 = vsub.f32 %v2208_v43, %v2402_v48 }
 0x18f   :  { %v967_v36 = vadd.f32 %v966_v33, %v965_v17  ;;  %v889_v33 = vmul.f32 %v825_v57, %v825_v57  ;;  %v976_v62 = vsel %vm3921_vm1, %v888_v22, 0.0  ;;  %v830_v57 = vsub.f32 %v2216_v54, %v2402_v48 }
 0x191   :  { %v969_v6 = vadd.f32 %v968_v37, %v967_v36  ;;  %v890_v37 = vmul.f32 %v826_v52, %v826_v52  ;;  %v978_v5 = vsel %vm3921_vm1, %v889_v33, 0.0  ;;  %v831_v52 = vsub.f32 %v2226_v11, %v2402_v48 }
 0x193   :  { %v971_v56 = vadd.f32 %v970_v15, %v969_v6  ;;  %v891_v15 = vmul.f32 %v827_v40, %v827_v40  ;;  %v980_v8 = vsel %vm3921_vm1, %v890_v37, 0.0  ;;  %v832_v40 = vsub.f32 %v2232_v20, %v2402_v48 }
 0x195   :  { %v973_v17 = vadd.f32 %v972_v47, %v971_v56  ;;  %v892_v47 = vmul.f32 %v828_v35, %v828_v35  ;;  %v982_v22 = vsel %vm3921_vm1, %v891_v15, 0.0  ;;  %v833_v35 = vsub.f32 %v2236_v29, %v2402_v48 }
 0x197   :  { %v975_v36 = vadd.f32 %v974_v46, %v973_v17  ;;  %v893_v46 = vmul.f32 %v829_v59, %v829_v59  ;;  %v984_v33 = vsel %vm3921_vm1, %v892_v47, 0.0  ;;  %v834_v59 = vsub.f32 %v2242_v50, %v2402_v48 }
 0x199   :  { %v977_v6 = vadd.f32 %v976_v62, %v975_v36  ;;  %v894_v62 = vmul.f32 %v830_v57, %v830_v57  ;;  %v986_v37 = vsel %vm3921_vm1, %v893_v46, 0.0  ;;  %v835_v57 = vsub.f32 %v2250_v44, %v2402_v48 }
 0x19b   :  { %v979_v56 = vadd.f32 %v978_v5, %v977_v6  ;;  %v895_v5 = vmul.f32 %v831_v52, %v831_v52  ;;  %v988_v15 = vsel %vm3921_vm1, %v894_v62, 0.0  ;;  %v836_v52 = vsub.f32 %v2256_v55, %v2402_v48 }
 0x19c   :  { %v899_v50 = vmul.f32 %v835_v57, %v835_v57  ;;  %v840_v57 = vsub.f32 %v2280_v23, %v2402_v48 }
 0x19d   :  { %v981_v17 = vadd.f32 %v980_v8, %v979_v56  ;;  %v896_v8 = vmul.f32 %v832_v40, %v832_v40  ;;  %v990_v47 = vsel %vm3921_vm1, %v895_v5, 0.0 }
 0x19f   :  { %v983_v36 = vadd.f32 %v982_v22, %v981_v17  ;;  %v897_v22 = vmul.f32 %v833_v35, %v833_v35  ;;  %v992_v46 = vsel %vm3921_vm1, %v896_v8, 0.0  ;;  %v838_v35 = vsub.f32 %v2266_v13, %v2402_v48 }
 0x1a0   :  { %v998_v8 = vsel %vm3921_vm1, %v899_v50, 0.0 }
 0x1a1   :  { %v985_v6 = vadd.f32 %v984_v33, %v983_v36  ;;  %v898_v33 = vmul.f32 %v834_v59, %v834_v59  ;;  %v994_v62 = vsel %vm3921_vm1, %v897_v22, 0.0 }
 0x1a3   :  { %v987_v56 = vadd.f32 %v986_v37, %v985_v6  ;;  %v3974_v37 = vld [vmem:[#allocation7_spill] sm:$0xff]  ;;  %v996_v5 = vsel %vm3921_vm1, %v898_v33, 0.0 }
 0x1a4   :  { %v837_v40 = vsub.f32 %v3974_v37, %v2402_v48 }
 0x1a5   :  { %v989_v17 = vadd.f32 %v988_v15, %v987_v56  ;;  %v900_v15 = vmul.f32 %v836_v52, %v836_v52 }
 0x1a6   :  { %v901_v55 = vmul.f32 %v837_v40, %v837_v40  ;;  %v842_v40 = vsub.f32 %v2290_v58, %v2402_v48 }
 0x1a7   :  { %v991_v36 = vadd.f32 %v990_v47, %v989_v17  ;;  %v3975_v47 = vld [vmem:[#allocation9_spill] sm:$0xff]  ;;  %v1000_v22 = vsel %vm3921_vm1, %v900_v15, 0.0 }
 0x1a8   :  { %v839_v59 = vsub.f32 %v3975_v47, %v2402_v48  ;;  %v1002_v33 = vsel %vm3921_vm1, %v901_v55, 0.0 }
 0x1a9   :  { %v993_v6 = vadd.f32 %v992_v46, %v991_v36  ;;  %v902_v46 = vmul.f32 %v838_v35, %v838_v35 }
 0x1aa   :  { %v903_v13 = vmul.f32 %v839_v59, %v839_v59 }
 0x1ab   :  { %v995_v56 = vadd.f32 %v994_v62, %v993_v6  ;;  %v3976_v62 = vld [vmem:[#allocation11_spill] sm:$0xff]  ;;  %v1004_v50 = vsel %vm3921_vm1, %v902_v46, 0.0 }
 0x1ac   :  { %v841_v52 = vsub.f32 %v3976_v62, %v2402_v48  ;;  %v1006_v15 = vsel %vm3921_vm1, %v903_v13, 0.0  ;;  %v906_v62 = vmul.f32 %v842_v40, %v842_v40 }
 0x1ad   :  { %v997_v17 = vadd.f32 %v996_v5, %v995_v56  ;;  %v904_v5 = vmul.f32 %v840_v57, %v840_v57  ;;  %v845_v57 = vsub.f32 %v2307_v26, %v2402_v48 }
 0x1ae   :  { %v905_v23 = vmul.f32 %v841_v52, %v841_v52  ;;  %v1012_v13 = vsel %vm3921_vm1, %v906_v62, 0.0 }
 0x1af   :  { %v999_v36 = vadd.f32 %v998_v8, %v997_v17  ;;  %v3977_v8 = vld [vmem:[#allocation12_spill] sm:$0xff]  ;;  %v1008_v55 = vsel %vm3921_vm1, %v904_v5, 0.0 }
 0x1b0   :  { %v843_v35 = vsub.f32 %v3977_v8, %v2402_v48  ;;  %v1010_v46 = vsel %vm3921_vm1, %v905_v23, 0.0 }
 0x1b1   :  { %v1001_v6 = vadd.f32 %v1000_v22, %v999_v36  ;;  %v3978_v22 = vld [vmem:[#allocation13_spill] sm:$0xff] }
 0x1b2   :  { %v844_v59 = vsub.f32 %v3978_v22, %v2402_v48  ;;  %v909_v22 = vmul.f32 %v845_v57, %v845_v57  ;;  %v850_v57 = vsub.f32 %v2334_v28, %v2402_v48 }
 0x1b3   :  { %v1003_v56 = vadd.f32 %v1002_v33, %v1001_v6  ;;  %v907_v33 = vmul.f32 %v843_v35, %v843_v35  ;;  %v848_v35 = vsub.f32 %v2325_v10, %v2402_v48 }
 0x1b4   :  { %v908_v8 = vmul.f32 %v844_v59, %v844_v59  ;;  %v1018_v62 = vsel %vm3921_vm1, %v909_v22, 0.0 }
 0x1b5   :  { %v1005_v17 = vadd.f32 %v1004_v50, %v1003_v56  ;;  %v3979_v50 = vld [vmem:[#allocation14_spill] sm:$0xff]  ;;  %v1014_v5 = vsel %vm3921_vm1, %v907_v33, 0.0 }
 0x1b6   :  { %v846_v52 = vsub.f32 %v3979_v50, %v2402_v48  ;;  %v1016_v23 = vsel %vm3921_vm1, %v908_v8, 0.0 }
 0x1b7   :  { %v1007_v36 = vadd.f32 %v1006_v15, %v1005_v17  ;;  %v3980_v15 = vld [vmem:[#allocation15_spill] sm:$0xff] }
 0x1b8   :  { %v847_v40 = vsub.f32 %v3980_v15, %v2402_v48 }
 0x1b9   :  { %v1009_v6 = vadd.f32 %v1008_v55, %v1007_v36  ;;  %v910_v55 = vmul.f32 %v846_v52, %v846_v52 }
 0x1ba   :  { %v911_v50 = vmul.f32 %v847_v40, %v847_v40  ;;  %v852_v40 = vsub.f32 %v2346_v18, %v2402_v48 }
 0x1bb   :  { %v1011_v56 = vadd.f32 %v1010_v46, %v1009_v6  ;;  %v3981_v46 = vld [vmem:[#allocation17_spill] sm:$0xff]  ;;  %v1020_v33 = vsel %vm3921_vm1, %v910_v55, 0.0 }
 0x1bc   :  { %v849_v59 = vsub.f32 %v3981_v46, %v2402_v48  ;;  %v1022_v8 = vsel %vm3921_vm1, %v911_v50, 0.0 }
 0x1bd   :  { %v1013_v17 = vadd.f32 %v1012_v13, %v1011_v56  ;;  %v912_v13 = vmul.f32 %v848_v35, %v848_v35 }
 0x1be   :  { %v913_v10 = vmul.f32 %v849_v59, %v849_v59 }
 0x1bf   :  { %v1015_v36 = vadd.f32 %v1014_v5, %v1013_v17  ;;  %v3982_v5 = vld [vmem:[#allocation19_spill] sm:$0xff]  ;;  %v1024_v22 = vsel %vm3921_vm1, %v912_v13, 0.0 }
 0x1c0   :  { %v851_v52 = vsub.f32 %v3982_v5, %v2402_v48  ;;  %v1026_v55 = vsel %vm3921_vm1, %v913_v10, 0.0  ;;  %v916_v5 = vmul.f32 %v852_v40, %v852_v40 }
 0x1c1   :  { %v1017_v6 = vadd.f32 %v1016_v23, %v1015_v36  ;;  %v914_v23 = vmul.f32 %v850_v57, %v850_v57 }
 0x1c2   :  { %v915_v28 = vmul.f32 %v851_v52, %v851_v52  ;;  %v1032_v10 = vsel %vm3921_vm1, %v916_v5, 0.0 }
 0x1c3   :  { %v1019_v56 = vadd.f32 %v1018_v62, %v1017_v6  ;;  %v3983_v62 = vld [vmem:[#allocation21_spill] sm:$0xff]  ;;  %v1028_v50 = vsel %vm3921_vm1, %v914_v23, 0.0 }
 0x1c4   :  { %v853_v35 = vsub.f32 %v3983_v62, %v2402_v48  ;;  %v1030_v13 = vsel %vm3921_vm1, %v915_v28, 0.0 }
 0x1c5   :  { %v1021_v17 = vadd.f32 %v1020_v33, %v1019_v56  ;;  %v3984_v33 = vld [vmem:[#allocation22_spill] sm:$0xff] }
 0x1c6   :  { %v854_v59 = vsub.f32 %v3984_v33, %v2402_v48  ;;  %v917_v18 = vmul.f32 %v853_v35, %v853_v35 }
 0x1c7   :  { %v1023_v36 = vadd.f32 %v1022_v8, %v1021_v17  ;;  %v3985_v8 = vld [vmem:[#allocation23_spill] sm:$0xff] }
 0x1c8   :  { %v855_v57 = vsub.f32 %v3985_v8, %v2402_v48  ;;  %v918_v62 = vmul.f32 %v854_v59, %v854_v59  ;;  %v1034_v23 = vsel %vm3921_vm1, %v917_v18, 0.0 }
 0x1c9   :  { %v1025_v6 = vadd.f32 %v1024_v22, %v1023_v36  ;;  %v3986_v22 = vld [vmem:[#allocation24_spill] sm:$0xff] }
 0x1ca   :  { %v856_v52 = vsub.f32 %v3986_v22, %v2402_v48  ;;  %v919_v33 = vmul.f32 %v855_v57, %v855_v57  ;;  %v1036_v28 = vsel %vm3921_vm1, %v918_v62, 0.0  ;;  %v860_v57 = vsub.f32 %v2388_v2, %v2402_v48 }
 0x1cb   :  { %v1027_v56 = vadd.f32 %v1026_v55, %v1025_v6  ;;  %v3987_v55 = vld [vmem:[#allocation25_spill] sm:$0xff] }
 0x1cc   :  { %v857_v40 = vsub.f32 %v3987_v55, %v2402_v48  ;;  %v920_v8 = vmul.f32 %v856_v52, %v856_v52  ;;  %v1038_v5 = vsel %vm3921_vm1, %v919_v33, 0.0  ;;  %v861_v52 = vsub.f32 %v2391_v53, %v2402_v48 }
 0x1cd   :  { %v1029_v17 = vadd.f32 %v1028_v50, %v1027_v56  ;;  %v3988_v50 = vld [vmem:[#allocation26_spill] sm:$0xff] }
 0x1ce   :  { %v858_v35 = vsub.f32 %v3988_v50, %v2402_v48  ;;  %v921_v22 = vmul.f32 %v857_v40, %v857_v40  ;;  %v1040_v18 = vsel %vm3921_vm1, %v920_v8, 0.0  ;;  %v862_v40 = vsub.f32 %v2398_v31, %v2402_v48 }
 0x1cf   :  { %v1031_v36 = vadd.f32 %v1030_v13, %v1029_v17  ;;  %v3989_v13 = vld [vmem:[#allocation27_spill] sm:$0xff] }
 0x1d0   :  { %v859_v59 = vsub.f32 %v3989_v13, %v2402_v48  ;;  %v1042_v62 = vsel %vm3921_vm1, %v921_v22, 0.0  ;;  %v926_v8 = vmul.f32 %v862_v40, %v862_v40 }
 0x1d1   :  { %v1033_v6 = vadd.f32 %v1032_v10, %v1031_v36  ;;  %v922_v10 = vmul.f32 %v858_v35, %v858_v35 }
 0x1d2   :  { %v1052_v22 = vsel %vm3921_vm1, %v926_v8, 0.0 }
 0x1d3   :  { %v1035_v56 = vadd.f32 %v1034_v23, %v1033_v6  ;;  %v923_v23 = vmul.f32 %v859_v59, %v859_v59  ;;  %v1044_v33 = vsel %vm3921_vm1, %v922_v10, 0.0 }
 0x1d5   :  { %v1037_v17 = vadd.f32 %v1036_v28, %v1035_v56  ;;  %v924_v28 = vmul.f32 %v860_v57, %v860_v57  ;;  %v1046_v35 = vsel %vm3921_vm1, %v923_v23, 0.0  ;;  %v1069_v23 = vlaneseq }
 0x1d7   :  { %v1039_v36 = vadd.f32 %v1038_v5, %v1037_v17  ;;  %v925_v5 = vmul.f32 %v861_v52, %v861_v52  ;;  %v1070_v40 = vshrl.u32 %v1069_v23, 7  ;;  %v3995_v23 = vld [vmem:[#allocation8_spill] sm:$0xff] }
 0x1d9   :  { %v1041_v6 = vadd.f32 %v1040_v18, %v1039_v36  ;;  %v1048_v36 = vsel %vm3921_vm1, %v924_v28, 0.0  ;;  %v1050_v59 = vsel %vm3921_vm1, %v925_v5, 0.0  ;;  %v1071_v5 = vsub.s32 0, %v1070_v40 }
 0x1db   :  { %v1043_v56 = vadd.f32 %v1042_v62, %v1041_v6 }
 0x1dd   :  { %v1045_v17 = vadd.f32 %v1044_v33, %v1043_v56 }
 0x1df   :  { %v1047_v2 = vadd.f32 %v1046_v35, %v1045_v17 }
 0x1e1   :  { %v1049_v18 = vadd.f32 %v1048_v36, %v1047_v2  ;;  %v1061_v2 = vld [vmem:[%s3856_s3] sm:$0x1] }
 0x1e3   :  { %v1051_v53 = vadd.f32 %v1050_v59, %v1049_v18 }
 0x1e5   :  { %v1053_v6 = vadd.f32 %v1052_v22, %v1051_v53  ;;  %v3991_v22 = vld [vmem:[#allocation3_spill] sm:$0xff] }
 0x1e7   :  { %v1054_v62 = vrot.slane %v1053_v6, 4 }
 0x1e9   :  { %v1055_v31 = vadd.f32 %v1054_v62, %v1053_v6  ;;  %v3992_v62 = vld [vmem:[#allocation4_spill] sm:$0xff] }
 0x1eb   :  { %v1056_v57 = vrot.slane %v1055_v31, 2 }
 0x1ed   :  { %v1057_v13 = vadd.f32 %v1056_v57, %v1055_v31  ;;  %v1065_v31 = vld [vmem:[%s3857_s4] sm:$0x1] }
 0x1ef   :  { %v1058_v10 = vrot.slane %v1057_v13, 1 }
 0x1f1   :  { %v1059_v56 = vadd.f32 %v1058_v10, %v1057_v13 }
 0x1f3   :  { %v1060_v52 = vmul.f32 0.001953125, %v1059_v56 }
 0x1f5   :  { %v1062_v33 = vadd.f32 1e-05, %v1060_v52  ;;  %v3993_v52 = vld [vmem:[#allocation5_spill] sm:$0xff] }
 0x1f7   :  { %1860 = vrsqrt.f32 %v1062_v33  ;;  %v3994_v33 = vld [vmem:[#allocation6_spill] sm:$0xff] }
 0x204   :  { %v1861_v17 = vpop.eup %1860 }
 0x205   :  { %v1064_v28 = vmul.f32 %v1861_v17, %v1061_v2  ;;  %v3996_v17 = vld [vmem:[#allocation10_spill] sm:$0xff]  ;;  %v3997_v2 = vld [vmem:[#allocation11_spill] sm:$0xff] }
 0x207   :  { %v1066_v53 = vmul.f32 %v1064_v28, %v2402_v48  ;;  %v2600_v35 = vrot.slane %v1064_v28, %v1071_v5  ;;  %v3990_v48 = vld [vmem:[#allocation2_spill] sm:$0xff] }
 0x209   :  { %v1067_v13 = vsub.f32 %v1065_v31, %v1066_v53  ;;  %v2607_v8 = vmul.f32 %v2600_v35, %v2035_v39  ;;  %v2611_v36 = vmul.f32 %v2600_v35, %v2041_v42  ;;  %v2615_v18 = vmul.f32 %v2600_v35, %v2038_v41  ;;  %v3998_v53 = vld [vmem:[#allocation12_spill] sm:$0xff] }
 0x20a   :  { %v2619_v59 = vmul.f32 %v2600_v35, %v3990_v48  ;;  %v2623_v6 = vmul.f32 %v2600_v35, %v3991_v22  ;;  %v2627_v39 = vmul.f32 %v2600_v35, %v3992_v62  ;;  %v2631_v42 = vmul.f32 %v2600_v35, %v2066_v60  ;;  %v3999_v48 = vld [vmem:[#allocation13_spill] sm:$0xff]  ;;  %v4000_v62 = vld [vmem:[#allocation14_spill] sm:$0xff] }
 0x20b   :  { %v2635_v41 = vmul.f32 %v2600_v35, %v2074_v1  ;;  %v2639_v57 = vmul.f32 %v2600_v35, %v2083_v7  ;;  %v2643_v10 = vmul.f32 %v2600_v35, %v2095_v16  ;;  %v2647_v56 = vmul.f32 %v2600_v35, %v2090_v14 }
 0x20c   :  { %v2651_v60 = vmul.f32 %v2600_v35, %v2098_v19  ;;  %v2655_v1 = vmul.f32 %v2600_v35, %v2107_v25  ;;  %v2659_v7 = vmul.f32 %v2600_v35, %v2119_v34  ;;  %v2663_v16 = vmul.f32 %v2600_v35, %v2114_v32 }
 0x20d   :  { %v2667_v14 = vmul.f32 %v2600_v35, %v2122_v38  ;;  %v2671_v19 = vmul.f32 %v2600_v35, %v2131_v49  ;;  %v2675_v25 = vmul.f32 %v2600_v35, %v2143_v0  ;;  %v2679_v34 = vmul.f32 %v2600_v35, %v2138_v61 }
 0x20e   :  { %v2683_v32 = vmul.f32 %v2600_v35, %v2146_v4  ;;  %v2687_v38 = vmul.f32 %v2600_v35, %v2155_v12  ;;  %v2691_v49 = vmul.f32 %v2600_v35, %v2167_v27  ;;  %v2695_v0 = vmul.f32 %v2600_v35, %v2162_v24 }
 0x20f   :  { %v2699_v61 = vmul.f32 %v2600_v35, %v2170_v30  ;;  %v2703_v4 = vmul.f32 %v2600_v35, %v2179_v45  ;;  %v2707_v12 = vmul.f32 %v2600_v35, %v2191_v3  ;;  %v2711_v27 = vmul.f32 %v2600_v35, %v2186_v63 }
 0x210   :  { %v2715_v24 = vmul.f32 %v2600_v35, %v2194_v9  ;;  %v2719_v30 = vmul.f32 %v2600_v35, %v2203_v21  ;;  %v2723_v45 = vmul.f32 %v2600_v35, %v2213_v51  ;;  %v2727_v3 = vmul.f32 %v2600_v35, %v2208_v43 }
 0x211   :  { %v2731_v63 = vmul.f32 %v2600_v35, %v2216_v54  ;;  %v2735_v9 = vmul.f32 %v2600_v35, %v2226_v11  ;;  %v2739_v21 = vmul.f32 %v2600_v35, %v2232_v20  ;;  %v2743_v51 = vmul.f32 %v2600_v35, %v2236_v29 }
 0x212   :  { %v2747_v43 = vmul.f32 %v2600_v35, %v3993_v52  ;;  %v2751_v54 = vmul.f32 %v2600_v35, %v2250_v44  ;;  %v2755_v11 = vmul.f32 %v2600_v35, %v3994_v33  ;;  %v2759_v20 = vmul.f32 %v2600_v35, %v3974_v37 }
 0x213   :  { %v2763_v29 = vmul.f32 %v2600_v35, %v3995_v23  ;;  %v2767_v40 = vmul.f32 %v2600_v35, %v3975_v47  ;;  %v2771_v44 = vmul.f32 %v2600_v35, %v3996_v17  ;;  %v2775_v28 = vmul.f32 %v2600_v35, %v3997_v2  ;;  %v4001_v23 = vld [vmem:[#allocation16_spill] sm:$0xff] }
 0x214   :  { %v2779_v37 = vmul.f32 %v2600_v35, %v2290_v58  ;;  %v2783_v31 = vmul.f32 %v2600_v35, %v3998_v53  ;;  %v2787_v47 = vmul.f32 %v2600_v35, %v3999_v48  ;;  %v2791_v22 = vmul.f32 %v2600_v35, %v2307_v26  ;;  %v4004_v26 = vld [vmem:[#allocation18_spill] sm:$0xff]  ;;  %v4006_v48 = vld [vmem:[#allocation19_spill] sm:$0xff] }
 0x215   :  { %v2795_v52 = vmul.f32 %v2600_v35, %v4000_v62  ;;  %v2799_v58 = vmul.f32 %v2600_v35, %v3980_v15  ;;  %v2801_v33 = vrot.slane %v1067_v13, %v1071_v5  ;;  %v2805_v17 = vmul.f32 %v2600_v35, %v4001_v23  ;;  %v4007_v15 = vld [vmem:[#allocation20_spill] sm:$0xff]  ;;  %v4008_v13 = vld [vmem:[#allocation21_spill] sm:$0xff] }
 0x216   :  { %v2809_v2 = vmul.f32 %v2600_v35, %v3981_v46  ;;  %v2813_v53 = vmul.f32 %v2600_v35, %v4004_v26  ;;  %v2817_v62 = vmul.f32 %v2600_v35, %v4006_v48  ;;  %v2821_v5 = vmul.f32 %v2600_v35, %v4007_v15 }
 0x217   :  { %4002 = vst [vmem:[#allocation7_spill] sm:$0xff] %v2805_v17  ;;  %v2825_v23 = vmul.f32 %v2600_v35, %v4008_v13  ;;  %v4010_v17 = vld [vmem:[#allocation22_spill] sm:$0xff]  ;;  %v2841_v15 = vmul.f32 %v2600_v35, %v3987_v55  ;;  %v2845_v13 = vmul.f32 %v2600_v35, %v3988_v50  ;;  %v2865_v50 = vadd.f32 %v2801_v33, %v2607_v8 }
 0x218   :  { %4003 = vst [vmem:[#allocation9_spill] sm:$0xff] %v2809_v2  ;;  %4005 = vst [vmem:[#allocation15_spill] sm:$0xff] %v2813_v53  ;;  %v2829_v46 = vmul.f32 %v2600_v35, %v4010_v17  ;;  %v4012_v2 = vld [vmem:[#allocation23_spill] sm:$0xff]  ;;  %v4014_v53 = vld [vmem:[#allocation24_spill] sm:$0xff]  ;;  %v2885_v8 = vadd.f32 %v2801_v33, %v2627_v39  ;;  %v2905_v39 = vadd.f32 %v2801_v33, %v2647_v56 }
 0x219   :  { %4009 = vst [vmem:[#allocation17_spill] sm:$0xff] %v2825_v23  ;;  %v2833_v26 = vmul.f32 %v2600_v35, %v4012_v2  ;;  %v2837_v48 = vmul.f32 %v2600_v35, %v4014_v53  ;;  %v4016_v23 = vld [vmem:[#allocation27_spill] sm:$0xff]  ;;  %v2925_v56 = vadd.f32 %v2801_v33, %v2667_v14  ;;  %v2945_v14 = vadd.f32 %v2801_v33, %v2687_v38 }
 0x21a   :  { %4011 = vst [vmem:[#allocation25_spill] sm:$0xff] %v2829_v46  ;;  %v2849_v17 = vmul.f32 %v2600_v35, %v4016_v23  ;;  %v4017_v46 = vld [vmem:[#allocation28_spill] sm:$0xff]  ;;  %v2869_v23 = vadd.f32 %v2801_v33, %v2611_v36  ;;  %v2889_v36 = vadd.f32 %v2801_v33, %v2631_v42  ;;  %v2909_v42 = vadd.f32 %v2801_v33, %v2651_v60 }
 0x21b   :  { %4013 = vst [vmem:[#allocation26_spill] sm:$0xff] %v2833_v26  ;;  %4015 = vst [vmem:[#allocation2_spill] sm:$0xff] %v2837_v48  ;;  %v2853_v2 = vmul.f32 %v2600_v35, %v4017_v46  ;;  %v4018_v26 = vld [vmem:[#allocation29_spill] sm:$0xff]  ;;  %v4019_v48 = vld [vmem:[#allocation30_spill] sm:$0xff]  ;;  %v2873_v46 = vadd.f32 %v2801_v33, %v2615_v18  ;;  %v2893_v18 = vadd.f32 %v2801_v33, %v2635_v41  ;;  %vm1208_vm2 = vcmp.ge.f32.partialorder %v2865_v50, 0.0 }
 0x21c   :  { %v2857_v53 = vmul.f32 %v2600_v35, %v4018_v26  ;;  %v2861_v55 = vmul.f32 %v2600_v35, %v4019_v48  ;;  %v2877_v26 = vadd.f32 %v2801_v33, %v2619_v59  ;;  %v2881_v35 = vadd.f32 %v2801_v33, %v2623_v6 }
 0x21d   :  { %v2897_v59 = vadd.f32 %v2801_v33, %v2639_v57  ;;  %v2901_v6 = vadd.f32 %v2801_v33, %v2643_v10  ;;  %v2913_v41 = vadd.f32 %v2801_v33, %v2655_v1  ;;  %v2917_v57 = vadd.f32 %v2801_v33, %v2659_v7 }
 0x21e   :  { %v2921_v10 = vadd.f32 %v2801_v33, %v2663_v16  ;;  %v2929_v60 = vadd.f32 %v2801_v33, %v2671_v19  ;;  %v2933_v1 = vadd.f32 %v2801_v33, %v2675_v25  ;;  %v2937_v7 = vadd.f32 %v2801_v33, %v2679_v34  ;;  %v4025_v48 = vld [vmem:[#allocation7_spill] sm:$0xff] }
 0x21f   :  { %v2941_v16 = vadd.f32 %v2801_v33, %v2683_v32  ;;  %v2949_v19 = vadd.f32 %v2801_v33, %v2691_v49  ;;  %v2953_v25 = vadd.f32 %v2801_v33, %v2695_v0  ;;  %v2957_v34 = vadd.f32 %v2801_v33, %v2699_v61 }
 0x220   :  { %v2961_v32 = vadd.f32 %v2801_v33, %v2703_v4  ;;  %v2965_v38 = vadd.f32 %v2801_v33, %v2707_v12  ;;  %v2969_v49 = vadd.f32 %v2801_v33, %v2711_v27  ;;  %v2973_v0 = vadd.f32 %v2801_v33, %v2715_v24 }
 0x221   :  { %v2977_v61 = vadd.f32 %v2801_v33, %v2719_v30  ;;  %v2981_v4 = vadd.f32 %v2801_v33, %v2723_v45  ;;  %v2985_v12 = vadd.f32 %v2801_v33, %v2727_v3  ;;  %v2989_v27 = vadd.f32 %v2801_v33, %v2731_v63 }
 0x222   :  { %v2993_v24 = vadd.f32 %v2801_v33, %v2735_v9  ;;  %v2997_v30 = vadd.f32 %v2801_v33, %v2739_v21  ;;  %v3001_v45 = vadd.f32 %v2801_v33, %v2743_v51  ;;  %v3005_v3 = vadd.f32 %v2801_v33, %v2747_v43 }
 0x223   :  { %v3009_v63 = vadd.f32 %v2801_v33, %v2751_v54  ;;  %v3013_v9 = vadd.f32 %v2801_v33, %v2755_v11  ;;  %v3017_v21 = vadd.f32 %v2801_v33, %v2759_v20  ;;  %v3021_v51 = vadd.f32 %v2801_v33, %v2763_v29 }
 0x224   :  { %v3025_v43 = vadd.f32 %v2801_v33, %v2767_v40  ;;  %v3029_v54 = vadd.f32 %v2801_v33, %v2771_v44  ;;  %v3033_v11 = vadd.f32 %v2801_v33, %v2775_v28  ;;  %v3037_v20 = vadd.f32 %v2801_v33, %v2779_v37 }
 0x225   :  { %v3041_v29 = vadd.f32 %v2801_v33, %v2783_v31  ;;  %v3045_v40 = vadd.f32 %v2801_v33, %v2787_v47  ;;  %v3049_v44 = vadd.f32 %v2801_v33, %v2791_v22  ;;  %v3053_v28 = vadd.f32 %v2801_v33, %v2795_v52 }
 0x226   :  { %v3057_v37 = vadd.f32 %v2801_v33, %v2799_v58  ;;  %v3061_v31 = vadd.f32 %v2801_v33, %v4025_v48  ;;  %v3073_v52 = vadd.f32 %v2801_v33, %v2817_v62  ;;  %v3077_v58 = vadd.f32 %v2801_v33, %v2821_v5 }
 0x227   :  { %4020 = vst [vmem:[#allocation3_spill] sm:$0xff] %v3041_v29  ;;  %4021 = vst [vmem:[#allocation4_spill] sm:$0xff] %v3045_v40  ;;  %v4027_v29 = vld [vmem:[#allocation9_spill] sm:$0xff]  ;;  %v4029_v40 = vld [vmem:[#allocation15_spill] sm:$0xff]  ;;  %v3097_v5 = vadd.f32 %v2801_v33, %v2841_v15  ;;  %vm1209_vm3 = vcmp.ge.f32.partialorder %v2869_v23, 0.0  ;;  %vm1210_vm4 = vcmp.ge.f32.partialorder %v2873_v46, 0.0 }
 0x228   :  { %4022 = vst [vmem:[#allocation5_spill] sm:$0xff] %v3049_v44  ;;  %4023 = vst [vmem:[#allocation6_spill] sm:$0xff] %v3053_v28  ;;  %v3065_v47 = vadd.f32 %v2801_v33, %v4027_v29  ;;  %v3069_v22 = vadd.f32 %v2801_v33, %v4029_v40  ;;  %vm1211_vm5 = vcmp.ge.f32.partialorder %v2877_v26, 0.0  ;;  %vm1212_vm6 = vcmp.ge.f32.partialorder %v2881_v35, 0.0 }
 0x229   :  { %4024 = vst [vmem:[#allocation8_spill] sm:$0xff] %v3057_v37  ;;  %4026 = vst [vmem:[#allocation10_spill] sm:$0xff] %v3061_v31  ;;  %v4033_v37 = vld [vmem:[#allocation17_spill] sm:$0xff]  ;;  %vm1213_vm7 = vcmp.ge.f32.partialorder %v2885_v8, 0.0  ;;  %vm1214_vm8 = vcmp.ge.f32.partialorder %v2889_v36, 0.0  ;;  %vm1215_vm9 = vcmp.ge.f32.partialorder %v2893_v18, 0.0 }
 0x22a   :  { %4028 = vst [vmem:[#allocation11_spill] sm:$0xff] %v3065_v47  ;;  %4030 = vst [vmem:[#allocation12_spill] sm:$0xff] %v3069_v22  ;;  %v3081_v48 = vadd.f32 %v2801_v33, %v4033_v37  ;;  %v4035_v31 = vld [vmem:[#allocation25_spill] sm:$0xff]  ;;  %v4037_v47 = vld [vmem:[#allocation26_spill] sm:$0xff]  ;;  %v3101_v37 = vadd.f32 %v2801_v33, %v2845_v13  ;;  %vm1216_vm10 = vcmp.ge.f32.partialorder %v2897_v59, 0.0  ;;  %vm1217_vm11 = vcmp.ge.f32.partialorder %v2901_v6, 0.0 }
 0x22b   :  { %4031 = vst [vmem:[#allocation13_spill] sm:$0xff] %v3073_v52  ;;  %4032 = vst [vmem:[#allocation14_spill] sm:$0xff] %v3077_v58  ;;  %v3085_v29 = vadd.f32 %v2801_v33, %v4035_v31  ;;  %v3089_v40 = vadd.f32 %v2801_v33, %v4037_v47  ;;  %v4039_v22 = vld [vmem:[#allocation2_spill] sm:$0xff]  ;;  %v3105_v31 = vadd.f32 %v2801_v33, %v2849_v17  ;;  %v1272_v15 = vmul.f32 0.2, %v2865_v50 }
 0x22c   :  { %4034 = vst [vmem:[#allocation16_spill] sm:$0xff] %v3081_v48  ;;  %v3093_v62 = vadd.f32 %v2801_v33, %v4039_v22  ;;  %4041 = vst [vmem:[#allocation21_spill] sm:$0xff] %v3097_v5  ;;  %v3109_v47 = vadd.f32 %v2801_v33, %v2853_v2  ;;  %v1273_v13 = vmul.f32 0.2, %v2869_v23  ;;  %v3124_v17 = vadd.f32 %v2801_v33, %v2857_v53 }
 0x22d   :  { %4036 = vst [vmem:[#allocation18_spill] sm:$0xff] %v3085_v29  ;;  %4038 = vst [vmem:[#allocation19_spill] sm:$0xff] %v3089_v40  ;;  %v1274_v2 = vmul.f32 0.2, %v2873_v46  ;;  %v1275_v22 = vmul.f32 0.2, %v2877_v26 }
 0x22e   :  { %4040 = vst [vmem:[#allocation20_spill] sm:$0xff] %v3093_v62  ;;  %4042 = vst [vmem:[#allocation22_spill] sm:$0xff] %v3101_v37  ;;  %vm1218_vm12 = vcmp.ge.f32.partialorder %v2905_v39, 0.0  ;;  %v1277_v37 = vmul.f32 0.2, %v2885_v8  ;;  %vm1219_vm13 = vcmp.ge.f32.partialorder %v2909_v42, 0.0  ;;  %v3160_v48 = vsel %vm1209_vm3, %v2869_v23, %v1273_v13 }
 0x22f   :  { %4043 = vst [vmem:[#allocation23_spill] sm:$0xff] %v3105_v31  ;;  %4044 = vst [vmem:[#allocation24_spill] sm:$0xff] %v3109_v47  ;;  %v1276_v47 = vmul.f32 0.2, %v2881_v35  ;;  %v3132_v31 = vadd.f32 %v2801_v33, %v2861_v55  ;;  %v1278_v5 = vmul.f32 0.2, %v2889_v36  ;;  %v3145_v33 = vsel %vm1208_vm2, %v2865_v50, %v1272_v15 }
 0x230   :  { %4045 = vst [vmem:[#allocation27_spill] sm:$0xff] %v3124_v17  ;;  %v1279_v53 = vmul.f32 0.2, %v2893_v18  ;;  %v1280_v17 = vmul.f32 0.2, %v2897_v59  ;;  %4047 = vst [vmem:[#allocation29_spill] sm:$0xff] %v3145_v33  ;;  %v3175_v58 = vsel %vm1210_vm4, %v2873_v46, %v1274_v2 }
 0x231   :  { %4046 = vst [vmem:[#allocation28_spill] sm:$0xff] %v3132_v31  ;;  %v1281_v62 = vmul.f32 0.2, %v2901_v6  ;;  %v1282_v40 = vmul.f32 0.2, %v2905_v39  ;;  %vm1220_vm14 = vcmp.ge.f32.partialorder %v2913_v41, 0.0 }
 0x232   :  { %v3149_v55 = vmul.f32 0.2, %v2909_v42  ;;  %v3152_v31 = vmul.f32 0.2, %v2913_v41  ;;  %v3155_v29 = vmul.f32 0.2, %v2917_v57 }
 0x233   :  { %4048 = vst [vmem:[#allocation30_spill] sm:$0xff] %v3160_v48  ;;  %vm1221_vm15 = vcmp.ge.f32.partialorder %v2917_v57, 0.0  ;;  %v3164_v50 = vmul.f32 0.2, %v2921_v10  ;;  %v3167_v15 = vmul.f32 0.2, %v2925_v56 }
 0x234   :  { %v3170_v33 = vmul.f32 0.2, %v2929_v60  ;;  %4050 = vst [vmem:[#allocation9_spill] sm:$0xff] %v3175_v58  ;;  %vm1222_vm0 = vcmp.ge.f32.partialorder %v2921_v10, 0.0  ;;  %v3179_v23 = vmul.f32 0.2, %v2933_v1 }
 0x235   :  { %v3182_v13 = vmul.f32 0.2, %v2937_v7  ;;  %v3185_v48 = vmul.f32 0.2, %v2941_v16  ;;  %vm1223_vm2 = vcmp.ge.f32.partialorder %v2925_v56, 0.0  ;;  %vm1224_vm3 = vcmp.ge.f32.partialorder %v2929_v60, 0.0 }
 0x236   :  { %4049 = vst [vmem:[#allocation7_spill] sm:$0xff] %v3170_v33  ;;  %v3190_v33 = vsel %vm1211_vm5, %v2877_v26, %v1275_v22  ;;  %v3194_v46 = vmul.f32 0.2, %v2945_v14  ;;  %v3197_v2 = vmul.f32 0.2, %v2949_v19  ;;  %vm1225_vm4 = vcmp.ge.f32.partialorder %v2933_v1, 0.0 }
 0x237   :  { %4051 = vst [vmem:[#allocation15_spill] sm:$0xff] %v3185_v48  ;;  %4052 = vst [vmem:[#allocation17_spill] sm:$0xff] %v3190_v33  ;;  %v3200_v58 = vmul.f32 0.2, %v2953_v25  ;;  %v3205_v48 = vsel %vm1212_vm6, %v2881_v35, %v1276_v47  ;;  %v3209_v26 = vmul.f32 0.2, %v2957_v34 }
 0x238   :  { %4054 = vst [vmem:[#allocation26_spill] sm:$0xff] %v3205_v48  ;;  %v3212_v22 = vmul.f32 0.2, %v2961_v32  ;;  %v3215_v33 = vmul.f32 0.2, %v2965_v38  ;;  %vm1226_vm5 = vcmp.ge.f32.partialorder %v2937_v7, 0.0 }
 0x239   :  { %4053 = vst [vmem:[#allocation25_spill] sm:$0xff] %v3200_v58  ;;  %v3220_v58 = vsel %vm1213_vm7, %v2885_v8, %v1277_v37  ;;  %v3224_v35 = vmul.f32 0.2, %v2969_v49  ;;  %v3227_v47 = vmul.f32 0.2, %v2973_v0  ;;  %vm1228_vm7 = vcmp.ge.f32.partialorder %v2945_v14, 0.0 }
 0x23a   :  { %4055 = vst [vmem:[#allocation2_spill] sm:$0xff] %v3215_v33  ;;  %4056 = vst [vmem:[#allocation31_spill] sm:$0xff] %v3220_v58  ;;  %v3230_v48 = vmul.f32 0.2, %v2977_v61  ;;  %v3235_v33 = vsel %vm1214_vm8, %v2889_v36, %v1278_v5  ;;  %v3240_v8 = vmul.f32 0.2, %v2981_v4 }
 0x23b   :  { %4058 = vst [vmem:[#allocation33_spill] sm:$0xff] %v3235_v33  ;;  %v3243_v37 = vmul.f32 0.2, %v2985_v12  ;;  %v3246_v58 = vmul.f32 0.2, %v2989_v27  ;;  %vm4105_vm8 = vcmp.ge.f32.partialorder %v2949_v19, 0.0 }
 0x23c   :  { %4057 = vst [vmem:[#allocation32_spill] sm:$0xff] %v3230_v48  ;;  %v3251_v48 = vsel %vm1215_vm9, %v2893_v18, %v1279_v53  ;;  %v3258_v36 = vmul.f32 0.2, %v2993_v24  ;;  %v3261_v5 = vmul.f32 0.2, %v2997_v30  ;;  %v3269_v18 = vsel %vm1216_vm10, %v2897_v59, %v1280_v17 }
 0x23d   :  { %4059 = vst [vmem:[#allocation34_spill] sm:$0xff] %v3251_v48  ;;  %v3264_v33 = vmul.f32 0.2, %v3001_v45  ;;  %4061 = vst [vmem:[#allocation36_spill] sm:$0xff] %v3269_v18  ;;  %vm1232_vm9 = vcmp.ge.f32.partialorder %v2961_v32, 0.0  ;;  %v3287_v59 = vsel %vm1217_vm11, %v2901_v6, %v1281_v62  ;;  %vm1236_vm10 = vcmp.ge.f32.partialorder %v2977_v61, 0.0 }
 0x23e   :  { %v3276_v53 = vmul.f32 0.2, %v3005_v3  ;;  %v3279_v48 = vmul.f32 0.2, %v3009_v63  ;;  %4063 = vst [vmem:[#allocation38_spill] sm:$0xff] %v3287_v59  ;;  %v3305_v6 = vsel %vm1218_vm12, %v2905_v39, %v1282_v40  ;;  %vm1240_vm11 = vcmp.ge.f32.partialorder %v2993_v24, 0.0 }
 0x23f   :  { %4060 = vst [vmem:[#allocation35_spill] sm:$0xff] %v3264_v33  ;;  %v3282_v33 = vmul.f32 0.2, %v3013_v9  ;;  %v3294_v17 = vmul.f32 0.2, %v3017_v21  ;;  %4065 = vst [vmem:[#allocation40_spill] sm:$0xff] %v3305_v6  ;;  %v3324_v39 = vsel %vm1219_vm13, %v2909_v42, %v3149_v55  ;;  %v3343_v42 = vsel %vm1220_vm14, %v2913_v41, %v3152_v31 }
 0x240   :  { %v3297_v18 = vmul.f32 0.2, %v3021_v51  ;;  %v3312_v62 = vmul.f32 0.2, %v3029_v54  ;;  %v3315_v59 = vmul.f32 0.2, %v3033_v11  ;;  %v3362_v41 = vsel %vm1221_vm15, %v2917_v57, %v3155_v29 }
 0x241   :  { %4062 = vst [vmem:[#allocation37_spill] sm:$0xff] %v3282_v33  ;;  %v3300_v33 = vmul.f32 0.2, %v3025_v43  ;;  %4069 = vst [vmem:[#allocation44_spill] sm:$0xff] %v3324_v39  ;;  %vm1244_vm12 = vcmp.ge.f32.partialorder %v3009_v63, 0.0  ;;  %v4070_v40 = vld [vmem:[#allocation3_spill] sm:$0xff]  ;;  %v3381_v57 = vsel %vm1222_vm0, %v2921_v10, %v3164_v50  ;;  %v3394_v10 = vsel %vm1223_vm2, %v2925_v56, %v3167_v15 }
 0x242   :  { %4066 = vst [vmem:[#allocation41_spill] sm:$0xff] %v3312_v62  ;;  %4067 = vst [vmem:[#allocation42_spill] sm:$0xff] %v3315_v59  ;;  %v3331_v6 = vmul.f32 0.2, %v4070_v40  ;;  %v4072_v59 = vld [vmem:[#allocation4_spill] sm:$0xff]  ;;  %vm1248_vm13 = vcmp.ge.f32.partialorder %v3025_v43, 0.0 }
 0x243   :  { %4064 = vst [vmem:[#allocation39_spill] sm:$0xff] %v3300_v33  ;;  %v3318_v33 = vmul.f32 0.2, %v3037_v20  ;;  %v3334_v62 = vmul.f32 0.2, %v4072_v59  ;;  %4075 = vst [vmem:[#allocation46_spill] sm:$0xff] %v3343_v42 }
 0x244   :  { %4071 = vst [vmem:[#allocation3_spill] sm:$0xff] %v3331_v6  ;;  %v3350_v55 = vmul.f32 0.2, %v3053_v28  ;;  %v4077_v39 = vld [vmem:[#allocation8_spill] sm:$0xff]  ;;  %4081 = vst [vmem:[#allocation50_spill] sm:$0xff] %v3362_v41  ;;  %vm1252_vm14 = vcmp.ge.f32.partialorder %v4070_v40, 0.0 }
 0x245   :  { %4068 = vst [vmem:[#allocation43_spill] sm:$0xff] %v3318_v33  ;;  %4073 = vst [vmem:[#allocation4_spill] sm:$0xff] %v3334_v62  ;;  %v3337_v33 = vmul.f32 0.2, %v3049_v44  ;;  %v3353_v62 = vmul.f32 0.2, %v4077_v39 }
 0x246   :  { %4076 = vst [vmem:[#allocation47_spill] sm:$0xff] %v3350_v55  ;;  %v4082_v31 = vld [vmem:[#allocation11_spill] sm:$0xff]  ;;  %4087 = vst [vmem:[#allocation54_spill] sm:$0xff] %v3381_v57  ;;  %vm1256_vm15 = vcmp.ge.f32.partialorder %v4077_v39, 0.0  ;;  %v4088_v29 = vld [vmem:[#allocation14_spill] sm:$0xff]  ;;  %vm1260_vm0 = vcmp.ge.f32.partialorder %v3073_v52, 0.0 }
 0x247   :  { %4074 = vst [vmem:[#allocation45_spill] sm:$0xff] %v3337_v33  ;;  %4078 = vst [vmem:[#allocation48_spill] sm:$0xff] %v3353_v62  ;;  %v4079_v33 = vld [vmem:[#allocation10_spill] sm:$0xff]  ;;  %v3369_v42 = vmul.f32 0.2, %v4082_v31  ;;  %v4084_v62 = vld [vmem:[#allocation12_spill] sm:$0xff] }
 0x248   :  { %v3356_v6 = vmul.f32 0.2, %v4079_v33  ;;  %v3372_v55 = vmul.f32 0.2, %v4084_v62  ;;  %v1325_v41 = vmul.f32 0.2, %v4088_v29 }
 0x249   :  { %4083 = vst [vmem:[#allocation51_spill] sm:$0xff] %v3369_v42  ;;  %v4090_v28 = vld [vmem:[#allocation18_spill] sm:$0xff]  ;;  %4091 = vst [vmem:[#allocation55_spill] sm:$0xff] %v3394_v10  ;;  %v4092_v50 = vld [vmem:[#allocation19_spill] sm:$0xff] }
 0x24a   :  { %4080 = vst [vmem:[#allocation49_spill] sm:$0xff] %v3356_v6  ;;  %4085 = vst [vmem:[#allocation52_spill] sm:$0xff] %v3372_v55  ;;  %v3375_v6 = vmul.f32 0.2, %v3073_v52  ;;  %v4089_v55 = vld [vmem:[#allocation16_spill] sm:$0xff]  ;;  %v4094_v33 = vld [vmem:[#allocation21_spill] sm:$0xff] }
 0x24b   :  { %v1326_v42 = vmul.f32 0.2, %v4089_v55  ;;  %v1328_v57 = vmul.f32 0.2, %v4092_v50  ;;  %v4093_v62 = vld [vmem:[#allocation20_spill] sm:$0xff]  ;;  %v4095_v44 = vld [vmem:[#allocation7_spill] sm:$0xff] }
 0x24c   :  { %4086 = vst [vmem:[#allocation53_spill] sm:$0xff] %v3375_v6  ;;  %v1327_v6 = vmul.f32 0.2, %v4090_v28  ;;  %v1329_v31 = vmul.f32 0.2, %v4093_v62  ;;  %v3407_v56 = vsel %vm1224_vm3, %v2929_v60, %v4095_v44  ;;  %vm1264_vm2 = vcmp.ge.f32.partialorder %v4092_v50, 0.0 }
 0x24d   :  { %v1330_v39 = vmul.f32 0.2, %v4094_v33  ;;  %4096 = vst [vmem:[#allocation19_spill] sm:$0xff] %v3407_v56  ;;  %v4097_v15 = vld [vmem:[#allocation22_spill] sm:$0xff]  ;;  %v4098_v28 = vld [vmem:[#allocation23_spill] sm:$0xff]  ;;  %v4099_v29 = vld [vmem:[#allocation24_spill] sm:$0xff]  ;;  %v3420_v60 = vsel %vm1225_vm4, %v2933_v1, %v3179_v23  ;;  %v3432_v62 = vsel %vm1226_vm5, %v2937_v7, %v3182_v13 }
 0x24e   :  { %v1331_v10 = vmul.f32 0.2, %v4097_v15  ;;  %v1332_v55 = vmul.f32 0.2, %v4098_v28  ;;  %v1333_v52 = vmul.f32 0.2, %v4099_v29 }
 0x24f   :  { %4100 = vst [vmem:[#allocation7_spill] sm:$0xff] %v3420_v60  ;;  %vm1268_vm3 = vcmp.ge.f32.partialorder %v4098_v28, 0.0  ;;  %vm1269_vm1 = vcmp.ge.f32.partialorder %v4099_v29, 0.0  ;;  %v4101_v44 = vld [vmem:[#allocation27_spill] sm:$0xff]  ;;  %v4102_v56 = vld [vmem:[#allocation28_spill] sm:$0xff]  ;;  %vm4104_vm4 = vcmp.ge.f32.partialorder %v2941_v16, 0.0  ;;  %v3444_v60 = vsel %vm1228_vm7, %v2945_v14, %v3194_v46 }
 0x250   :  { %vm1270_vm6 = vcmp.ge.f32.partialorder %v4101_v44, 0.0  ;;  %v1334_v15 = vmul.f32 0.2, %v4101_v44  ;;  %v1335_v33 = vmul.f32 0.2, %v4102_v56  ;;  %v4103_v1 = vld [vmem:[#allocation15_spill] sm:$0xff]  ;;  %v3450_v56 = vsel %vm4105_vm8, %v2949_v19, %v3197_v2 }
 0x251   :  { %v3438_v23 = vsel %vm4104_vm4, %v2941_v16, %v4103_v1  ;;  %v4106_v7 = vld [vmem:[#allocation25_spill] sm:$0xff]  ;;  %vm4107_vm5 = vcmp.ge.f32.partialorder %v2953_v25, 0.0  ;;  %vm4108_vm4 = vcmp.ge.f32.partialorder %v2957_v34, 0.0  ;;  %v3468_v14 = vsel %vm1232_vm9, %v2961_v32, %v3212_v22  ;;  %v4109_v19 = vld [vmem:[#allocation2_spill] sm:$0xff]  ;;  %v4113_v32 = vld [vmem:[#allocation32_spill] sm:$0xff] }
 0x252   :  { %v3456_v13 = vsel %vm4107_vm5, %v2953_v25, %v4106_v7  ;;  %v3462_v16 = vsel %vm4108_vm4, %v2957_v34, %v3209_v26  ;;  %vm4110_vm7 = vcmp.ge.f32.partialorder %v2965_v38, 0.0  ;;  %vm4111_vm8 = vcmp.ge.f32.partialorder %v2969_v49, 0.0  ;;  %v4143_v7 = vld [vmem:[#allocation49_spill] sm:$0xff] }
 0x253   :  { %v3474_v46 = vsel %vm4110_vm7, %v2965_v38, %v4109_v19  ;;  %v3480_v25 = vsel %vm4111_vm8, %v2969_v49, %v3224_v35  ;;  %vm4112_vm5 = vcmp.ge.f32.partialorder %v2973_v0, 0.0  ;;  %v3492_v2 = vsel %vm1236_vm10, %v2977_v61, %v4113_v32  ;;  %v4146_v32 = vld [vmem:[#allocation51_spill] sm:$0xff] }
 0x254   :  { %v3486_v34 = vsel %vm4112_vm5, %v2973_v0, %v3227_v47  ;;  %vm4114_vm9 = vcmp.ge.f32.partialorder %v2981_v4, 0.0  ;;  %vm4115_vm4 = vcmp.ge.f32.partialorder %v2985_v12, 0.0  ;;  %vm4116_vm7 = vcmp.ge.f32.partialorder %v2989_v27, 0.0 }
 0x255   :  { %v3498_v38 = vsel %vm4114_vm9, %v2981_v4, %v3240_v8  ;;  %v3504_v49 = vsel %vm4115_vm4, %v2985_v12, %v3243_v37  ;;  %v3510_v0 = vsel %vm4116_vm7, %v2989_v27, %v3246_v58  ;;  %v3516_v61 = vsel %vm1240_vm11, %v2993_v24, %v3258_v36  ;;  %v4118_v12 = vld [vmem:[#allocation35_spill] sm:$0xff]  ;;  %v4136_v36 = vld [vmem:[#allocation5_spill] sm:$0xff] }
 0x256   :  { %vm4117_vm10 = vcmp.ge.f32.partialorder %v2997_v30, 0.0  ;;  %vm4119_vm8 = vcmp.ge.f32.partialorder %v3001_v45, 0.0  ;;  %vm4120_vm5 = vcmp.ge.f32.partialorder %v3005_v3, 0.0  ;;  %v3540_v24 = vsel %vm1244_vm12, %v3009_v63, %v3279_v48  ;;  %v4125_v63 = vld [vmem:[#allocation39_spill] sm:$0xff] }
 0x257   :  { %v3522_v4 = vsel %vm4117_vm10, %v2997_v30, %v3261_v5  ;;  %v3528_v26 = vsel %vm4119_vm8, %v3001_v45, %v4118_v12  ;;  %v3534_v27 = vsel %vm4120_vm5, %v3005_v3, %v3276_v53  ;;  %v4121_v30 = vld [vmem:[#allocation37_spill] sm:$0xff]  ;;  %vm4122_vm11 = vcmp.ge.f32.partialorder %v3013_v9, 0.0  ;;  %v4147_v12 = vld [vmem:[#allocation11_spill] sm:$0xff] }
 0x258   :  { %v3546_v58 = vsel %vm4122_vm11, %v3013_v9, %v4121_v30  ;;  %vm4123_vm9 = vcmp.ge.f32.partialorder %v3017_v21, 0.0  ;;  %vm4124_vm4 = vcmp.ge.f32.partialorder %v3021_v51, 0.0  ;;  %v3564_v48 = vsel %vm1248_vm13, %v3025_v43, %v4125_v63  ;;  %v4126_v9 = vld [vmem:[#allocation41_spill] sm:$0xff]  ;;  %v4132_v43 = vld [vmem:[#allocation3_spill] sm:$0xff]  ;;  %v4149_v63 = vld [vmem:[#allocation52_spill] sm:$0xff] }
 0x259   :  { %v3552_v45 = vsel %vm4123_vm9, %v3017_v21, %v3294_v17  ;;  %v3558_v3 = vsel %vm4124_vm4, %v3021_v51, %v3297_v18  ;;  %vm4127_vm12 = vcmp.ge.f32.partialorder %v3029_v54, 0.0  ;;  %v4128_v21 = vld [vmem:[#allocation42_spill] sm:$0xff]  ;;  %vm4129_vm7 = vcmp.ge.f32.partialorder %v3033_v11, 0.0  ;;  %v4130_v51 = vld [vmem:[#allocation43_spill] sm:$0xff]  ;;  %v4141_v17 = vld [vmem:[#allocation48_spill] sm:$0xff] }
 0x25a   :  { %v3570_v22 = vsel %vm4127_vm12, %v3029_v54, %v4126_v9  ;;  %v3576_v35 = vsel %vm4129_vm7, %v3033_v11, %v4128_v21  ;;  %vm4131_vm10 = vcmp.ge.f32.partialorder %v3037_v20, 0.0  ;;  %v3588_v8 = vsel %vm1252_vm14, %v4070_v40, %v4132_v43  ;;  %v4133_v54 = vld [vmem:[#allocation4_spill] sm:$0xff]  ;;  %v4135_v11 = vld [vmem:[#allocation45_spill] sm:$0xff]  ;;  %v4139_v18 = vld [vmem:[#allocation6_spill] sm:$0xff] }
 0x25b   :  { %v3582_v47 = vsel %vm4131_vm10, %v3037_v20, %v4130_v51  ;;  %vm4134_vm13 = vcmp.ge.f32.partialorder %v4072_v59, 0.0  ;;  %vm4137_vm8 = vcmp.ge.f32.partialorder %v4136_v36, 0.0  ;;  %v4138_v20 = vld [vmem:[#allocation47_spill] sm:$0xff]  ;;  %vm4140_vm5 = vcmp.ge.f32.partialorder %v4139_v18, 0.0  ;;  %v4142_v40 = vld [vmem:[#allocation8_spill] sm:$0xff]  ;;  %v4152_v51 = vld [vmem:[#allocation53_spill] sm:$0xff] }
 0x25c   :  { %v3594_v37 = vsel %vm4134_vm13, %v4072_v59, %v4133_v54  ;;  %v3600_v5 = vsel %vm4137_vm8, %v4136_v36, %v4135_v11  ;;  %v3606_v53 = vsel %vm4140_vm5, %v4139_v18, %v4138_v20  ;;  %v1384_v1 = vsel %vm1256_vm15, %v4142_v40, %v4141_v17  ;;  %v4144_v59 = vld [vmem:[#allocation10_spill] sm:$0xff]  ;;  %v4150_v9 = vld [vmem:[#allocation12_spill] sm:$0xff]  ;;  %v4153_v43 = vld [vmem:[#allocation13_spill] sm:$0xff] }
 0x25d   :  { %vm4145_vm14 = vcmp.ge.f32.partialorder %v4144_v59, 0.0  ;;  %vm4148_vm11 = vcmp.ge.f32.partialorder %v4147_v12, 0.0  ;;  %vm4151_vm9 = vcmp.ge.f32.partialorder %v4150_v9, 0.0  ;;  %v3628_v54 = vsel %vm1260_vm0, %v4153_v43, %v4152_v51  ;;  %v4154_v11 = vld [vmem:[#allocation14_spill] sm:$0xff]  ;;  %v4156_v20 = vld [vmem:[#allocation16_spill] sm:$0xff] }
 0x25e   :  { %v1385_v19 = vsel %vm4145_vm14, %v4144_v59, %v4143_v7  ;;  %v1386_v30 = vsel %vm4148_vm11, %v4147_v12, %v4146_v32  ;;  %v1387_v21 = vsel %vm4151_vm9, %v4150_v9, %v4149_v63  ;;  %vm4155_vm15 = vcmp.ge.f32.partialorder %v4154_v11, 0.0  ;;  %v4158_v17 = vld [vmem:[#allocation18_spill] sm:$0xff]  ;;  %v4160_v59 = vld [vmem:[#allocation20_spill] sm:$0xff]  ;;  %v4162_v32 = vld [vmem:[#allocation21_spill] sm:$0xff] }
 0x25f   :  { %v3633_v36 = vsel %vm4155_vm15, %v4154_v11, %v1325_v41  ;;  %vm4157_vm4 = vcmp.ge.f32.partialorder %v4156_v20, 0.0  ;;  %vm4159_vm12 = vcmp.ge.f32.partialorder %v4158_v17, 0.0  ;;  %v3648_v7 = vsel %vm1264_vm2, %v4092_v50, %v1328_v57  ;;  %v4164_v12 = vld [vmem:[#allocation22_spill] sm:$0xff]  ;;  %v4170_v50 = vld [vmem:[#allocation28_spill] sm:$0xff]  ;;  %v4173_v63 = vld [vmem:[#allocation29_spill] sm:$0xff] }
 0x260   :  { %v3638_v18 = vsel %vm4157_vm4, %v4156_v20, %v1326_v42  ;;  %v3643_v40 = vsel %vm4159_vm12, %v4158_v17, %v1327_v6  ;;  %vm4161_vm0 = vcmp.ge.f32.partialorder %v4160_v59, 0.0  ;;  %vm4163_vm7 = vcmp.ge.f32.partialorder %v4162_v32, 0.0  ;;  %v4174_v9 = vld [vmem:[#allocation30_spill] sm:$0xff]  ;;  %v4178_v20 = vld [vmem:[#allocation31_spill] sm:$0xff] }
 0x261   :  { %v3653_v41 = vsel %vm4161_vm0, %v4160_v59, %v1329_v31  ;;  %v3658_v42 = vsel %vm4163_vm7, %v4162_v32, %v1330_v39  ;;  %vm4165_vm10 = vcmp.ge.f32.partialorder %v4164_v12, 0.0  ;;  %v3668_v57 = vsel %vm1268_vm3, %v4098_v28, %v1332_v55  ;;  %v4175_v28 = vld [vmem:[#allocation9_spill] sm:$0xff]  ;;  %v4177_v11 = vld [vmem:[#allocation26_spill] sm:$0xff]  ;;  %v4181_v32 = vld [vmem:[#allocation36_spill] sm:$0xff] }
 0x262   :  { %v3663_v6 = vsel %vm4165_vm10, %v4164_v12, %v1331_v10  ;;  %4167 = vst [vmem:[#allocation24_spill] sm:$0xff] %v3668_v57  ;;  %v3673_v31 = vsel %vm1269_vm1, %v4099_v29, %v1333_v52  ;;  %v3678_v39 = vsel %vm1270_vm6, %v4101_v44, %v1334_v15  ;;  %vm4171_vm2 = vcmp.ge.f32.partialorder %v4170_v50, 0.0  ;;  %v4176_v55 = vld [vmem:[#allocation17_spill] sm:$0xff]  ;;  %v4180_v17 = vld [vmem:[#allocation34_spill] sm:$0xff]  ;;  %v4183_v12 = vld [vmem:[#allocation40_spill] sm:$0xff] }
 0x263   :  { %4166 = vst [vmem:[#allocation23_spill] sm:$0xff] %v3663_v6  ;;  %4168 = vst [vmem:[#allocation27_spill] sm:$0xff] %v3673_v31  ;;  %v3683_v10 = vsel %vm4171_vm2, %v4170_v50, %v1335_v33  ;;  %v1400_v51 = vpack.c.bf16 %v4174_v9, %v4173_v63  ;;  %v1401_v43 = vpack.c.bf16 %v4176_v55, %v4175_v28  ;;  %v4179_v29 = vld [vmem:[#allocation33_spill] sm:$0xff]  ;;  %v4182_v15 = vld [vmem:[#allocation38_spill] sm:$0xff]  ;;  %vm4192_vm1 = vcmask 195584  }
 0x264   :  { %4169 = vst [vmem:[#allocation15_spill] sm:$0xff] %v3678_v39  ;;  %4172 = vst [vmem:[#allocation25_spill] sm:$0xff] %v3683_v10  ;;  %v1402_v52 = vpack.c.bf16 %v4178_v20, %v4177_v11  ;;  %v1403_v59 = vpack.c.bf16 %v4180_v17, %v4179_v29  ;;  %v1404_v44 = vpack.c.bf16 %v4182_v15, %v4181_v32  ;;  %v4184_v39 = vld [vmem:[#allocation44_spill] sm:$0xff]  ;;  %v4185_v33 = vld [vmem:[#allocation46_spill] sm:$0xff]  ;;  %vm1609_vm3 = vcmask 191488  }
 0x265   :  { %v1405_v31 = vpack.c.bf16 %v4184_v39, %v4183_v12  ;;  %v4186_v50 = vld [vmem:[#allocation50_spill] sm:$0xff]  ;;  %v4188_v63 = vld [vmem:[#allocation55_spill] sm:$0xff]  ;;  %v1409_v11 = vpack.c.bf16 %v3438_v23, %v3432_v62  ;;  %v1410_v20 = vpack.c.bf16 %v3450_v56, %v3444_v60  ;;  %v1411_v29 = vpack.c.bf16 %v3462_v16, %v3456_v13  ;;  %vm4193_vm6 = vmmov %vm4192_vm1 }
 0x266   :  { %v1406_v10 = vpack.c.bf16 %v4186_v50, %v4185_v33  ;;  %v4187_v57 = vld [vmem:[#allocation54_spill] sm:$0xff]  ;;  %v4189_v6 = vld [vmem:[#allocation19_spill] sm:$0xff]  ;;  %v1412_v39 = vpack.c.bf16 %v3474_v46, %v3468_v14  ;;  %v1413_v17 = vpack.c.bf16 %v3486_v34, %v3480_v25  ;;  %v1414_v32 = vpack.c.bf16 %v3498_v38, %v3492_v2  ;;  %vm4196_vm13 = vmmov %vm4192_vm1 }
 0x267   :  { %v1407_v9 = vpack.c.bf16 %v4188_v63, %v4187_v57  ;;  %v4190_v28 = vld [vmem:[#allocation7_spill] sm:$0xff]  ;;  %v1416_v62 = vpack.c.bf16 %v3522_v4, %v3516_v61  ;;  %v1417_v56 = vpack.c.bf16 %v3534_v27, %v3528_v26  ;;  %v1418_v60 = vpack.c.bf16 %v3546_v58, %v3540_v24  ;;  %vm4197_vm8 = vmmov %vm4192_vm1 }
 0x268   :  { %v1408_v55 = vpack.c.bf16 %v4190_v28, %v4189_v6  ;;  %v1415_v6 = vpack.c.bf16 %v3510_v0, %v3504_v49  ;;  %v1419_v23 = vpack.c.bf16 %v3558_v3, %v3552_v45  ;;  %v1420_v13 = vpack.c.bf16 %v3570_v22, %v3564_v48  ;;  %vm4200_vm5 = vmmov %vm4192_vm1 }
 0x269   :  { %v1421_v16 = vpack.c.bf16 %v3582_v47, %v3576_v35  ;;  %v1422_v14 = vpack.c.bf16 %v3594_v37, %v3588_v8  ;;  %v1424_v46 = vpack.c.bf16 %v1385_v19, %v1384_v1  ;;  %v1423_v25 = vpack.c.bf16 %v3606_v53, %v3600_v5  ;;  %v4194_v58 = vld [vmem:[#allocation24_spill] sm:$0xff]  ;;  %vm4201_vm14 = vmmov %vm4192_vm1 }
 0x26a   :  { %v1425_v34 = vpack.c.bf16 %v1387_v21, %v1386_v30  ;;  %v1426_v2 = vpack.c.bf16 %v3633_v36, %v3628_v54  ;;  %v1427_v38 = vpack.c.bf16 %v3643_v40, %v3638_v18  ;;  %v1428_v61 = vpack.c.bf16 %v3653_v41, %v3648_v7  ;;  %v4191_v4 = vld [vmem:[#allocation23_spill] sm:$0xff]  ;;  %vm4202_vm11 = vmmov %vm4192_vm1 }
 0x26b   :  { %v1429_v26 = vpack.c.bf16 %v4191_v4, %v3658_v42  ;;  %v1434_v27 = vsel %vm4192_vm1, %v1400_v51, 4286644096  ;;  %v1437_v24 = vsel %vm4193_vm6, %v1408_v55, 4286644096  ;;  %v4195_v45 = vld [vmem:[#allocation27_spill] sm:$0xff]  ;;  %v4199_v8 = vld [vmem:[#allocation25_spill] sm:$0xff]  ;;  %vm4203_vm9 = vmmov %vm4192_vm1 }
 0x26c   :  { %v1430_v3 = vpack.c.bf16 %v4195_v45, %v4194_v58  ;;  %v1439_v48 = vmax.bf16 %v1437_v24, %v1434_v27  ;;  %v1441_v22 = vsel %vm4196_vm13, %v1416_v62, 4286644096  ;;  %v1449_v35 = vsel %vm4197_vm8, %v1401_v43, 4286644096  ;;  %v4198_v47 = vld [vmem:[#allocation15_spill] sm:$0xff]  ;;  %vm4204_vm15 = vmmov %vm4192_vm1 }
 0x26d   :  { %v1431_v37 = vpack.c.bf16 %v4199_v8, %v4198_v47  ;;  %v1445_v5 = vsel %vm4200_vm5, %v1424_v46, 4286644096  ;;  %v1452_v53 = vsel %vm4201_vm14, %v1409_v11, 4286644096  ;;  %v1456_v1 = vsel %vm4202_vm11, %v1417_v56, 4286644096  ;;  %vm4205_vm4 = vmmov %vm4192_vm1 }
 0x26e   :  { %v1443_v19 = vmax.bf16 %v1441_v22, %v1439_v48  ;;  %v1454_v30 = vmax.bf16 %v1452_v53, %v1449_v35  ;;  %v1464_v21 = vsel %vm4203_vm9, %v1402_v52, 4286644096  ;;  %v1467_v54 = vsel %vm4204_vm15, %v1410_v20, 4286644096  ;;  %vm4206_vm12 = vmmov %vm4192_vm1 }
 0x26f   :  { %v1460_v36 = vsel %vm4205_vm4, %v1425_v34, 4286644096  ;;  %v1469_v18 = vmax.bf16 %v1467_v54, %v1464_v21  ;;  %v1471_v40 = vsel %vm4206_vm12, %v1418_v60, 4286644096  ;;  %vm4207_vm0 = vmmov %vm4192_vm1 }
 0x270   :  { %v1479_v7 = vsel %vm4207_vm0, %v1403_v59, 4286644096  ;;  %v1447_v41 = vmax.bf16 %v1445_v5, %v1443_v19  ;;  %v1458_v42 = vmax.bf16 %v1456_v1, %v1454_v30  ;;  %vm4208_vm7 = vmmov %vm4207_vm0 }
 0x271   :  { %v1475_v51 = vsel %vm4208_vm7, %v1426_v2, 4286644096  ;;  %vm4209_vm10 = vmmov %vm4207_vm0  ;;  %v1473_v15 = vmax.bf16 %v1471_v40, %v1469_v18 }
 0x272   :  { %v1482_v43 = vsel %vm4209_vm10, %v1411_v29, 4286644096  ;;  %vm4210_vm2 = vmmov %vm4207_vm0  ;;  %v1462_v55 = vmax.bf16 %v1460_v36, %v1458_v42  ;;  %v1698_v2 = vcombine.low %v1447_v41, %v1447_v41  ;;  %v1699_v27 = vcombine.high %v1447_v41, %v1447_v41 }
 0x273   :  { %v1484_v12 = vmax.bf16 %v1482_v43, %v1479_v7  ;;  %v1486_v28 = vsel %vm4210_vm2, %v1419_v23, 4286644096  ;;  %vm4211_vm1 = vmmov %vm4207_vm0  ;;  %v1477_v29 = vmax.bf16 %v1475_v51, %v1473_v15 }
 0x274   :  { %v1494_v52 = vsel %vm4211_vm1, %v1404_v44, 4286644096  ;;  %vm4212_vm6 = vmmov %vm4207_vm0  ;;  %1610 = vst.msk [vmem:[%s3858_s5] sm:$0xf] %vm1609_vm3, %v1698_v2  ;;  %v1701_v63 = vcombine.high %v1462_v55, %v1462_v55 }
 0x275   :  { %v1490_v11 = vsel %vm4212_vm6, %v1427_v38, 4286644096  ;;  %vm4213_vm13 = vmmov %vm4207_vm0  ;;  %v1488_v59 = vmax.bf16 %v1486_v28, %v1484_v12  ;;  %1611 = vst.msk [vmem:[%s3858_s5 + $0x4] sm:$0xf] %vm1609_vm3, %v1699_v27  ;;  %v1703_v45 = vcombine.high %v1477_v29, %v1477_v29 }
 0x276   :  { %v1497_v20 = vsel %vm4213_vm13, %v1412_v39, 4286644096  ;;  %vm4214_vm8 = vmmov %vm4207_vm0  ;;  %1613 = vst.msk [vmem:[%s3858_s5 + $0xc] sm:$0xf] %vm1609_vm3, %v1701_v63 }
 0x277   :  { %v1501_v62 = vsel %vm4214_vm8, %v1420_v13, 4286644096  ;;  %v1499_v56 = vmax.bf16 %v1497_v20, %v1494_v52  ;;  %vm4215_vm5 = vmmov %vm4207_vm0  ;;  %v1492_v13 = vmax.bf16 %v1490_v11, %v1488_v59  ;;  %1615 = vst.msk [vmem:[%s3858_s5 + $0x14] sm:$0xf] %vm1609_vm3, %v1703_v45 }
 0x278   :  { %v1505_v60 = vsel %vm4215_vm5, %v1428_v61, 4286644096  ;;  %vm4216_vm14 = vmmov %vm4207_vm0 }
 0x279   :  { %v1509_v46 = vsel %vm4216_vm14, %v1405_v31, 4286644096  ;;  %vm4217_vm11 = vmmov %vm4207_vm0  ;;  %v1503_v44 = vmax.bf16 %v1501_v62, %v1499_v56  ;;  %v1531_v31 = vsel %vm4207_vm0, %v1422_v14, 4286644096  ;;  %v1700_v14 = vcombine.low %v1462_v55, %v1462_v55 }
 0x27a   :  { %v1512_v34 = vsel %vm4217_vm11, %v1413_v17, 4286644096  ;;  %vm4218_vm9 = vmmov %vm4207_vm0  ;;  %v1705_v48 = vcombine.high %v1492_v13, %v1492_v13 }
 0x27b   :  { %v1516_v23 = vsel %vm4218_vm9, %v1421_v16, 4286644096  ;;  %v1514_v4 = vmax.bf16 %v1512_v34, %v1509_v46  ;;  %vm4219_vm15 = vmmov %vm4207_vm0  ;;  %v1507_v17 = vmax.bf16 %v1505_v60, %v1503_v44  ;;  %1612 = vst.msk [vmem:[%s3858_s5 + $0x8] sm:$0xf] %vm1609_vm3, %v1700_v14 }
 0x27c   :  { %v1520_v38 = vsel %vm4219_vm15, %v1429_v26, 4286644096  ;;  %vm4220_vm4 = vmmov %vm4207_vm0  ;;  %1617 = vst.msk [vmem:[%s3858_s5 + $0x1c] sm:$0xf] %vm1609_vm3, %v1705_v48 }
 0x27d   :  { %v1524_v39 = vsel %vm4220_vm4, %v1406_v10, 4286644096  ;;  %vm4221_vm12 = vmmov %vm4207_vm0  ;;  %v1518_v16 = vmax.bf16 %v1516_v23, %v1514_v4 }
 0x27e   :  { %v1527_v61 = vsel %vm4221_vm12, %v1414_v32, 4286644096  ;;  %vm4222_vm7 = vmmov %vm4207_vm0 }
 0x27f   :  { %v1529_v24 = vmax.bf16 %v1527_v61, %v1524_v39  ;;  %v1539_v33 = vsel %vm4222_vm7, %v1407_v9, 4286644096  ;;  %vm4223_vm10 = vmmov %vm4207_vm0  ;;  %v1522_v26 = vmax.bf16 %v1520_v38, %v1518_v16  ;;  %v1702_v9 = vcombine.low %v1477_v29, %v1477_v29 }
 0x280   :  { %v1535_v10 = vsel %vm4223_vm10, %v1430_v3, 4286644096  ;;  %vm4224_vm2 = vmmov %vm4207_vm0  ;;  %v1704_v3 = vcombine.low %v1492_v13, %v1492_v13 }
 0x281   :  { %v1542_v50 = vsel %vm4224_vm2, %v1415_v6, 4286644096  ;;  %vm4225_vm1 = vmmov %vm4207_vm0  ;;  %v1533_v58 = vmax.bf16 %v1531_v31, %v1529_v24  ;;  %v1706_v6 = vcombine.low %v1507_v17, %v1507_v17  ;;  %v1708_v35 = vcombine.low %v1522_v26, %v1522_v26  ;;  %1614 = vst.msk [vmem:[%s3858_s5 + $0x10] sm:$0xf] %vm1609_vm3, %v1702_v9 }
 0x282   :  { %v1546_v32 = vsel %vm4225_vm1, %v1423_v25, 4286644096  ;;  %v1544_v57 = vmax.bf16 %v1542_v50, %v1539_v33  ;;  %v1707_v25 = vcombine.high %v1507_v17, %v1507_v17  ;;  %vm4226_vm6 = vmmov %vm4207_vm0  ;;  %v1709_v5 = vcombine.high %v1522_v26, %v1522_v26  ;;  %1616 = vst.msk [vmem:[%s3858_s5 + $0x18] sm:$0xf] %vm1609_vm3, %v1704_v3 }
 0x283   :  { %v1537_v49 = vmax.bf16 %v1535_v10, %v1533_v58  ;;  %v1550_v22 = vsel %vm4226_vm6, %v1431_v37, 4286644096  ;;  %1618 = vst.msk [vmem:[%s3858_s5 + $0x20] sm:$0xf] %vm1609_vm3, %v1706_v6  ;;  %1620 = vst.msk [vmem:[%s3858_s5 + $0x28] sm:$0xf] %vm1609_vm3, %v1708_v35 }
 0x284   :  { %v1548_v0 = vmax.bf16 %v1546_v32, %v1544_v57  ;;  %1619 = vst.msk [vmem:[%s3858_s5 + $0x24] sm:$0xf] %vm1609_vm3, %v1707_v25  ;;  %1621 = vst.msk [vmem:[%s3858_s5 + $0x2c] sm:$0xf] %vm1609_vm3, %v1709_v5 }
 0x285   :  { %v1710_v8 = vcombine.low %v1537_v49, %v1537_v49  ;;  %v1711_v37 = vcombine.high %v1537_v49, %v1537_v49 }
 0x286   :  { %v1552_v47 = vmax.bf16 %v1550_v22, %v1548_v0 }
 0x287   :  { %1622 = vst.msk [vmem:[%s3858_s5 + $0x30] sm:$0xf] %vm1609_vm3, %v1710_v8  ;;  %1623 = vst.msk [vmem:[%s3858_s5 + $0x34] sm:$0xf] %vm1609_vm3, %v1711_v37 }
 0x288   :  { %v1712_v53 = vcombine.low %v1552_v47, %v1552_v47  ;;  %v1713_v1 = vcombine.high %v1552_v47, %v1552_v47 }
 0x28a   :  { %1624 = vst.msk [vmem:[%s3858_s5 + $0x38] sm:$0xf] %vm1609_vm3, %v1712_v53  ;;  %1625 = vst.msk [vmem:[%s3858_s5 + $0x3c] sm:$0xf] %vm1609_vm3, %v1713_v1 }

// kernel: discriminator_forward.4
= control target key start
LH: loop header
LB: loop body
LE: loop exit
PB: predicated region body
PF: predicated region fallthrough
CT: control target
= control target key end

     0   :  { %vm358_vm0 = vcmask 392192   ;;  %vm451_vm5 = vcmask 388096   ;;  %s740_s1 = inlined_call_operand.vmem [shape: bf16[384,48], index: 1, kind: input, shape index: {}]   ;;  %s741_s0 = inlined_call_operand.vmem [shape: bf16[32,384], index: 0, kind: input, shape index: {}]   ;;  %s742_s2 = inlined_call_operand.vmem [shape: f32[1,48], index: 2, kind: input, shape index: {}]   ;;  %s743_s3 = inlined_call_operand.vmem [shape: f32[1,48], index: 3, kind: input, shape index: {}]   ;;  %s744_s4 = inlined_call_operand.vmem [shape: f32[1,48], index: 4, kind: input, shape index: {}]   ;;  %s745_s5 = inlined_call_operand.vmem [shape: bf16[32,48], index: 5, kind: output, shape index: {}]  }
   0x1   :  { %v557_v0 = vld [vmem:[%s740_s1 + $0x78] sm:$0xff]   ;;  %v560_v3 = vld [vmem:[%s740_s1 + $0x70] sm:$0xff]   ;;  %v563_v6 = vld [vmem:[%s740_s1 + $0x68] sm:$0xff]  }
   0x2   :  { %v558_v1 = vld [vmem:[%s740_s1 + $0x38] sm:$0xff]   ;;  %499 = vmatprep.subr.bf16.mxu0 %v557_v0  ;;  %v561_v4 = vld [vmem:[%s740_s1 + $0x30] sm:$0xff]   ;;  %v564_v7 = vld [vmem:[%s740_s1 + $0x28] sm:$0xff]  }
   0x3   :  { %v559_v2 = vld [vmem:[%s740_s1 + $0xb8] sm:$0xff]   ;;  %500 = vmatpush3.bf16.msra.mxu0 %v558_v1  ;;  %v562_v5 = vld [vmem:[%s740_s1 + $0xb0] sm:$0xff]   ;;  %v565_v8 = vld [vmem:[%s740_s1 + $0xa8] sm:$0xff]  }
   0x4   :  { %537 = vmatprep.subr.bf16.mxu1 %v559_v2  ;;  %501 = vmatprep.subr.bf16.mxu0 %v560_v3  ;;  %v566_v9 = vld [vmem:[%s740_s1 + $0x60] sm:$0xff]   ;;  %v569_v12 = vld [vmem:[%s740_s1 + $0x58] sm:$0xff]   ;;  %v572_v15 = vld [vmem:[%s740_s1 + $0x50] sm:$0xff]  }
   0x5   :  { %538 = vmatpush3.bf16.msra.mxu1 %v559_v2  ;;  %v567_v10 = vld [vmem:[%s740_s1 + $0x20] sm:$0xff]   ;;  %v571_v13 = vld [vmem:[%s740_s1 + $0x98] sm:$0xff]   ;;  %v574_v16 = vld [vmem:[%s740_s1 + $0x90] sm:$0xff]  }
   0x6   :  { %539 = vmatprep.subr.bf16.mxu1 %v562_v5  ;;  %v568_v11 = vld [vmem:[%s740_s1 + $0xa0] sm:$0xff]   ;;  %v570_v14 = vld [vmem:[%s740_s1 + $0x18] sm:$0xff]   ;;  %v573_v17 = vld [vmem:[%s740_s1 + $0x10] sm:$0xff]  }
   0x7   :  { %502 = vmatpush3.bf16.msra.mxu0 %v561_v4  ;;  %v575_v18 = vld [vmem:[%s740_s1 + $0x48] sm:$0xff]   ;;  %v578_v21 = vld [vmem:[%s740_s1 + $0x40] sm:$0xff]  }
   0x8   :  { %503 = vmatprep.subr.bf16.mxu0 %v563_v6  ;;  %v576_v19 = vld [vmem:[%s740_s1 + $0x8] sm:$0xff]   ;;  %v580_v22 = vld [vmem:[%s740_s1 + $0x80] sm:$0xff]  }
   0x9   :  { %540 = vmatpush3.bf16.msra.mxu1 %v562_v5  ;;  %v577_v20 = vld [vmem:[%s740_s1 + $0x88] sm:$0xff]   ;;  %v583_v23 = vld [vmem:[%s741_s0 + $0x4] ss:$12 sps:$4 sm:$0xff]   ;;  %v460_v36 = vld [vmem:[%s742_s2] ss:$0 sm:$0xff] }
   0xa   :  { %541 = vmatprep.subr.bf16.mxu1 %v565_v8  ;;  %v584_v24 = vld [vmem:[%s741_s0 + $0x8] ss:$12 sps:$4 sm:$0xff]   ;;  %v579_v25 = vld [vmem:[%s740_s1] sm:$0xff]   ;;  %292 = vmatprep.mubr.bf16.mxu0 %v583_v23 }
   0xb   :  { %504 = vmatpush3.bf16.msra.mxu0 %v564_v7  ;;  %553 = vmatprep.mubr.bf16.mxu1 %v584_v24  ;;  %v581_v26 = vld [vmem:[%s741_s0] ss:$12 sps:$4 sm:$0xff]   ;;  %v586_v27 = vld [vmem:[%s741_s0 + $0x1c] ss:$12 sps:$4 sm:$0xff]   ;;  %v588_v29 = vld [vmem:[%s741_s0 + $0x18] ss:$12 sps:$4 sm:$0xff]  }
   0xc   :  { %505 = vmatprep.subr.bf16.mxu0 %v566_v9  ;;  %v585_v28 = vld [vmem:[%s741_s0 + $0x20] ss:$12 sps:$4 sm:$0xff]  }
   0xd   :  { %542 = vmatpush3.bf16.msra.mxu1 %v565_v8 }
   0xe   :  { %543 = vmatprep.subr.bf16.mxu1 %v568_v11 }
   0xf   :  { %506 = vmatpush3.bf16.msra.mxu0 %v567_v10 }
  0x10   :  { %507 = vmatprep.subr.bf16.mxu0 %v569_v12 }
  0x11   :  { %544 = vmatpush3.bf16.msra.mxu1 %v568_v11 }
  0x12   :  { %545 = vmatprep.subr.bf16.mxu1 %v571_v13 }
  0x13   :  { %508 = vmatpush3.bf16.msra.mxu0 %v570_v14 }
  0x14   :  { %509 = vmatprep.subr.bf16.mxu0 %v572_v15 }
  0x15   :  { %546 = vmatpush3.bf16.msra.mxu1 %v571_v13 }
  0x16   :  { %547 = vmatprep.subr.bf16.mxu1 %v574_v16 }
  0x17   :  { %510 = vmatpush3.bf16.msra.mxu0 %v573_v17 }
  0x18   :  { %511 = vmatprep.subr.bf16.mxu0 %v575_v18 }
  0x19   :  { %548 = vmatpush3.bf16.msra.mxu1 %v574_v16 }
  0x1a   :  { %549 = vmatprep.subr.bf16.mxu1 %v577_v20 }
  0x1b   :  { %512 = vmatpush3.bf16.msra.mxu0 %v576_v19 }
  0x1c   :  { %513 = vmatprep.subr.bf16.mxu0 %v578_v21 }
  0x1d   :  { %550 = vmatpush3.bf16.msra.mxu1 %v577_v20 }
  0x1e   :  { %551 = vmatprep.subr.bf16.mxu1 %v580_v22 }
  0x1f   :  { %514 = vmatpush3.bf16.msra.mxu0 %v579_v25 }
  0x21   :  { %552 = vmatpush3.bf16.msra.mxu1 %v580_v22 }
  0x22   :  { %293 = vmatmul.mubr.bf16.vlgmr.msra.gmra.mxu0 %v581_v26 }
  0x23   :  { %300 = vmatprep.mubr.bf16.mxu0 %v586_v27 }
  0x24   :  { %554 = vmatmul.mubr.bf16.vlgmr.msra.gmra.mxu1 %v585_v28  ;;  %v404_v28 = vlaneseq }
  0x2a   :  { %301 = vmatmul.mubr.bf16.gmra.mxu0 %v588_v29  ;;  %v405_v29 = vshrl.u32 %v404_v28, 7 }
  0xe2   :  { %v515_v30 = vpop.f32.mrf.mxu0 }
  0xe4   :  { %v516_v31 = vpop.f32.mrf.mxu0  ;;  %v555_v32 = vpop.f32.mrf.mxu1 }
  0xe5   :  { %v517_v35 = vadd.f32 %v516_v31, %v515_v30  ;;  %v396_v30 = vld [vmem:[%s743_s3] sm:$0x1]  ;;  %v406_v31 = vsub.s32 0, %v405_v29 }
  0xe6   :  { %v518_v33 = vpop.f32.mrf.mxu0  ;;  %v343_v34 = vpop.f32.mrf.mxu1 }
  0xe7   :  { %v295_v41 = vadd.f32 %v517_v35, %v460_v36 }
  0xe8   :  { %v519_v37 = vpop.f32.mrf.mxu0  ;;  %v556_v38 = vpop.f32.mrf.mxu1 }
  0xe9   :  { %v520_v39 = vadd.f32 %v519_v37, %v518_v33  ;;  %v344_v48 = vadd.f32 %v343_v34, %v295_v41  ;;  %v400_v34 = vld [vmem:[%s744_s4] sm:$0x1] }
  0xea   :  { %v521_v40 = vpop.f32.mrf.mxu0  ;;  %v346_v43 = vpop.f32.mrf.mxu1 }
  0xeb   :  { %v298_v42 = vadd.f32 %v520_v39, %v460_v36  ;;  %v359_v54 = vsel %vm358_vm0, %v344_v48, 0.0 }
  0xec   :  { %v522_v44 = vpop.f32.mrf.mxu0 }
  0xed   :  { %v347_v45 = vadd.f32 %v346_v43, %v298_v42  ;;  %v523_v46 = vadd.f32 %v522_v44, %v521_v40 }
  0xee   :  { %v524_v47 = vpop.f32.mrf.mxu0 }
  0xef   :  { %v303_v49 = vadd.f32 %v523_v46, %v460_v36  ;;  %v360_v51 = vsel %vm358_vm0, %v347_v45, 0.0 }
  0xf0   :  { %v525_v50 = vpop.f32.mrf.mxu0  ;;  %v361_v57 = vadd.f32 %v360_v51, %v359_v54 }
  0xf1   :  { %v352_v52 = vadd.f32 %v555_v32, %v303_v49  ;;  %v526_v53 = vadd.f32 %v525_v50, %v524_v47 }
  0xf3   :  { %v362_v55 = vsel %vm358_vm0, %v352_v52, 0.0  ;;  %v306_v56 = vadd.f32 %v526_v53, %v460_v36 }
  0xf4   :  { %v363_v59 = vadd.f32 %v362_v55, %v361_v57 }
  0xf5   :  { %v355_v58 = vadd.f32 %v556_v38, %v306_v56 }
  0xf7   :  { %v364_v60 = vsel %vm358_vm0, %v355_v58, 0.0 }
  0xf8   :  { %v365_v61 = vadd.f32 %v364_v60, %v363_v59 }
  0xfa   :  { %v366_v62 = vrot.slane %v365_v61, 4 }
  0xfc   :  { %v367_v63 = vadd.f32 %v366_v62, %v365_v61 }
  0xfe   :  { %v368_v0 = vrot.slane %v367_v63, 2 }
 0x100   :  { %v369_v1 = vadd.f32 %v368_v0, %v367_v63 }
 0x102   :  { %v370_v2 = vrot.slane %v369_v1, 1 }
 0x104   :  { %v371_v3 = vadd.f32 %v370_v2, %v369_v1 }
 0x106   :  { %v373_v4 = vmul.f32 0.03125, %v371_v3 }
 0x108   :  { %v374_v5 = vsub.f32 %v344_v48, %v373_v4  ;;  %v375_v6 = vsub.f32 %v347_v45, %v373_v4  ;;  %v376_v7 = vsub.f32 %v352_v52, %v373_v4  ;;  %v377_v8 = vsub.f32 %v355_v58, %v373_v4 }
 0x10a   :  { %v378_v9 = vmul.f32 %v374_v5, %v374_v5  ;;  %v379_v10 = vmul.f32 %v375_v6, %v375_v6  ;;  %v380_v11 = vmul.f32 %v376_v7, %v376_v7  ;;  %v381_v12 = vmul.f32 %v377_v8, %v377_v8 }
 0x10c   :  { %v382_v13 = vsel %vm358_vm0, %v378_v9, 0.0  ;;  %v383_v14 = vsel %vm358_vm0, %v379_v10, 0.0  ;;  %v385_v16 = vsel %vm358_vm0, %v380_v11, 0.0  ;;  %v387_v18 = vsel %vm358_vm0, %v381_v12, 0.0 }
 0x10d   :  { %v384_v15 = vadd.f32 %v383_v14, %v382_v13 }
 0x10f   :  { %v386_v17 = vadd.f32 %v385_v16, %v384_v15 }
 0x111   :  { %v388_v19 = vadd.f32 %v387_v18, %v386_v17 }
 0x113   :  { %v389_v20 = vrot.slane %v388_v19, 4 }
 0x115   :  { %v390_v21 = vadd.f32 %v389_v20, %v388_v19 }
 0x117   :  { %v391_v22 = vrot.slane %v390_v21, 2 }
 0x119   :  { %v392_v23 = vadd.f32 %v391_v22, %v390_v21 }
 0x11b   :  { %v393_v24 = vrot.slane %v392_v23, 1 }
 0x11d   :  { %v394_v25 = vadd.f32 %v393_v24, %v392_v23 }
 0x11f   :  { %v395_v26 = vmul.f32 0.03125, %v394_v25 }
 0x121   :  { %v397_v27 = vadd.f32 1e-05, %v395_v26 }
 0x123   :  { %589 = vrsqrt.f32 %v397_v27 }
 0x130   :  { %v590_v32 = vpop.eup %589 }
 0x131   :  { %v399_v33 = vmul.f32 %v590_v32, %v396_v30 }
 0x133   :  { %v401_v35 = vmul.f32 %v399_v33, %v373_v4  ;;  %v407_v36 = vrot.slane %v399_v33, %v406_v31 }
 0x135   :  { %v402_v37 = vsub.f32 %v400_v34, %v401_v35  ;;  %v409_v38 = vmul.f32 %v407_v36, %v344_v48  ;;  %v410_v39 = vmul.f32 %v407_v36, %v347_v45  ;;  %v411_v40 = vmul.f32 %v407_v36, %v352_v52 }
 0x136   :  { %v412_v41 = vmul.f32 %v407_v36, %v355_v58 }
 0x137   :  { %v417_v42 = vrot.slane %v402_v37, %v406_v31 }
 0x139   :  { %v419_v43 = vadd.f32 %v417_v42, %v409_v38  ;;  %v420_v44 = vadd.f32 %v417_v42, %v410_v39  ;;  %v421_v46 = vadd.f32 %v417_v42, %v411_v40  ;;  %v422_v47 = vadd.f32 %v417_v42, %v412_v41 }
 0x13b   :  { %vm423_vm1 = vcmp.ge.f32.partialorder %v419_v43, 0.0  ;;  %vm424_vm2 = vcmp.ge.f32.partialorder %v420_v44, 0.0  ;;  %vm425_vm3 = vcmp.ge.f32.partialorder %v421_v46, 0.0  ;;  %vm426_vm4 = vcmp.ge.f32.partialorder %v422_v47, 0.0 }
 0x13c   :  { %v427_v49 = vmul.f32 0.2, %v419_v43  ;;  %v428_v50 = vmul.f32 0.2, %v420_v44  ;;  %v429_v51 = vmul.f32 0.2, %v421_v46 }
 0x13d   :  { %v430_v53 = vmul.f32 0.2, %v422_v47 }
 0x13e   :  { %v431_v54 = vsel %vm423_vm1, %v419_v43, %v427_v49  ;;  %v432_v55 = vsel %vm424_vm2, %v420_v44, %v428_v50  ;;  %v433_v56 = vsel %vm425_vm3, %v421_v46, %v429_v51 }
 0x13f   :  { %v434_v45 = vsel %vm426_vm4, %v422_v47, %v430_v53  ;;  %v495_v48 = vpack.c.bf16 %v431_v54, %v431_v54  ;;  %v496_v52 = vpack.c.bf16 %v432_v55, %v432_v55  ;;  %v497_v57 = vpack.c.bf16 %v433_v56, %v433_v56 }
 0x140   :  { %v498_v58 = vpack.c.bf16 %v434_v45, %v434_v45 }
 0x141   :  { %452 = vst.msk [vmem:[%s745_s5] sm:$0xf] %vm451_vm5, %v495_v48  ;;  %453 = vst.msk [vmem:[%s745_s5 + $0x4] sm:$0xf] %vm451_vm5, %v496_v52 }
 0x142   :  { %454 = vst.msk [vmem:[%s745_s5 + $0x8] sm:$0xf] %vm451_vm5, %v497_v57  ;;  %455 = vst.msk [vmem:[%s745_s5 + $0xc] sm:$0xf] %vm451_vm5, %v498_v58 }

// kernel: discriminator_forward.5
= control target key start
LH: loop header
LB: loop body
LE: loop exit
PB: predicated region body
PF: predicated region fallthrough
CT: control target
= control target key end

     0   :  { %vm3012_vm0 = vcmask 523264   ;;  %vm3056_vm1 = vcmask 7168   ;;  %s5401_s1 = inlined_call_operand.vmem [shape: bf16[768,768], index: 1, kind: input, shape index: {}]   ;;  %s5402_s0 = inlined_call_operand.vmem [shape: bf16[8,768], index: 0, kind: input, shape index: {}]   ;;  %s5403_s3 = inlined_call_operand.vmem [shape: bf16[768,192], index: 3, kind: input, shape index: {}]   ;;  %s5404_s2 = inlined_call_operand.vmem [shape: f32[1,768], index: 2, kind: input, shape index: {}]   ;;  %s5405_s5 = inlined_call_operand.vmem [shape: bf16[192,1], index: 5, kind: input, shape index: {}]   ;;  %s5406_s4 = inlined_call_operand.vmem [shape: f32[1,192], index: 4, kind: input, shape index: {}]   ;;  %s5407_s6 = inlined_call_operand.<no memory space> [shape: f32[1,1], index: 6, kind: input, shape index: {}]   ;;  %s5408_s7 = inlined_call_operand.vmem [shape: f32[8,1], index: 7, kind: output, shape index: {}]  }
   0x1   :  { %v3467_v0 = vld [vmem:[%s5401_s1 + $0x154] ss:$24 sps:$4 sm:$0xff]   ;;  %v3469_v1 = vld [vmem:[%s5401_s1 + $0x150] ss:$24 sps:$4 sm:$0xff]   ;;  %v3473_v4 = vld [vmem:[%s5401_s1 + $0x124] ss:$24 sps:$4 sm:$0xff]  }
   0x2   :  { %1813 = vmatprep.subr.bf16.mxu0 %v3467_v0  ;;  %v3470_v2 = vld [vmem:[%s5401_s1 + $0x454] ss:$24 sps:$4 sm:$0xff]   ;;  %v3472_v3 = vld [vmem:[%s5401_s1 + $0x450] ss:$24 sps:$4 sm:$0xff]   ;;  %v3475_v5 = vld [vmem:[%s5401_s1 + $0x120] ss:$24 sps:$4 sm:$0xff]  }
   0x3   :  { %1814 = vmatpush1.bf16.msra.mxu0 %v3469_v1  ;;  %1854 = vmatprep.subr.bf16.mxu1 %v3470_v2  ;;  %v3476_v6 = vld [vmem:[%s5401_s1 + $0x424] ss:$24 sps:$4 sm:$0xff]   ;;  %v3478_v7 = vld [vmem:[%s5401_s1 + $0x420] ss:$24 sps:$4 sm:$0xff]   ;;  %v3479_v8 = vld [vmem:[%s5401_s1 + $0xf4] ss:$24 sps:$4 sm:$0xff]  }
   0x4   :  { %1855 = vmatpush1.bf16.msra.mxu1 %v3472_v3  ;;  %1815 = vmatprep.subr.bf16.mxu0 %v3473_v4  ;;  %v3481_v9 = vld [vmem:[%s5401_s1 + $0xf0] ss:$24 sps:$4 sm:$0xff]   ;;  %v3482_v10 = vld [vmem:[%s5401_s1 + $0x3f4] ss:$24 sps:$4 sm:$0xff]   ;;  %v3485_v11 = vld [vmem:[%s5401_s1 + $0xc4] ss:$24 sps:$4 sm:$0xff]  }
   0x5   :  { %1856 = vmatprep.subr.bf16.mxu1 %v3476_v6  ;;  %v3484_v12 = vld [vmem:[%s5401_s1 + $0x3f0] ss:$24 sps:$4 sm:$0xff]   ;;  %v3488_v13 = vld [vmem:[%s5401_s1 + $0x3c4] ss:$24 sps:$4 sm:$0xff]   ;;  %v3487_v14 = vld [vmem:[%s5401_s1 + $0xc0] ss:$24 sps:$4 sm:$0xff]  }
   0x6   :  { %v3491_v15 = vld [vmem:[%s5401_s1 + $0x94] ss:$24 sps:$4 sm:$0xff]   ;;  %v3490_v16 = vld [vmem:[%s5401_s1 + $0x3c0] ss:$24 sps:$4 sm:$0xff]   ;;  %v3493_v18 = vld [vmem:[%s5401_s1 + $0x90] ss:$24 sps:$4 sm:$0xff]  }
   0x7   :  { %1816 = vmatpush1.bf16.msra.mxu0 %v3475_v5  ;;  %v3494_v17 = vld [vmem:[%s5401_s1 + $0x394] ss:$24 sps:$4 sm:$0xff]   ;;  %v3497_v19 = vld [vmem:[%s5401_s1 + $0x64] ss:$24 sps:$4 sm:$0xff]   ;;  %v3496_v20 = vld [vmem:[%s5401_s1 + $0x390] ss:$24 sps:$4 sm:$0xff]  }
   0x8   :  { %1817 = vmatprep.subr.bf16.mxu0 %v3479_v8  ;;  %1857 = vmatpush1.bf16.msra.mxu1 %v3478_v7  ;;  %v3500_v21 = vld [vmem:[%s5401_s1 + $0x364] ss:$24 sps:$4 sm:$0xff]   ;;  %v3499_v22 = vld [vmem:[%s5401_s1 + $0x60] ss:$24 sps:$4 sm:$0xff]   ;;  %v3503_v23 = vld [vmem:[%s5401_s1 + $0x34] ss:$24 sps:$4 sm:$0xff]  }
   0x9   :  { %1858 = vmatprep.subr.bf16.mxu1 %v3482_v10  ;;  %v3502_v24 = vld [vmem:[%s5401_s1 + $0x360] ss:$24 sps:$4 sm:$0xff]   ;;  %v3506_v25 = vld [vmem:[%s5401_s1 + $0x334] ss:$24 sps:$4 sm:$0xff]   ;;  %v3505_v26 = vld [vmem:[%s5401_s1 + $0x30] ss:$24 sps:$4 sm:$0xff]  }
   0xa   :  { %v3509_v27 = vld [vmem:[%s5401_s1 + $0x4] ss:$24 sps:$4 sm:$0xff]   ;;  %v3508_v28 = vld [vmem:[%s5401_s1 + $0x330] ss:$24 sps:$4 sm:$0xff]   ;;  %v3511_v30 = vld [vmem:[%s5401_s1] ss:$24 sps:$4 sm:$0xff]  }
   0xb   :  { %1818 = vmatpush1.bf16.msra.mxu0 %v3481_v9  ;;  %v3512_v29 = vld [vmem:[%s5401_s1 + $0x304] ss:$24 sps:$4 sm:$0xff]   ;;  %v3515_v31 = vld [vmem:[%s5401_s1 + $0x2d4] ss:$24 sps:$4 sm:$0xff]   ;;  %v3514_v32 = vld [vmem:[%s5401_s1 + $0x300] ss:$24 sps:$4 sm:$0xff]  }
   0xc   :  { %1819 = vmatprep.subr.bf16.mxu0 %v3485_v11  ;;  %1859 = vmatpush1.bf16.msra.mxu1 %v3484_v12  ;;  %v3518_v33 = vld [vmem:[%s5401_s1 + $0x5d4] ss:$24 sps:$4 sm:$0xff]   ;;  %v3517_v34 = vld [vmem:[%s5401_s1 + $0x2d0] ss:$24 sps:$4 sm:$0xff]   ;;  %v3521_v35 = vld [vmem:[%s5401_s1 + $0x2a4] ss:$24 sps:$4 sm:$0xff]  }
   0xd   :  { %1860 = vmatprep.subr.bf16.mxu1 %v3488_v13  ;;  %v3520_v36 = vld [vmem:[%s5401_s1 + $0x5d0] ss:$24 sps:$4 sm:$0xff]   ;;  %v3524_v37 = vld [vmem:[%s5401_s1 + $0x5a4] ss:$24 sps:$4 sm:$0xff]   ;;  %v3523_v38 = vld [vmem:[%s5401_s1 + $0x2a0] ss:$24 sps:$4 sm:$0xff]  }
   0xe   :  { %v3527_v39 = vld [vmem:[%s5401_s1 + $0x274] ss:$24 sps:$4 sm:$0xff]   ;;  %v3526_v40 = vld [vmem:[%s5401_s1 + $0x5a0] ss:$24 sps:$4 sm:$0xff]   ;;  %v3529_v42 = vld [vmem:[%s5401_s1 + $0x270] ss:$24 sps:$4 sm:$0xff]  }
   0xf   :  { %1820 = vmatpush1.bf16.msra.mxu0 %v3487_v14  ;;  %v3530_v41 = vld [vmem:[%s5401_s1 + $0x574] ss:$24 sps:$4 sm:$0xff]   ;;  %v3533_v43 = vld [vmem:[%s5401_s1 + $0x244] ss:$24 sps:$4 sm:$0xff]   ;;  %v3532_v44 = vld [vmem:[%s5401_s1 + $0x570] ss:$24 sps:$4 sm:$0xff]  }
  0x10   :  { %1821 = vmatprep.subr.bf16.mxu0 %v3491_v15  ;;  %1861 = vmatpush1.bf16.msra.mxu1 %v3490_v16  ;;  %v3536_v45 = vld [vmem:[%s5401_s1 + $0x544] ss:$24 sps:$4 sm:$0xff]   ;;  %v3535_v47 = vld [vmem:[%s5401_s1 + $0x240] ss:$24 sps:$4 sm:$0xff]   ;;  %v3539_v49 = vld [vmem:[%s5401_s1 + $0x214] ss:$24 sps:$4 sm:$0xff]  }
  0x11   :  { %1862 = vmatprep.subr.bf16.mxu1 %v3494_v17  ;;  %v29_v46 = vld [vmem:[%s5402_s0] sm:$0xff]  ;;  %v30_v50 = vld [vmem:[%s5402_s0 + $0x8] sm:$0xff]  ;;  %v3572_v6 = vld [vmem:[%s5401_s1 + $0x15c] ss:$24 sps:$4 sm:$0xff]  }
  0x12   :  { %v4246_v48 = vcombine.high %v29_v46, %v29_v46  ;;  %v3538_v51 = vld [vmem:[%s5401_s1 + $0x540] ss:$24 sps:$4 sm:$0xff]   ;;  %v4258_v52 = vcombine.high %v30_v50, %v30_v50  ;;  %v3542_v53 = vld [vmem:[%s5401_s1 + $0x514] ss:$24 sps:$4 sm:$0xff]   ;;  %v3541_v54 = vld [vmem:[%s5401_s1 + $0x210] ss:$24 sps:$4 sm:$0xff]   ;;  %v4309_v5 = vcombine.low %v29_v46, %v29_v46  ;;  %v4317_v8 = vcombine.low %v30_v50, %v30_v50 }
  0x13   :  { %1822 = vmatpush1.bf16.msra.mxu0 %v3493_v18  ;;  %v3545_v55 = vld [vmem:[%s5401_s1 + $0x1e4] ss:$24 sps:$4 sm:$0xff]   ;;  %v3544_v56 = vld [vmem:[%s5401_s1 + $0x510] ss:$24 sps:$4 sm:$0xff]   ;;  %v3547_v58 = vld [vmem:[%s5401_s1 + $0x1e0] ss:$24 sps:$4 sm:$0xff]  }
  0x14   :  { %1823 = vmatprep.subr.bf16.mxu0 %v3497_v19  ;;  %1863 = vmatpush1.bf16.msra.mxu1 %v3496_v20  ;;  %v3548_v57 = vld [vmem:[%s5401_s1 + $0x4e4] ss:$24 sps:$4 sm:$0xff]   ;;  %v3551_v59 = vld [vmem:[%s5401_s1 + $0x1b4] ss:$24 sps:$4 sm:$0xff]   ;;  %v3550_v60 = vld [vmem:[%s5401_s1 + $0x4e0] ss:$24 sps:$4 sm:$0xff]  }
  0x15   :  { %1864 = vmatprep.subr.bf16.mxu1 %v3500_v21  ;;  %1845 = vmatprep.mubr.bf16.mxu0 %v4246_v48  ;;  %v3554_v61 = vld [vmem:[%s5401_s1 + $0x4b4] ss:$24 sps:$4 sm:$0xff]   ;;  %v3553_v62 = vld [vmem:[%s5401_s1 + $0x1b0] ss:$24 sps:$4 sm:$0xff]   ;;  %v3557_v63 = vld [vmem:[%s5401_s1 + $0x184] ss:$24 sps:$4 sm:$0xff]  }
  0x16   :  { %1886 = vmatprep.mubr.bf16.mxu1 %v4258_v52  ;;  %v3556_v0 = vld [vmem:[%s5401_s1 + $0x4b0] ss:$24 sps:$4 sm:$0xff]   ;;  %v3560_v1 = vld [vmem:[%s5401_s1 + $0x484] ss:$24 sps:$4 sm:$0xff]   ;;  %v3559_v2 = vld [vmem:[%s5401_s1 + $0x180] ss:$24 sps:$4 sm:$0xff]  }
  0x17   :  { %1824 = vmatpush1.bf16.msra.mxu0 %v3499_v22  ;;  %v3567_v3 = vld [vmem:[%s5401_s1 + $0x754] ss:$24 sps:$4 sm:$0xff]   ;;  %v3563_v4 = vld [vmem:[%s5401_s1 + $0x480] ss:$24 sps:$4 sm:$0xff]   ;;  %v3565_v7 = vld [vmem:[%s5401_s1 + $0x750] ss:$24 sps:$4 sm:$0xff]  }
  0x18   :  { %1825 = vmatprep.subr.bf16.mxu0 %v3503_v23  ;;  %1865 = vmatpush1.bf16.msra.mxu1 %v3502_v24  ;;  %v3575_v9 = vld [vmem:[%s5401_s1 + $0x724] ss:$24 sps:$4 sm:$0xff]   ;;  %v3570_v10 = vld [vmem:[%s5401_s1 + $0x158] ss:$24 sps:$4 sm:$0xff]   ;;  %v3581_v13 = vld [vmem:[%s5401_s1 + $0x6f4] ss:$24 sps:$4 sm:$0xff]  }
  0x19   :  { %1866 = vmatprep.subr.bf16.mxu1 %v3506_v25  ;;  %v3578_v11 = vld [vmem:[%s5401_s1 + $0x12c] ss:$24 sps:$4 sm:$0xff]   ;;  %v3573_v12 = vld [vmem:[%s5401_s1 + $0x720] ss:$24 sps:$4 sm:$0xff]   ;;  %v3584_v15 = vld [vmem:[%s5401_s1 + $0xfc] ss:$24 sps:$4 sm:$0xff]  }
  0x1a   :  { %v3576_v14 = vld [vmem:[%s5401_s1 + $0x128] ss:$24 sps:$4 sm:$0xff]   ;;  %v3587_v17 = vld [vmem:[%s5401_s1 + $0x6c4] ss:$24 sps:$4 sm:$0xff]   ;;  %v3582_v18 = vld [vmem:[%s5401_s1 + $0xf8] ss:$24 sps:$4 sm:$0xff]  }
  0x1b   :  { %1826 = vmatpush1.bf16.msra.mxu0 %v3505_v26  ;;  %v3579_v16 = vld [vmem:[%s5401_s1 + $0x6f0] ss:$24 sps:$4 sm:$0xff]   ;;  %v3590_v19 = vld [vmem:[%s5401_s1 + $0xcc] ss:$24 sps:$4 sm:$0xff]   ;;  %v3585_v20 = vld [vmem:[%s5401_s1 + $0x6c0] ss:$24 sps:$4 sm:$0xff]  }
  0x1c   :  { %1827 = vmatprep.subr.bf16.mxu0 %v3509_v27  ;;  %1867 = vmatpush1.bf16.msra.mxu1 %v3508_v28  ;;  %v3593_v21 = vld [vmem:[%s5401_s1 + $0x694] ss:$24 sps:$4 sm:$0xff]   ;;  %v3588_v22 = vld [vmem:[%s5401_s1 + $0xc8] ss:$24 sps:$4 sm:$0xff]   ;;  %v3599_v25 = vld [vmem:[%s5401_s1 + $0x664] ss:$24 sps:$4 sm:$0xff]  }
  0x1d   :  { %1868 = vmatprep.subr.bf16.mxu1 %v3512_v29  ;;  %v3596_v23 = vld [vmem:[%s5401_s1 + $0x9c] ss:$24 sps:$4 sm:$0xff]   ;;  %v3591_v24 = vld [vmem:[%s5401_s1 + $0x690] ss:$24 sps:$4 sm:$0xff]   ;;  %v3602_v27 = vld [vmem:[%s5401_s1 + $0x6c] ss:$24 sps:$4 sm:$0xff]  }
  0x1e   :  { %v3594_v26 = vld [vmem:[%s5401_s1 + $0x98] ss:$24 sps:$4 sm:$0xff]   ;;  %v3605_v29 = vld [vmem:[%s5401_s1 + $0x634] ss:$24 sps:$4 sm:$0xff]  }
  0x1f   :  { %1828 = vmatpush1.bf16.msra.mxu0 %v3511_v30  ;;  %v3597_v28 = vld [vmem:[%s5401_s1 + $0x660] ss:$24 sps:$4 sm:$0xff]   ;;  %v3632_v50 = vld [vmem:[%s5401_s1 + $0x27c] ss:$24 sps:$4 sm:$0xff]  }
  0x20   :  { %1829 = vmatprep.subr.bf16.mxu0 %v3515_v31  ;;  %1869 = vmatpush1.bf16.msra.mxu1 %v3514_v32  ;;  %v3600_v30 = vld [vmem:[%s5401_s1 + $0x68] ss:$24 sps:$4 sm:$0xff]   ;;  %v3608_v31 = vld [vmem:[%s5401_s1 + $0x3c] ss:$24 sps:$4 sm:$0xff]  }
  0x21   :  { %1870 = vmatprep.subr.bf16.mxu1 %v3518_v33  ;;  %v4394_v32 = vld [vmem:[%s5402_s0 + $0x10] sm:$0xff]  ;;  %v3621_v46 = vld [vmem:[%s5401_s1 + $0x8a0] ss:$24 sps:$4 sm:$0xff]  }
  0x22   :  { %v3603_v33 = vld [vmem:[%s5401_s1 + $0x630] ss:$24 sps:$4 sm:$0xff]  }
  0x23   :  { %1830 = vmatpush2.bf16.msra.mxu0 %v3517_v34  ;;  %v4401_v34 = vcombine.high %v4394_v32, %v4394_v32 }
  0x24   :  { %1831 = vmatprep.subr.bf16.mxu0 %v3521_v35  ;;  %1871 = vmatpush2.bf16.msra.mxu1 %v3520_v36  ;;  %v3611_v35 = vld [vmem:[%s5401_s1 + $0x604] ss:$24 sps:$4 sm:$0xff]   ;;  %v3606_v36 = vld [vmem:[%s5401_s1 + $0x38] ss:$24 sps:$4 sm:$0xff]  }
  0x25   :  { %1872 = vmatprep.subr.bf16.mxu1 %v3524_v37  ;;  %v3614_v37 = vld [vmem:[%s5401_s1 + $0xc] ss:$24 sps:$4 sm:$0xff]  }
  0x27   :  { %1832 = vmatpush2.bf16.msra.mxu0 %v3523_v38  ;;  %v3609_v38 = vld [vmem:[%s5401_s1 + $0x600] ss:$24 sps:$4 sm:$0xff]  }
  0x28   :  { %1833 = vmatprep.subr.bf16.mxu0 %v3527_v39  ;;  %1873 = vmatpush2.bf16.msra.mxu1 %v3526_v40  ;;  %v3617_v39 = vld [vmem:[%s5401_s1 + $0x8d4] ss:$24 sps:$4 sm:$0xff]   ;;  %v3612_v40 = vld [vmem:[%s5401_s1 + $0x8] ss:$24 sps:$4 sm:$0xff]  }
  0x29   :  { %1874 = vmatprep.subr.bf16.mxu1 %v3530_v41  ;;  %v3620_v41 = vld [vmem:[%s5401_s1 + $0x2dc] ss:$24 sps:$4 sm:$0xff]  }
  0x2b   :  { %1834 = vmatpush2.bf16.msra.mxu0 %v3529_v42  ;;  %v3615_v42 = vld [vmem:[%s5401_s1 + $0x8d0] ss:$24 sps:$4 sm:$0xff]  }
  0x2c   :  { %1835 = vmatprep.subr.bf16.mxu0 %v3533_v43  ;;  %1875 = vmatpush2.bf16.msra.mxu1 %v3532_v44  ;;  %v3623_v43 = vld [vmem:[%s5401_s1 + $0x8a4] ss:$24 sps:$4 sm:$0xff]   ;;  %v3618_v44 = vld [vmem:[%s5401_s1 + $0x2d8] ss:$24 sps:$4 sm:$0xff]  }
  0x2d   :  { %1876 = vmatprep.subr.bf16.mxu1 %v3536_v45  ;;  %v3626_v45 = vld [vmem:[%s5401_s1 + $0x2ac] ss:$24 sps:$4 sm:$0xff]  }
  0x2f   :  { %1836 = vmatpush2.bf16.msra.mxu0 %v3535_v47  ;;  %v3629_v47 = vld [vmem:[%s5401_s1 + $0x874] ss:$24 sps:$4 sm:$0xff]  }
  0x30   :  { %1837 = vmatprep.subr.bf16.mxu0 %v3539_v49  ;;  %1877 = vmatpush2.bf16.msra.mxu1 %v3538_v51  ;;  %v3624_v49 = vld [vmem:[%s5401_s1 + $0x2a8] ss:$24 sps:$4 sm:$0xff]  }
  0x31   :  { %1878 = vmatprep.subr.bf16.mxu1 %v3542_v53  ;;  %v3627_v51 = vld [vmem:[%s5401_s1 + $0x870] ss:$24 sps:$4 sm:$0xff]   ;;  %v3635_v53 = vld [vmem:[%s5401_s1 + $0x844] ss:$24 sps:$4 sm:$0xff]  }
  0x33   :  { %1838 = vmatpush2.bf16.msra.mxu0 %v3541_v54  ;;  %v3630_v54 = vld [vmem:[%s5401_s1 + $0x278] ss:$24 sps:$4 sm:$0xff]  }
  0x34   :  { %1839 = vmatprep.subr.bf16.mxu0 %v3545_v55  ;;  %1879 = vmatpush2.bf16.msra.mxu1 %v3544_v56  ;;  %v3638_v55 = vld [vmem:[%s5401_s1 + $0x24c] ss:$24 sps:$4 sm:$0xff]   ;;  %v3633_v56 = vld [vmem:[%s5401_s1 + $0x840] ss:$24 sps:$4 sm:$0xff]  }
  0x35   :  { %1880 = vmatprep.subr.bf16.mxu1 %v3548_v57  ;;  %v3641_v57 = vld [vmem:[%s5401_s1 + $0x814] ss:$24 sps:$4 sm:$0xff]  }
  0x37   :  { %1840 = vmatpush2.bf16.msra.mxu0 %v3547_v58  ;;  %v3636_v58 = vld [vmem:[%s5401_s1 + $0x248] ss:$24 sps:$4 sm:$0xff]  }
  0x38   :  { %1841 = vmatprep.subr.bf16.mxu0 %v3551_v59  ;;  %1881 = vmatpush2.bf16.msra.mxu1 %v3550_v60  ;;  %v3644_v59 = vld [vmem:[%s5401_s1 + $0x21c] ss:$24 sps:$4 sm:$0xff]   ;;  %v3639_v60 = vld [vmem:[%s5401_s1 + $0x810] ss:$24 sps:$4 sm:$0xff]  }
  0x39   :  { %1882 = vmatprep.subr.bf16.mxu1 %v3554_v61  ;;  %v3647_v61 = vld [vmem:[%s5401_s1 + $0x7e4] ss:$24 sps:$4 sm:$0xff]  }
  0x3b   :  { %1842 = vmatpush2.bf16.msra.mxu0 %v3553_v62  ;;  %v3642_v62 = vld [vmem:[%s5401_s1 + $0x218] ss:$24 sps:$4 sm:$0xff]  }
  0x3c   :  { %1843 = vmatprep.subr.bf16.mxu0 %v3557_v63  ;;  %1883 = vmatpush2.bf16.msra.mxu1 %v3556_v0  ;;  %v3650_v63 = vld [vmem:[%s5401_s1 + $0x1ec] ss:$24 sps:$4 sm:$0xff]   ;;  %v3645_v0 = vld [vmem:[%s5401_s1 + $0x7e0] ss:$24 sps:$4 sm:$0xff]  }
  0x3d   :  { %1884 = vmatprep.subr.bf16.mxu1 %v3560_v1  ;;  %v3653_v1 = vld [vmem:[%s5401_s1 + $0x7b4] ss:$24 sps:$4 sm:$0xff]  }
  0x3f   :  { %1844 = vmatpush2.bf16.msra.mxu0 %v3559_v2  ;;  %v3648_v2 = vld [vmem:[%s5401_s1 + $0x1e8] ss:$24 sps:$4 sm:$0xff]  }
  0x40   :  { %1895 = vmatprep.subr.bf16.mxu0 %v3567_v3  ;;  %1885 = vmatpush2.bf16.msra.mxu1 %v3563_v4  ;;  %v3656_v3 = vld [vmem:[%s5401_s1 + $0x1bc] ss:$24 sps:$4 sm:$0xff]   ;;  %v3651_v4 = vld [vmem:[%s5401_s1 + $0x7b0] ss:$24 sps:$4 sm:$0xff]  }
  0x41   :  { %1936 = vmatprep.subr.bf16.mxu1 %v3572_v6  ;;  %v3659_v6 = vld [vmem:[%s5401_s1 + $0x784] ss:$24 sps:$4 sm:$0xff]  }
  0x42   :  { %1846 = vmatmul.mubr.bf16.vlgmr.msra.gmra.mxu0 %v4309_v5 }
  0x43   :  { %1896 = vmatpush1.bf16.msra.mxu0 %v3565_v7  ;;  %1887 = vmatmul.mubr.bf16.vlgmr.msra.gmra.mxu1 %v4317_v8  ;;  %v3654_v7 = vld [vmem:[%s5401_s1 + $0x1b8] ss:$24 sps:$4 sm:$0xff]  }
  0x44   :  { %1897 = vmatprep.subr.bf16.mxu0 %v3575_v9  ;;  %1937 = vmatpush1.bf16.msra.mxu1 %v3570_v10  ;;  %v3662_v9 = vld [vmem:[%s5401_s1 + $0x18c] ss:$24 sps:$4 sm:$0xff]   ;;  %v3657_v10 = vld [vmem:[%s5401_s1 + $0x780] ss:$24 sps:$4 sm:$0xff]  }
  0x45   :  { %1968 = vmatprep.mubr.bf16.mxu1 %v4246_v48  ;;  %1938 = vmatprep.subr.bf16.mxu1 %v3578_v11  ;;  %v3667_v11 = vld [vmem:[%s5401_s1 + $0x45c] ss:$24 sps:$4 sm:$0xff]  }
  0x46   :  { %1927 = vmatprep.mubr.bf16.mxu0 %v4401_v34 }
  0x47   :  { %1898 = vmatpush1.bf16.msra.mxu0 %v3573_v12  ;;  %v3660_v12 = vld [vmem:[%s5401_s1 + $0x188] ss:$24 sps:$4 sm:$0xff]  }
  0x48   :  { %1899 = vmatprep.subr.bf16.mxu0 %v3581_v13  ;;  %1939 = vmatpush1.bf16.msra.mxu1 %v3576_v14  ;;  %v4520_v13 = vcombine.low %v4394_v32, %v4394_v32  ;;  %v3670_v14 = vld [vmem:[%s5401_s1 + $0x75c] ss:$24 sps:$4 sm:$0xff]   ;;  %v3697_v32 = vld [vmem:[%s5401_s1 + $0x36c] ss:$24 sps:$4 sm:$0xff]  }
  0x49   :  { %1940 = vmatprep.subr.bf16.mxu1 %v3584_v15  ;;  %v3665_v15 = vld [vmem:[%s5401_s1 + $0x458] ss:$24 sps:$4 sm:$0xff]  }
  0x4b   :  { %1900 = vmatpush1.bf16.msra.mxu0 %v3579_v16  ;;  %v3673_v16 = vld [vmem:[%s5401_s1 + $0x42c] ss:$24 sps:$4 sm:$0xff]  }
  0x4c   :  { %1901 = vmatprep.subr.bf16.mxu0 %v3587_v17  ;;  %1941 = vmatpush1.bf16.msra.mxu1 %v3582_v18  ;;  %v3668_v17 = vld [vmem:[%s5401_s1 + $0x758] ss:$24 sps:$4 sm:$0xff]   ;;  %v3676_v18 = vld [vmem:[%s5401_s1 + $0x72c] ss:$24 sps:$4 sm:$0xff]  }
  0x4d   :  { %1942 = vmatprep.subr.bf16.mxu1 %v3590_v19  ;;  %v3671_v19 = vld [vmem:[%s5401_s1 + $0x428] ss:$24 sps:$4 sm:$0xff]  }
  0x4f   :  { %1902 = vmatpush1.bf16.msra.mxu0 %v3585_v20  ;;  %v3679_v20 = vld [vmem:[%s5401_s1 + $0x3fc] ss:$24 sps:$4 sm:$0xff]  }
  0x50   :  { %1903 = vmatprep.subr.bf16.mxu0 %v3593_v21  ;;  %1943 = vmatpush1.bf16.msra.mxu1 %v3588_v22  ;;  %v3674_v21 = vld [vmem:[%s5401_s1 + $0x728] ss:$24 sps:$4 sm:$0xff]   ;;  %v3682_v22 = vld [vmem:[%s5401_s1 + $0x6fc] ss:$24 sps:$4 sm:$0xff]  }
  0x51   :  { %1944 = vmatprep.subr.bf16.mxu1 %v3596_v23  ;;  %v3677_v23 = vld [vmem:[%s5401_s1 + $0x3f8] ss:$24 sps:$4 sm:$0xff]  }
  0x53   :  { %1904 = vmatpush1.bf16.msra.mxu0 %v3591_v24  ;;  %v3685_v24 = vld [vmem:[%s5401_s1 + $0x3cc] ss:$24 sps:$4 sm:$0xff]  }
  0x54   :  { %1905 = vmatprep.subr.bf16.mxu0 %v3599_v25  ;;  %1945 = vmatpush1.bf16.msra.mxu1 %v3594_v26  ;;  %v3680_v25 = vld [vmem:[%s5401_s1 + $0x6f8] ss:$24 sps:$4 sm:$0xff]   ;;  %v3688_v26 = vld [vmem:[%s5401_s1 + $0x6cc] ss:$24 sps:$4 sm:$0xff]  }
  0x55   :  { %1946 = vmatprep.subr.bf16.mxu1 %v3602_v27  ;;  %v3683_v27 = vld [vmem:[%s5401_s1 + $0x3c8] ss:$24 sps:$4 sm:$0xff]  }
  0x57   :  { %1906 = vmatpush1.bf16.msra.mxu0 %v3597_v28  ;;  %v3691_v28 = vld [vmem:[%s5401_s1 + $0x39c] ss:$24 sps:$4 sm:$0xff]  }
  0x58   :  { %1907 = vmatprep.subr.bf16.mxu0 %v3605_v29  ;;  %1947 = vmatpush1.bf16.msra.mxu1 %v3600_v30  ;;  %v3686_v29 = vld [vmem:[%s5401_s1 + $0x6c8] ss:$24 sps:$4 sm:$0xff]   ;;  %v3694_v30 = vld [vmem:[%s5401_s1 + $0x69c] ss:$24 sps:$4 sm:$0xff]  }
  0x59   :  { %1948 = vmatprep.subr.bf16.mxu1 %v3608_v31  ;;  %v3689_v31 = vld [vmem:[%s5401_s1 + $0x398] ss:$24 sps:$4 sm:$0xff]  }
  0x5b   :  { %1908 = vmatpush1.bf16.msra.mxu0 %v3603_v33  ;;  %v3692_v33 = vld [vmem:[%s5401_s1 + $0x698] ss:$24 sps:$4 sm:$0xff]  }
  0x5c   :  { %1909 = vmatprep.subr.bf16.mxu0 %v3611_v35  ;;  %1949 = vmatpush1.bf16.msra.mxu1 %v3606_v36  ;;  %v3700_v35 = vld [vmem:[%s5401_s1 + $0x66c] ss:$24 sps:$4 sm:$0xff]   ;;  %v3695_v36 = vld [vmem:[%s5401_s1 + $0x368] ss:$24 sps:$4 sm:$0xff]  }
  0x5d   :  { %1950 = vmatprep.subr.bf16.mxu1 %v3614_v37  ;;  %v3703_v37 = vld [vmem:[%s5401_s1 + $0x33c] ss:$24 sps:$4 sm:$0xff]  }
  0x5f   :  { %1910 = vmatpush1.bf16.msra.mxu0 %v3609_v38  ;;  %v3698_v38 = vld [vmem:[%s5401_s1 + $0x668] ss:$24 sps:$4 sm:$0xff]  }
  0x60   :  { %1911 = vmatprep.subr.bf16.mxu0 %v3617_v39  ;;  %1951 = vmatpush1.bf16.msra.mxu1 %v3612_v40  ;;  %v3706_v39 = vld [vmem:[%s5401_s1 + $0x63c] ss:$24 sps:$4 sm:$0xff]   ;;  %v3701_v40 = vld [vmem:[%s5401_s1 + $0x338] ss:$24 sps:$4 sm:$0xff]  }
  0x61   :  { %1952 = vmatprep.subr.bf16.mxu1 %v3620_v41  ;;  %v3709_v41 = vld [vmem:[%s5401_s1 + $0x30c] ss:$24 sps:$4 sm:$0xff]  }
  0x63   :  { %1912 = vmatpush2.bf16.msra.mxu0 %v3615_v42  ;;  %v3704_v42 = vld [vmem:[%s5401_s1 + $0x638] ss:$24 sps:$4 sm:$0xff]  }
  0x64   :  { %1913 = vmatprep.subr.bf16.mxu0 %v3623_v43  ;;  %1953 = vmatpush2.bf16.msra.mxu1 %v3618_v44  ;;  %v3712_v43 = vld [vmem:[%s5401_s1 + $0x60c] ss:$24 sps:$4 sm:$0xff]   ;;  %v3707_v44 = vld [vmem:[%s5401_s1 + $0x308] ss:$24 sps:$4 sm:$0xff]  }
  0x65   :  { %1954 = vmatprep.subr.bf16.mxu1 %v3626_v45  ;;  %v3715_v45 = vld [vmem:[%s5401_s1 + $0x5dc] ss:$24 sps:$4 sm:$0xff]  }
  0x67   :  { %1914 = vmatpush2.bf16.msra.mxu0 %v3621_v46  ;;  %v3710_v46 = vld [vmem:[%s5401_s1 + $0x608] ss:$24 sps:$4 sm:$0xff]  }
  0x68   :  { %1915 = vmatprep.subr.bf16.mxu0 %v3629_v47  ;;  %1955 = vmatpush2.bf16.msra.mxu1 %v3624_v49  ;;  %v3718_v47 = vld [vmem:[%s5401_s1 + $0x8dc] ss:$24 sps:$4 sm:$0xff]   ;;  %v3713_v49 = vld [vmem:[%s5401_s1 + $0x5d8] ss:$24 sps:$4 sm:$0xff]  }
  0x69   :  { %1956 = vmatprep.subr.bf16.mxu1 %v3632_v50  ;;  %v3721_v50 = vld [vmem:[%s5401_s1 + $0x5ac] ss:$24 sps:$4 sm:$0xff]  }
  0x6b   :  { %1916 = vmatpush2.bf16.msra.mxu0 %v3627_v51  ;;  %v3716_v51 = vld [vmem:[%s5401_s1 + $0x8d8] ss:$24 sps:$4 sm:$0xff]  }
  0x6c   :  { %1917 = vmatprep.subr.bf16.mxu0 %v3635_v53  ;;  %1957 = vmatpush2.bf16.msra.mxu1 %v3630_v54  ;;  %v3724_v53 = vld [vmem:[%s5401_s1 + $0x8ac] ss:$24 sps:$4 sm:$0xff]   ;;  %v3719_v54 = vld [vmem:[%s5401_s1 + $0x5a8] ss:$24 sps:$4 sm:$0xff]  }
  0x6d   :  { %1958 = vmatprep.subr.bf16.mxu1 %v3638_v55  ;;  %v3727_v55 = vld [vmem:[%s5401_s1 + $0x57c] ss:$24 sps:$4 sm:$0xff]  }
  0x6f   :  { %1918 = vmatpush2.bf16.msra.mxu0 %v3633_v56  ;;  %v3722_v56 = vld [vmem:[%s5401_s1 + $0x8a8] ss:$24 sps:$4 sm:$0xff]  }
  0x70   :  { %1919 = vmatprep.subr.bf16.mxu0 %v3641_v57  ;;  %1959 = vmatpush2.bf16.msra.mxu1 %v3636_v58  ;;  %v3730_v57 = vld [vmem:[%s5401_s1 + $0x87c] ss:$24 sps:$4 sm:$0xff]   ;;  %v3725_v58 = vld [vmem:[%s5401_s1 + $0x578] ss:$24 sps:$4 sm:$0xff]  }
  0x71   :  { %1960 = vmatprep.subr.bf16.mxu1 %v3644_v59  ;;  %v3733_v59 = vld [vmem:[%s5401_s1 + $0x54c] ss:$24 sps:$4 sm:$0xff]  }
  0x73   :  { %1920 = vmatpush2.bf16.msra.mxu0 %v3639_v60  ;;  %v3728_v60 = vld [vmem:[%s5401_s1 + $0x878] ss:$24 sps:$4 sm:$0xff]  }
  0x74   :  { %1921 = vmatprep.subr.bf16.mxu0 %v3647_v61  ;;  %1961 = vmatpush2.bf16.msra.mxu1 %v3642_v62  ;;  %v3736_v61 = vld [vmem:[%s5401_s1 + $0x84c] ss:$24 sps:$4 sm:$0xff]   ;;  %v3731_v62 = vld [vmem:[%s5401_s1 + $0x548] ss:$24 sps:$4 sm:$0xff]  }
  0x75   :  { %1962 = vmatprep.subr.bf16.mxu1 %v3650_v63  ;;  %v3739_v63 = vld [vmem:[%s5401_s1 + $0x51c] ss:$24 sps:$4 sm:$0xff]  }
  0x77   :  { %1922 = vmatpush2.bf16.msra.mxu0 %v3645_v0  ;;  %v3734_v0 = vld [vmem:[%s5401_s1 + $0x848] ss:$24 sps:$4 sm:$0xff]  }
  0x78   :  { %1923 = vmatprep.subr.bf16.mxu0 %v3653_v1  ;;  %1963 = vmatpush2.bf16.msra.mxu1 %v3648_v2  ;;  %v3742_v1 = vld [vmem:[%s5401_s1 + $0x81c] ss:$24 sps:$4 sm:$0xff]   ;;  %v3737_v2 = vld [vmem:[%s5401_s1 + $0x518] ss:$24 sps:$4 sm:$0xff]  }
  0x79   :  { %1964 = vmatprep.subr.bf16.mxu1 %v3656_v3  ;;  %v3745_v3 = vld [vmem:[%s5401_s1 + $0x4ec] ss:$24 sps:$4 sm:$0xff]  }
  0x7b   :  { %1924 = vmatpush2.bf16.msra.mxu0 %v3651_v4  ;;  %v3740_v4 = vld [vmem:[%s5401_s1 + $0x818] ss:$24 sps:$4 sm:$0xff]  }
  0x7c   :  { %1925 = vmatprep.subr.bf16.mxu0 %v3659_v6  ;;  %1965 = vmatpush2.bf16.msra.mxu1 %v3654_v7  ;;  %v3748_v6 = vld [vmem:[%s5401_s1 + $0x7ec] ss:$24 sps:$4 sm:$0xff]   ;;  %v3743_v7 = vld [vmem:[%s5401_s1 + $0x4e8] ss:$24 sps:$4 sm:$0xff]  }
  0x7d   :  { %1966 = vmatprep.subr.bf16.mxu1 %v3662_v9  ;;  %v3751_v9 = vld [vmem:[%s5401_s1 + $0x4bc] ss:$24 sps:$4 sm:$0xff]  }
  0x7f   :  { %1926 = vmatpush2.bf16.msra.mxu0 %v3657_v10  ;;  %v3746_v10 = vld [vmem:[%s5401_s1 + $0x7e8] ss:$24 sps:$4 sm:$0xff]  }
  0x80   :  { %1977 = vmatprep.subr.bf16.mxu0 %v3667_v11  ;;  %1967 = vmatpush2.bf16.msra.mxu1 %v3660_v12  ;;  %v3754_v11 = vld [vmem:[%s5401_s1 + $0x7bc] ss:$24 sps:$4 sm:$0xff]   ;;  %v3749_v12 = vld [vmem:[%s5401_s1 + $0x4b8] ss:$24 sps:$4 sm:$0xff]  }
  0x81   :  { %2018 = vmatprep.subr.bf16.mxu1 %v3670_v14  ;;  %v3757_v14 = vld [vmem:[%s5401_s1 + $0x48c] ss:$24 sps:$4 sm:$0xff]  }
  0x82   :  { %1928 = vmatmul.mubr.bf16.vlgmr.msra.gmra.mxu0 %v4520_v13 }
  0x83   :  { %1978 = vmatpush1.bf16.msra.mxu0 %v3665_v15  ;;  %2009 = vmatprep.mubr.bf16.mxu0 %v4258_v52  ;;  %v3752_v15 = vld [vmem:[%s5401_s1 + $0x7b8] ss:$24 sps:$4 sm:$0xff]  }
  0x84   :  { %1969 = vmatmul.mubr.bf16.vlgmr.msra.gmra.mxu1 %v4309_v5  ;;  %1979 = vmatprep.subr.bf16.mxu0 %v3673_v16  ;;  %v3760_v16 = vld [vmem:[%s5401_s1 + $0x78c] ss:$24 sps:$4 sm:$0xff]  }
  0x85   :  { %2019 = vmatpush1.bf16.msra.mxu1 %v3668_v17  ;;  %2050 = vmatprep.mubr.bf16.mxu1 %v4401_v34  ;;  %v3755_v17 = vld [vmem:[%s5401_s1 + $0x488] ss:$24 sps:$4 sm:$0xff]  }
  0x86   :  { %2020 = vmatprep.subr.bf16.mxu1 %v3676_v18  ;;  %v3763_v18 = vld [vmem:[%s5401_s1 + $0x164] ss:$24 sps:$4 sm:$0xff]  }
  0x87   :  { %1980 = vmatpush1.bf16.msra.mxu0 %v3671_v19  ;;  %v3758_v19 = vld [vmem:[%s5401_s1 + $0x788] ss:$24 sps:$4 sm:$0xff]  }
  0x88   :  { %1981 = vmatprep.subr.bf16.mxu0 %v3679_v20  ;;  %v3766_v20 = vld [vmem:[%s5401_s1 + $0x464] ss:$24 sps:$4 sm:$0xff]  }
  0x89   :  { %2021 = vmatpush1.bf16.msra.mxu1 %v3674_v21  ;;  %v3761_v21 = vld [vmem:[%s5401_s1 + $0x160] ss:$24 sps:$4 sm:$0xff]  }
  0x8a   :  { %2022 = vmatprep.subr.bf16.mxu1 %v3682_v22  ;;  %v3769_v22 = vld [vmem:[%s5401_s1 + $0x134] ss:$24 sps:$4 sm:$0xff]  }
  0x8b   :  { %1982 = vmatpush1.bf16.msra.mxu0 %v3677_v23  ;;  %v3764_v23 = vld [vmem:[%s5401_s1 + $0x460] ss:$24 sps:$4 sm:$0xff]  }
  0x8c   :  { %1983 = vmatprep.subr.bf16.mxu0 %v3685_v24  ;;  %v3772_v24 = vld [vmem:[%s5401_s1 + $0x434] ss:$24 sps:$4 sm:$0xff]  }
  0x8d   :  { %2023 = vmatpush1.bf16.msra.mxu1 %v3680_v25  ;;  %v3767_v25 = vld [vmem:[%s5401_s1 + $0x130] ss:$24 sps:$4 sm:$0xff]  }
  0x8e   :  { %2024 = vmatprep.subr.bf16.mxu1 %v3688_v26  ;;  %v3775_v26 = vld [vmem:[%s5401_s1 + $0x104] ss:$24 sps:$4 sm:$0xff]  }
  0x8f   :  { %1984 = vmatpush1.bf16.msra.mxu0 %v3683_v27  ;;  %v3770_v27 = vld [vmem:[%s5401_s1 + $0x430] ss:$24 sps:$4 sm:$0xff]  }
  0x90   :  { %1985 = vmatprep.subr.bf16.mxu0 %v3691_v28  ;;  %v3778_v28 = vld [vmem:[%s5401_s1 + $0x404] ss:$24 sps:$4 sm:$0xff]  }
  0x91   :  { %2025 = vmatpush1.bf16.msra.mxu1 %v3686_v29  ;;  %v3781_v29 = vld [vmem:[%s5401_s1 + $0xd4] ss:$24 sps:$4 sm:$0xff]  }
  0x92   :  { %2026 = vmatprep.subr.bf16.mxu1 %v3694_v30  ;;  %v3784_v30 = vld [vmem:[%s5401_s1 + $0x3d4] ss:$24 sps:$4 sm:$0xff]  }
  0x93   :  { %1986 = vmatpush1.bf16.msra.mxu0 %v3689_v31  ;;  %v3779_v31 = vld [vmem:[%s5401_s1 + $0xd0] ss:$24 sps:$4 sm:$0xff]  }
  0x94   :  { %1987 = vmatprep.subr.bf16.mxu0 %v3697_v32  ;;  %v3787_v32 = vld [vmem:[%s5401_s1 + $0xa4] ss:$24 sps:$4 sm:$0xff]  }
  0x95   :  { %2027 = vmatpush1.bf16.msra.mxu1 %v3692_v33  ;;  %v3782_v33 = vld [vmem:[%s5401_s1 + $0x3d0] ss:$24 sps:$4 sm:$0xff]  }
  0x96   :  { %2028 = vmatprep.subr.bf16.mxu1 %v3700_v35  ;;  %v3790_v35 = vld [vmem:[%s5401_s1 + $0x3a4] ss:$24 sps:$4 sm:$0xff]  }
  0x97   :  { %1988 = vmatpush1.bf16.msra.mxu0 %v3695_v36  ;;  %v3785_v36 = vld [vmem:[%s5401_s1 + $0xa0] ss:$24 sps:$4 sm:$0xff]  }
  0x98   :  { %1989 = vmatprep.subr.bf16.mxu0 %v3703_v37  ;;  %v3793_v37 = vld [vmem:[%s5401_s1 + $0x74] ss:$24 sps:$4 sm:$0xff]  }
  0x99   :  { %2029 = vmatpush1.bf16.msra.mxu1 %v3698_v38  ;;  %v3788_v38 = vld [vmem:[%s5401_s1 + $0x3a0] ss:$24 sps:$4 sm:$0xff]  }
  0x9a   :  { %2030 = vmatprep.subr.bf16.mxu1 %v3706_v39  ;;  %v3796_v39 = vld [vmem:[%s5401_s1 + $0x374] ss:$24 sps:$4 sm:$0xff]  }
  0x9b   :  { %1990 = vmatpush1.bf16.msra.mxu0 %v3701_v40  ;;  %v3791_v40 = vld [vmem:[%s5401_s1 + $0x70] ss:$24 sps:$4 sm:$0xff]  }
  0x9c   :  { %1991 = vmatprep.subr.bf16.mxu0 %v3709_v41  ;;  %v3799_v41 = vld [vmem:[%s5401_s1 + $0x44] ss:$24 sps:$4 sm:$0xff]  }
  0x9d   :  { %2031 = vmatpush1.bf16.msra.mxu1 %v3704_v42  ;;  %v3794_v42 = vld [vmem:[%s5401_s1 + $0x370] ss:$24 sps:$4 sm:$0xff]  }
  0x9e   :  { %2032 = vmatprep.subr.bf16.mxu1 %v3712_v43  ;;  %v3802_v43 = vld [vmem:[%s5401_s1 + $0x344] ss:$24 sps:$4 sm:$0xff]  }
  0x9f   :  { %1992 = vmatpush1.bf16.msra.mxu0 %v3707_v44  ;;  %v3797_v44 = vld [vmem:[%s5401_s1 + $0x40] ss:$24 sps:$4 sm:$0xff]  }
  0xa0   :  { %1993 = vmatprep.subr.bf16.mxu0 %v3715_v45  ;;  %v3805_v45 = vld [vmem:[%s5401_s1 + $0x14] ss:$24 sps:$4 sm:$0xff]  }
  0xa1   :  { %2033 = vmatpush1.bf16.msra.mxu1 %v3710_v46  ;;  %v3800_v46 = vld [vmem:[%s5401_s1 + $0x340] ss:$24 sps:$4 sm:$0xff]  }
  0xa2   :  { %2034 = vmatprep.subr.bf16.mxu1 %v3718_v47  ;;  %v3808_v47 = vld [vmem:[%s5401_s1 + $0x314] ss:$24 sps:$4 sm:$0xff]  }
  0xa3   :  { %1994 = vmatpush2.bf16.msra.mxu0 %v3713_v49  ;;  %v3803_v49 = vld [vmem:[%s5401_s1 + $0x10] ss:$24 sps:$4 sm:$0xff]  }
  0xa4   :  { %1995 = vmatprep.subr.bf16.mxu0 %v3721_v50  ;;  %v3811_v50 = vld [vmem:[%s5401_s1 + $0x2e4] ss:$24 sps:$4 sm:$0xff]  }
  0xa5   :  { %2035 = vmatpush2.bf16.msra.mxu1 %v3716_v51  ;;  %v3806_v51 = vld [vmem:[%s5401_s1 + $0x310] ss:$24 sps:$4 sm:$0xff]  }
  0xa6   :  { %2036 = vmatprep.subr.bf16.mxu1 %v3724_v53  ;;  %v3814_v53 = vld [vmem:[%s5401_s1 + $0x5e4] ss:$24 sps:$4 sm:$0xff]  }
  0xa7   :  { %1996 = vmatpush2.bf16.msra.mxu0 %v3719_v54  ;;  %v3809_v54 = vld [vmem:[%s5401_s1 + $0x2e0] ss:$24 sps:$4 sm:$0xff]  }
  0xa8   :  { %1997 = vmatprep.subr.bf16.mxu0 %v3727_v55  ;;  %v3817_v55 = vld [vmem:[%s5401_s1 + $0x2b4] ss:$24 sps:$4 sm:$0xff]  }
  0xa9   :  { %2037 = vmatpush2.bf16.msra.mxu1 %v3722_v56  ;;  %v3812_v56 = vld [vmem:[%s5401_s1 + $0x5e0] ss:$24 sps:$4 sm:$0xff]  }
  0xaa   :  { %2038 = vmatprep.subr.bf16.mxu1 %v3730_v57  ;;  %v3815_v57 = vld [vmem:[%s5401_s1 + $0x2b0] ss:$24 sps:$4 sm:$0xff]  }
  0xab   :  { %1998 = vmatpush2.bf16.msra.mxu0 %v3725_v58  ;;  %v3820_v58 = vld [vmem:[%s5401_s1 + $0x5b4] ss:$24 sps:$4 sm:$0xff]  }
  0xac   :  { %1999 = vmatprep.subr.bf16.mxu0 %v3733_v59  ;;  %v3818_v59 = vld [vmem:[%s5401_s1 + $0x5b0] ss:$24 sps:$4 sm:$0xff]  }
  0xad   :  { %2039 = vmatpush2.bf16.msra.mxu1 %v3728_v60  ;;  %v3823_v60 = vld [vmem:[%s5401_s1 + $0x284] ss:$24 sps:$4 sm:$0xff]  }
  0xae   :  { %2040 = vmatprep.subr.bf16.mxu1 %v3736_v61  ;;  %v3826_v61 = vld [vmem:[%s5401_s1 + $0x584] ss:$24 sps:$4 sm:$0xff]  }
  0xaf   :  { %2000 = vmatpush2.bf16.msra.mxu0 %v3731_v62  ;;  %v3821_v62 = vld [vmem:[%s5401_s1 + $0x280] ss:$24 sps:$4 sm:$0xff]  }
  0xb0   :  { %2001 = vmatprep.subr.bf16.mxu0 %v3739_v63  ;;  %v3824_v63 = vld [vmem:[%s5401_s1 + $0x580] ss:$24 sps:$4 sm:$0xff]  }
  0xb1   :  { %2041 = vmatpush2.bf16.msra.mxu1 %v3734_v0  ;;  %v3829_v0 = vld [vmem:[%s5401_s1 + $0x254] ss:$24 sps:$4 sm:$0xff]  }
  0xb2   :  { %2042 = vmatprep.subr.bf16.mxu1 %v3742_v1  ;;  %v3832_v1 = vld [vmem:[%s5401_s1 + $0x554] ss:$24 sps:$4 sm:$0xff]  }
  0xb3   :  { %2002 = vmatpush2.bf16.msra.mxu0 %v3737_v2  ;;  %v3827_v2 = vld [vmem:[%s5401_s1 + $0x250] ss:$24 sps:$4 sm:$0xff]  }
  0xb4   :  { %2003 = vmatprep.subr.bf16.mxu0 %v3745_v3  ;;  %v3830_v3 = vld [vmem:[%s5401_s1 + $0x550] ss:$24 sps:$4 sm:$0xff]  }
  0xb5   :  { %2043 = vmatpush2.bf16.msra.mxu1 %v3740_v4  ;;  %v3835_v4 = vld [vmem:[%s5401_s1 + $0x224] ss:$24 sps:$4 sm:$0xff]  }
  0xb6   :  { %2044 = vmatprep.subr.bf16.mxu1 %v3748_v6  ;;  %v3838_v6 = vld [vmem:[%s5401_s1 + $0x524] ss:$24 sps:$4 sm:$0xff]  }
  0xb7   :  { %2004 = vmatpush2.bf16.msra.mxu0 %v3743_v7  ;;  %v3833_v7 = vld [vmem:[%s5401_s1 + $0x220] ss:$24 sps:$4 sm:$0xff]  }
  0xb8   :  { %2005 = vmatprep.subr.bf16.mxu0 %v3751_v9  ;;  %v3836_v9 = vld [vmem:[%s5401_s1 + $0x520] ss:$24 sps:$4 sm:$0xff]  }
  0xb9   :  { %2045 = vmatpush2.bf16.msra.mxu1 %v3746_v10  ;;  %v3841_v10 = vld [vmem:[%s5401_s1 + $0x1f4] ss:$24 sps:$4 sm:$0xff]  }
  0xba   :  { %2046 = vmatprep.subr.bf16.mxu1 %v3754_v11  ;;  %v3844_v11 = vld [vmem:[%s5401_s1 + $0x4f4] ss:$24 sps:$4 sm:$0xff]  }
  0xbb   :  { %2006 = vmatpush2.bf16.msra.mxu0 %v3749_v12  ;;  %v3839_v12 = vld [vmem:[%s5401_s1 + $0x1f0] ss:$24 sps:$4 sm:$0xff]  }
  0xbc   :  { %2007 = vmatprep.subr.bf16.mxu0 %v3757_v14  ;;  %v3847_v14 = vld [vmem:[%s5401_s1 + $0x1c4] ss:$24 sps:$4 sm:$0xff]  }
  0xbd   :  { %2047 = vmatpush2.bf16.msra.mxu1 %v3752_v15  ;;  %v3842_v15 = vld [vmem:[%s5401_s1 + $0x4f0] ss:$24 sps:$4 sm:$0xff]  }
  0xbe   :  { %2048 = vmatprep.subr.bf16.mxu1 %v3760_v16  ;;  %v3850_v16 = vld [vmem:[%s5401_s1 + $0x4c4] ss:$24 sps:$4 sm:$0xff]  }
  0xbf   :  { %2008 = vmatpush2.bf16.msra.mxu0 %v3755_v17  ;;  %v3845_v17 = vld [vmem:[%s5401_s1 + $0x1c0] ss:$24 sps:$4 sm:$0xff]  }
  0xc0   :  { %2059 = vmatprep.subr.bf16.mxu0 %v3763_v18  ;;  %v3853_v18 = vld [vmem:[%s5401_s1 + $0x194] ss:$24 sps:$4 sm:$0xff]  }
  0xc1   :  { %2049 = vmatpush2.bf16.msra.mxu1 %v3758_v19  ;;  %v3848_v19 = vld [vmem:[%s5401_s1 + $0x4c0] ss:$24 sps:$4 sm:$0xff]  }
  0xc2   :  { %2010 = vmatmul.mubr.bf16.vlgmr.msra.gmra.mxu0 %v4317_v8  ;;  %2100 = vmatprep.subr.bf16.mxu1 %v3766_v20  ;;  %v3856_v20 = vld [vmem:[%s5401_s1 + $0x494] ss:$24 sps:$4 sm:$0xff]  }
  0xc3   :  { %2060 = vmatpush1.bf16.msra.mxu0 %v3761_v21  ;;  %2091 = vmatprep.mubr.bf16.mxu0 %v4246_v48  ;;  %v3773_v48 = vld [vmem:[%s5401_s1 + $0x100] ss:$24 sps:$4 sm:$0xff]   ;;  %v3851_v21 = vld [vmem:[%s5401_s1 + $0x190] ss:$24 sps:$4 sm:$0xff]  }
  0xc4   :  { %2051 = vmatmul.mubr.bf16.vlgmr.msra.gmra.mxu1 %v4520_v13  ;;  %2061 = vmatprep.subr.bf16.mxu0 %v3769_v22  ;;  %v3859_v22 = vld [vmem:[%s5401_s1 + $0x764] ss:$24 sps:$4 sm:$0xff]  }
  0xc5   :  { %2101 = vmatpush1.bf16.msra.mxu1 %v3764_v23  ;;  %2132 = vmatprep.mubr.bf16.mxu1 %v4258_v52  ;;  %v3776_v52 = vld [vmem:[%s5401_s1 + $0x400] ss:$24 sps:$4 sm:$0xff]   ;;  %v3854_v23 = vld [vmem:[%s5401_s1 + $0x490] ss:$24 sps:$4 sm:$0xff]  }
  0xc6   :  { %2102 = vmatprep.subr.bf16.mxu1 %v3772_v24  ;;  %v3868_v24 = vld [vmem:[%s5403_s3 + $0x74] ss:$8 sps:$4 sm:$0xff]  }
  0xc7   :  { %2062 = vmatpush1.bf16.msra.mxu0 %v3767_v25  ;;  %v3857_v25 = vld [vmem:[%s5401_s1 + $0x760] ss:$24 sps:$4 sm:$0xff]  }
  0xc8   :  { %2063 = vmatprep.subr.bf16.mxu0 %v3775_v26  ;;  %v3862_v26 = vld [vmem:[%s5401_s1 + $0x734] ss:$24 sps:$4 sm:$0xff]  }
  0xc9   :  { %2103 = vmatpush1.bf16.msra.mxu1 %v3770_v27  ;;  %v3866_v27 = vld [vmem:[%s5403_s3 + $0x70] ss:$8 sps:$4 sm:$0xff]  }
  0xca   :  { %2104 = vmatprep.subr.bf16.mxu1 %v3778_v28 }
  0xcb   :  { %2064 = vmatpush1.bf16.msra.mxu0 %v3773_v48  ;;  %v3874_v48 = vld [vmem:[%s5403_s3 + $0x64] ss:$8 sps:$4 sm:$0xff]  }
  0xcc   :  { %2065 = vmatprep.subr.bf16.mxu0 %v3781_v29  ;;  %v3860_v29 = vld [vmem:[%s5401_s1 + $0x730] ss:$24 sps:$4 sm:$0xff]  }
  0xcd   :  { %2105 = vmatpush1.bf16.msra.mxu1 %v3776_v52 }
  0xce   :  { %2106 = vmatprep.subr.bf16.mxu1 %v3784_v30 }
  0xcf   :  { %2066 = vmatpush1.bf16.msra.mxu0 %v3779_v31  ;;  %v3872_v31 = vld [vmem:[%s5403_s3 + $0x60] ss:$8 sps:$4 sm:$0xff]  }
  0xd0   :  { %2067 = vmatprep.subr.bf16.mxu0 %v3787_v32 }
  0xd1   :  { %2107 = vmatpush1.bf16.msra.mxu1 %v3782_v33 }
  0xd2   :  { %2108 = vmatprep.subr.bf16.mxu1 %v3790_v35 }
  0xd3   :  { %2068 = vmatpush1.bf16.msra.mxu0 %v3785_v36  ;;  %v3871_v36 = vld [vmem:[%s5401_s1 + $0x6d4] ss:$24 sps:$4 sm:$0xff]  }
  0xd4   :  { %2069 = vmatprep.subr.bf16.mxu0 %v3793_v37 }
  0xd5   :  { %2109 = vmatpush1.bf16.msra.mxu1 %v3788_v38  ;;  %v3878_v38 = vld [vmem:[%s5403_s3 + $0x50] ss:$8 sps:$4 sm:$0xff]  }
  0xd6   :  { %2110 = vmatprep.subr.bf16.mxu1 %v3796_v39  ;;  %v3886_v39 = vld [vmem:[%s5403_s3 + $0x44] ss:$8 sps:$4 sm:$0xff]  }
  0xd7   :  { %2070 = vmatpush1.bf16.msra.mxu0 %v3791_v40 }
  0xd8   :  { %2071 = vmatprep.subr.bf16.mxu0 %v3799_v41  ;;  %v3869_v41 = vld [vmem:[%s5401_s1 + $0x6d0] ss:$24 sps:$4 sm:$0xff]  }
  0xd9   :  { %2111 = vmatpush1.bf16.msra.mxu1 %v3794_v42  ;;  %v3877_v42 = vld [vmem:[%s5401_s1 + $0x6a4] ss:$24 sps:$4 sm:$0xff]  }
  0xda   :  { %2112 = vmatprep.subr.bf16.mxu1 %v3802_v43  ;;  %v3884_v43 = vld [vmem:[%s5403_s3 + $0x40] ss:$8 sps:$4 sm:$0xff]  }
  0xdb   :  { %2072 = vmatpush1.bf16.msra.mxu0 %v3797_v44  ;;  %v3892_v44 = vld [vmem:[%s5403_s3 + $0x34] ss:$8 sps:$4 sm:$0xff]  }
  0xdc   :  { %2073 = vmatprep.subr.bf16.mxu0 %v3805_v45  ;;  %v3875_v45 = vld [vmem:[%s5401_s1 + $0x6a0] ss:$24 sps:$4 sm:$0xff]  }
  0xdd   :  { %2113 = vmatpush1.bf16.msra.mxu1 %v3800_v46  ;;  %v3883_v46 = vld [vmem:[%s5401_s1 + $0x674] ss:$24 sps:$4 sm:$0xff]  }
  0xde   :  { %2114 = vmatprep.subr.bf16.mxu1 %v3808_v47  ;;  %v3890_v47 = vld [vmem:[%s5403_s3 + $0x30] ss:$8 sps:$4 sm:$0xff]  }
  0xdf   :  { %2074 = vmatpush1.bf16.msra.mxu0 %v3803_v49  ;;  %v3898_v49 = vld [vmem:[%s5403_s3 + $0x24] ss:$8 sps:$4 sm:$0xff]  }
  0xe0   :  { %2075 = vmatprep.subr.bf16.mxu0 %v3811_v50  ;;  %v3881_v50 = vld [vmem:[%s5401_s1 + $0x670] ss:$24 sps:$4 sm:$0xff]  }
  0xe1   :  { %2115 = vmatpush1.bf16.msra.mxu1 %v3806_v51  ;;  %v3889_v51 = vld [vmem:[%s5401_s1 + $0x644] ss:$24 sps:$4 sm:$0xff]  }
  0xe2   :  { %2116 = vmatprep.subr.bf16.mxu1 %v3814_v53  ;;  %v3896_v53 = vld [vmem:[%s5403_s3 + $0x20] ss:$8 sps:$4 sm:$0xff]  }
  0xe3   :  { %2076 = vmatpush2.bf16.msra.mxu0 %v3809_v54  ;;  %v3904_v54 = vld [vmem:[%s5403_s3 + $0x14] ss:$8 sps:$4 sm:$0xff]  }
  0xe4   :  { %2077 = vmatprep.subr.bf16.mxu0 %v3817_v55  ;;  %v3887_v55 = vld [vmem:[%s5401_s1 + $0x640] ss:$24 sps:$4 sm:$0xff]  }
  0xe5   :  { %2117 = vmatpush2.bf16.msra.mxu1 %v3812_v56  ;;  %v3895_v56 = vld [vmem:[%s5401_s1 + $0x614] ss:$24 sps:$4 sm:$0xff]  }
  0xe6   :  { %2118 = vmatprep.subr.bf16.mxu1 %v3820_v58  ;;  %v3910_v58 = vld [vmem:[%s5403_s3 + $0x4] ss:$8 sps:$4 sm:$0xff]  }
  0xe7   :  { %2078 = vmatpush2.bf16.msra.mxu0 %v3815_v57  ;;  %v3902_v57 = vld [vmem:[%s5403_s3 + $0x10] ss:$8 sps:$4 sm:$0xff]  }
  0xe8   :  { %2079 = vmatprep.subr.bf16.mxu0 %v3823_v60  ;;  %v3901_v60 = vld [vmem:[%s5401_s1 + $0x8e4] ss:$24 sps:$4 sm:$0xff]  }
  0xe9   :  { %2119 = vmatpush2.bf16.msra.mxu1 %v3818_v59  ;;  %v3893_v59 = vld [vmem:[%s5401_s1 + $0x610] ss:$24 sps:$4 sm:$0xff]  }
  0xea   :  { %2120 = vmatprep.subr.bf16.mxu1 %v3826_v61  ;;  %v3908_v61 = vld [vmem:[%s5403_s3] ss:$8 sps:$4 sm:$0xff]  }
  0xeb   :  { %2080 = vmatpush2.bf16.msra.mxu0 %v3821_v62  ;;  %v3916_v62 = vld [vmem:[%s5403_s3 + $0xf4] ss:$8 sps:$4 sm:$0xff]  }
  0xec   :  { %2081 = vmatprep.subr.bf16.mxu0 %v3829_v0  ;;  %v3907_v0 = vld [vmem:[%s5401_s1 + $0x8b4] ss:$24 sps:$4 sm:$0xff]  }
  0xed   :  { %2121 = vmatpush2.bf16.msra.mxu1 %v3824_v63  ;;  %v3899_v63 = vld [vmem:[%s5401_s1 + $0x8e0] ss:$24 sps:$4 sm:$0xff]  }
  0xee   :  { %2122 = vmatprep.subr.bf16.mxu1 %v3832_v1  ;;  %v3914_v1 = vld [vmem:[%s5403_s3 + $0xf0] ss:$8 sps:$4 sm:$0xff]  }
  0xef   :  { %2082 = vmatpush2.bf16.msra.mxu0 %v3827_v2  ;;  %v3922_v2 = vld [vmem:[%s5403_s3 + $0xe4] ss:$8 sps:$4 sm:$0xff]  }
  0xf0   :  { %2083 = vmatprep.subr.bf16.mxu0 %v3835_v4  ;;  %v3913_v4 = vld [vmem:[%s5401_s1 + $0x884] ss:$24 sps:$4 sm:$0xff]  }
  0xf1   :  { %2123 = vmatpush2.bf16.msra.mxu1 %v3830_v3  ;;  %v3905_v3 = vld [vmem:[%s5401_s1 + $0x8b0] ss:$24 sps:$4 sm:$0xff]  }
  0xf2   :  { %2124 = vmatprep.subr.bf16.mxu1 %v3838_v6  ;;  %v3920_v6 = vld [vmem:[%s5403_s3 + $0xe0] ss:$8 sps:$4 sm:$0xff]  }
  0xf3   :  { %2084 = vmatpush2.bf16.msra.mxu0 %v3833_v7  ;;  %v3928_v7 = vld [vmem:[%s5403_s3 + $0xd4] ss:$8 sps:$4 sm:$0xff]  }
  0xf4   :  { %2085 = vmatprep.subr.bf16.mxu0 %v3841_v10  ;;  %v3919_v10 = vld [vmem:[%s5401_s1 + $0x854] ss:$24 sps:$4 sm:$0xff]  }
  0xf5   :  { %2125 = vmatpush2.bf16.msra.mxu1 %v3836_v9  ;;  %v3911_v9 = vld [vmem:[%s5401_s1 + $0x880] ss:$24 sps:$4 sm:$0xff]  }
  0xf6   :  { %2126 = vmatprep.subr.bf16.mxu1 %v3844_v11  ;;  %v3926_v11 = vld [vmem:[%s5403_s3 + $0xd0] ss:$8 sps:$4 sm:$0xff]  }
  0xf7   :  { %2086 = vmatpush2.bf16.msra.mxu0 %v3839_v12  ;;  %v3934_v12 = vld [vmem:[%s5403_s3 + $0xc4] ss:$8 sps:$4 sm:$0xff]  }
  0xf8   :  { %2087 = vmatprep.subr.bf16.mxu0 %v3847_v14  ;;  %v3917_v14 = vld [vmem:[%s5401_s1 + $0x850] ss:$24 sps:$4 sm:$0xff]  }
  0xf9   :  { %2127 = vmatpush2.bf16.msra.mxu1 %v3842_v15  ;;  %v3925_v15 = vld [vmem:[%s5401_s1 + $0x824] ss:$24 sps:$4 sm:$0xff]  }
  0xfa   :  { %2128 = vmatprep.subr.bf16.mxu1 %v3850_v16  ;;  %v322_v16 = vlaneseq }
  0xfb   :  { %2088 = vmatpush2.bf16.msra.mxu0 %v3845_v17  ;;  %v3932_v17 = vld [vmem:[%s5403_s3 + $0xc0] ss:$8 sps:$4 sm:$0xff]  }
  0xfc   :  { %2089 = vmatprep.subr.bf16.mxu0 %v3853_v18  ;;  %v3940_v18 = vld [vmem:[%s5403_s3 + $0xb4] ss:$8 sps:$4 sm:$0xff]  }
  0xfd   :  { %2129 = vmatpush2.bf16.msra.mxu1 %v3848_v19  ;;  %v3923_v19 = vld [vmem:[%s5401_s1 + $0x820] ss:$24 sps:$4 sm:$0xff]  }
  0xfe   :  { %2130 = vmatprep.subr.bf16.mxu1 %v3856_v20  ;;  %v3931_v20 = vld [vmem:[%s5401_s1 + $0x7f4] ss:$24 sps:$4 sm:$0xff]  }
  0xff   :  { %2090 = vmatpush2.bf16.msra.mxu0 %v3851_v21  ;;  %v5078_v21 = vshrl.u32 %v322_v16, 7  ;;  %v3976_v16 = vld [vmem:[%s5403_s3 + $0x104] ss:$8 sps:$4 sm:$0xff]  }
 0x100   :  { %2141 = vmatprep.subr.bf16.mxu0 %v3859_v22  ;;  %v3938_v22 = vld [vmem:[%s5403_s3 + $0xb0] ss:$8 sps:$4 sm:$0xff]  }
 0x101   :  { %2131 = vmatpush2.bf16.msra.mxu1 %v3854_v23  ;;  %v3946_v23 = vld [vmem:[%s5403_s3 + $0xa4] ss:$8 sps:$4 sm:$0xff]  }
 0x102   :  { %v4926_v28 = vpop.f32.mrf.mxu0  ;;  %2092 = vmatmul.mubr.bf16.vlgmr.msra.gmra.mxu0 %v4309_v5  ;;  %2782 = vmatprep.subr.bf16.mxu1 %v3868_v24  ;;  %v3865_v5 = vld [vmem:[%s5401_s1 + $0x704] ss:$24 sps:$4 sm:$0xff]   ;;  %v3929_v24 = vld [vmem:[%s5401_s1 + $0x7f0] ss:$24 sps:$4 sm:$0xff]  }
 0x103   :  { %2142 = vmatpush1.bf16.msra.mxu0 %v3857_v25  ;;  %2173 = vmatprep.mubr.bf16.mxu0 %v4401_v34  ;;  %v4938_v30 = vpop.f32.mrf.mxu1  ;;  %v3880_v34 = vld [vmem:[%s5403_s3 + $0x54] ss:$8 sps:$4 sm:$0xff]  }
 0x104   :  { %v4936_v52 = vpop.f32.mrf.mxu0  ;;  %2133 = vmatmul.mubr.bf16.vlgmr.msra.gmra.mxu1 %v4317_v8  ;;  %2143 = vmatprep.subr.bf16.mxu0 %v3862_v26  ;;  %v3863_v8 = vld [vmem:[%s5401_s1 + $0x700] ss:$24 sps:$4 sm:$0xff]   ;;  %v3937_v25 = vld [vmem:[%s5401_s1 + $0x7c4] ss:$24 sps:$4 sm:$0xff]   ;;  %v324_v26 = vsub.s32 0, %v5078_v21 }
 0x105   :  { %2783 = vmatpush1.bf16.msra.mxu1 %v3866_v27  ;;  %v4947_v33 = vpop.f32.mrf.mxu1  ;;  %v3944_v27 = vld [vmem:[%s5403_s3 + $0xa0] ss:$8 sps:$4 sm:$0xff]  }
 0x106   :  { %v1851_v32 = vpop.f32.mrf.mxu0  ;;  %2784 = vmatprep.subr.bf16.mxu1 %v3874_v48  ;;  %v5099_v48 = vld [vmem:[%s5404_s2] sm:$0x3f] }
 0x107   :  { %2144 = vmatpush1.bf16.msra.mxu0 %v3860_v29  ;;  %v1892_v37 = vpop.f32.mrf.mxu1  ;;  %v3949_v29 = vld [vmem:[%s5403_s3 + $0x94] ss:$8 sps:$4 sm:$0xff]  }
 0x108   :  { %v1852_v35 = vpop.f32.mrf.mxu0  ;;  %2145 = vmatprep.subr.bf16.mxu0 %v3865_v5  ;;  %v328_v5 = vsub.s32 1, %v5078_v21  ;;  %v3943_v32 = vld [vmem:[%s5401_s1 + $0x794] ss:$24 sps:$4 sm:$0xff]   ;;  %v3941_v37 = vld [vmem:[%s5401_s1 + $0x790] ss:$24 sps:$4 sm:$0xff]  }
 0x109   :  { %2785 = vmatpush1.bf16.msra.mxu1 %v3872_v31  ;;  %v1893_v40 = vpop.f32.mrf.mxu1  ;;  %v3935_v31 = vld [vmem:[%s5401_s1 + $0x7c0] ss:$24 sps:$4 sm:$0xff]   ;;  %v3952_v35 = vld [vmem:[%s5403_s3 + $0x84] ss:$8 sps:$4 sm:$0xff]  }
 0x10a   :  { %2786 = vmatprep.subr.bf16.mxu1 %v3880_v34  ;;  %v325_v34 = vrot.slane %v5099_v48, %v324_v26  ;;  %v3950_v40 = vld [vmem:[%s5403_s3 + $0x80] ss:$8 sps:$4 sm:$0xff]  }
 0x10b   :  { %2146 = vmatpush1.bf16.msra.mxu0 %v3863_v8  ;;  %v3947_v8 = vld [vmem:[%s5403_s3 + $0x90] ss:$8 sps:$4 sm:$0xff]  }
 0x10c   :  { %2147 = vmatprep.subr.bf16.mxu0 %v3871_v36  ;;  %v329_v36 = vrot.slane %v5099_v48, %v328_v5 }
 0x10d   :  { %2787 = vmatpush1.bf16.msra.mxu1 %v3878_v38  ;;  %v3955_v38 = vld [vmem:[%s5403_s3 + $0x174] ss:$8 sps:$4 sm:$0xff]  }
 0x10e   :  { %2788 = vmatprep.subr.bf16.mxu1 %v3886_v39  ;;  %v1848_v39 = vadd.f32 %v4926_v28, %v325_v34  ;;  %v4022_v34 = vld [vmem:[%s5403_s3 + $0x200] ss:$8 sps:$4 sm:$0xff]  }
 0x10f   :  { %2148 = vmatpush1.bf16.msra.mxu0 %v3869_v41  ;;  %v1850_v41 = vadd.f32 %v4936_v52, %v329_v36  ;;  %v3956_v52 = vld [vmem:[%s5403_s3 + $0x160] ss:$8 sps:$4 sm:$0xff]   ;;  %v3988_v36 = vld [vmem:[%s5403_s3 + $0x1c4] ss:$8 sps:$4 sm:$0xff]  }
 0x110   :  { %2149 = vmatprep.subr.bf16.mxu0 %v3877_v42  ;;  %v3953_v42 = vld [vmem:[%s5403_s3 + $0x170] ss:$8 sps:$4 sm:$0xff]   ;;  %v1889_v28 = vadd.f32 %v4938_v30, %v1848_v39  ;;  %v3986_v39 = vld [vmem:[%s5403_s3 + $0x1c0] ss:$8 sps:$4 sm:$0xff]  }
 0x111   :  { %2789 = vmatpush1.bf16.msra.mxu1 %v3884_v43  ;;  %v3958_v43 = vld [vmem:[%s5403_s3 + $0x164] ss:$8 sps:$4 sm:$0xff]  }
 0x112   :  { %2790 = vmatprep.subr.bf16.mxu1 %v3892_v44 }
 0x113   :  { %2150 = vmatpush1.bf16.msra.mxu0 %v3875_v45  ;;  %v1891_v45 = vadd.f32 %v4947_v33, %v1850_v41  ;;  %v4028_v41 = vld [vmem:[%s5403_s3 + $0x2e0] ss:$8 sps:$4 sm:$0xff]  }
 0x114   :  { %2151 = vmatprep.subr.bf16.mxu0 %v3883_v46 }
 0x115   :  { %2791 = vmatpush1.bf16.msra.mxu1 %v3890_v47 }
 0x116   :  { %2792 = vmatprep.subr.bf16.mxu1 %v3898_v49  ;;  %v3961_v49 = vld [vmem:[%s5403_s3 + $0x154] ss:$8 sps:$4 sm:$0xff]  }
 0x117   :  { %2152 = vmatpush1.bf16.msra.mxu0 %v3881_v50 }
 0x118   :  { %2153 = vmatprep.subr.bf16.mxu0 %v3889_v51 }
 0x119   :  { %2793 = vmatpush1.bf16.msra.mxu1 %v3896_v53 }
 0x11a   :  { %2794 = vmatprep.subr.bf16.mxu1 %v3904_v54  ;;  %v3959_v54 = vld [vmem:[%s5403_s3 + $0x150] ss:$8 sps:$4 sm:$0xff]  }
 0x11b   :  { %2154 = vmatpush1.bf16.msra.mxu0 %v3887_v55 }
 0x11c   :  { %2155 = vmatprep.subr.bf16.mxu0 %v3895_v56  ;;  %v3964_v56 = vld [vmem:[%s5403_s3 + $0x144] ss:$8 sps:$4 sm:$0xff]  }
 0x11d   :  { %2795 = vmatpush1.bf16.msra.mxu1 %v3902_v57 }
 0x11e   :  { %2796 = vmatprep.subr.bf16.mxu1 %v3910_v58  ;;  %v4003_v58 = vld [vmem:[%s5403_s3 + $0x274] ss:$8 sps:$4 sm:$0xff]  }
 0x11f   :  { %2156 = vmatpush1.bf16.msra.mxu0 %v3893_v59 }
 0x120   :  { %2157 = vmatprep.subr.bf16.mxu0 %v3901_v60  ;;  %v4001_v60 = vld [vmem:[%s5403_s3 + $0x270] ss:$8 sps:$4 sm:$0xff]  }
 0x121   :  { %2797 = vmatpush1.bf16.msra.mxu1 %v3908_v61 }
 0x122   :  { %2798 = vmatprep.subr.bf16.mxu1 %v3916_v62 }
 0x123   :  { %2158 = vmatpush2.bf16.msra.mxu0 %v3899_v63  ;;  %v4006_v63 = vld [vmem:[%s5403_s3 + $0x264] ss:$8 sps:$4 sm:$0xff]  }
 0x124   :  { %2159 = vmatprep.subr.bf16.mxu0 %v3907_v0  ;;  %v3962_v0 = vld [vmem:[%s5403_s3 + $0x140] ss:$8 sps:$4 sm:$0xff]  }
 0x125   :  { %2799 = vmatpush2.bf16.msra.mxu1 %v3914_v1  ;;  %v3967_v1 = vld [vmem:[%s5403_s3 + $0x134] ss:$8 sps:$4 sm:$0xff]  }
 0x126   :  { %2800 = vmatprep.subr.bf16.mxu1 %v3922_v2  ;;  %v4004_v2 = vld [vmem:[%s5403_s3 + $0x260] ss:$8 sps:$4 sm:$0xff]  }
 0x127   :  { %2160 = vmatpush2.bf16.msra.mxu0 %v3905_v3  ;;  %v4009_v3 = vld [vmem:[%s5403_s3 + $0x254] ss:$8 sps:$4 sm:$0xff]  }
 0x128   :  { %2161 = vmatprep.subr.bf16.mxu0 %v3913_v4  ;;  %v3965_v4 = vld [vmem:[%s5403_s3 + $0x130] ss:$8 sps:$4 sm:$0xff]  }
 0x129   :  { %2801 = vmatpush2.bf16.msra.mxu1 %v3920_v6  ;;  %v3970_v6 = vld [vmem:[%s5403_s3 + $0x124] ss:$8 sps:$4 sm:$0xff]  }
 0x12a   :  { %2802 = vmatprep.subr.bf16.mxu1 %v3928_v7  ;;  %v4007_v7 = vld [vmem:[%s5403_s3 + $0x250] ss:$8 sps:$4 sm:$0xff]  }
 0x12b   :  { %2162 = vmatpush2.bf16.msra.mxu0 %v3911_v9  ;;  %v4012_v9 = vld [vmem:[%s5403_s3 + $0x244] ss:$8 sps:$4 sm:$0xff]  }
 0x12c   :  { %2163 = vmatprep.subr.bf16.mxu0 %v3919_v10  ;;  %v3968_v10 = vld [vmem:[%s5403_s3 + $0x120] ss:$8 sps:$4 sm:$0xff]  }
 0x12d   :  { %2803 = vmatpush2.bf16.msra.mxu1 %v3926_v11  ;;  %v3973_v11 = vld [vmem:[%s5403_s3 + $0x114] ss:$8 sps:$4 sm:$0xff]  }
 0x12e   :  { %2804 = vmatprep.subr.bf16.mxu1 %v3934_v12  ;;  %v4010_v12 = vld [vmem:[%s5403_s3 + $0x240] ss:$8 sps:$4 sm:$0xff]  }
 0x12f   :  { %2164 = vmatpush2.bf16.msra.mxu0 %v3917_v14  ;;  %v4015_v14 = vld [vmem:[%s5403_s3 + $0x234] ss:$8 sps:$4 sm:$0xff]  }
 0x130   :  { %2165 = vmatprep.subr.bf16.mxu0 %v3925_v15  ;;  %v3971_v15 = vld [vmem:[%s5403_s3 + $0x110] ss:$8 sps:$4 sm:$0xff]  }
 0x131   :  { %2805 = vmatpush2.bf16.msra.mxu1 %v3932_v17  ;;  %v4013_v17 = vld [vmem:[%s5403_s3 + $0x230] ss:$8 sps:$4 sm:$0xff]  }
 0x132   :  { %2806 = vmatprep.subr.bf16.mxu1 %v3940_v18  ;;  %v4018_v18 = vld [vmem:[%s5403_s3 + $0x224] ss:$8 sps:$4 sm:$0xff]  }
 0x133   :  { %2166 = vmatpush2.bf16.msra.mxu0 %v3923_v19  ;;  %v3974_v19 = vld [vmem:[%s5403_s3 + $0x100] ss:$8 sps:$4 sm:$0xff]  }
 0x134   :  { %2167 = vmatprep.subr.bf16.mxu0 %v3931_v20  ;;  %v3979_v20 = vld [vmem:[%s5403_s3 + $0x1f4] ss:$8 sps:$4 sm:$0xff]  }
 0x135   :  { %2807 = vmatpush2.bf16.msra.mxu1 %v3938_v22  ;;  %v4016_v22 = vld [vmem:[%s5403_s3 + $0x220] ss:$8 sps:$4 sm:$0xff]  }
 0x136   :  { %2808 = vmatprep.subr.bf16.mxu1 %v3946_v23  ;;  %v4021_v23 = vld [vmem:[%s5403_s3 + $0x214] ss:$8 sps:$4 sm:$0xff]  }
 0x137   :  { %2168 = vmatpush2.bf16.msra.mxu0 %v3929_v24  ;;  %v3977_v24 = vld [vmem:[%s5403_s3 + $0x1f0] ss:$8 sps:$4 sm:$0xff]  }
 0x138   :  { %2169 = vmatprep.subr.bf16.mxu0 %v3937_v25  ;;  %v3982_v25 = vld [vmem:[%s5403_s3 + $0x1e4] ss:$8 sps:$4 sm:$0xff]  }
 0x139   :  { %2809 = vmatpush2.bf16.msra.mxu1 %v3944_v27  ;;  %v4019_v27 = vld [vmem:[%s5403_s3 + $0x210] ss:$8 sps:$4 sm:$0xff]  }
 0x13a   :  { %2810 = vmatprep.subr.bf16.mxu1 %v3949_v29  ;;  %v4024_v29 = vld [vmem:[%s5403_s3 + $0x204] ss:$8 sps:$4 sm:$0xff]  }
 0x13b   :  { %2170 = vmatpush2.bf16.msra.mxu0 %v3935_v31  ;;  %v3980_v31 = vld [vmem:[%s5403_s3 + $0x1e0] ss:$8 sps:$4 sm:$0xff]  }
 0x13c   :  { %2171 = vmatprep.subr.bf16.mxu0 %v3943_v32  ;;  %v3985_v32 = vld [vmem:[%s5403_s3 + $0x1d4] ss:$8 sps:$4 sm:$0xff]  }
 0x13d   :  { %2811 = vmatpush2.bf16.msra.mxu1 %v3947_v8  ;;  %v4027_v8 = vld [vmem:[%s5403_s3 + $0x2f4] ss:$8 sps:$4 sm:$0xff]  }
 0x13e   :  { %2812 = vmatprep.subr.bf16.mxu1 %v3952_v35  ;;  %v3983_v35 = vld [vmem:[%s5403_s3 + $0x1d0] ss:$8 sps:$4 sm:$0xff]  }
 0x13f   :  { %2172 = vmatpush2.bf16.msra.mxu0 %v3941_v37  ;;  %v4025_v37 = vld [vmem:[%s5403_s3 + $0x2f0] ss:$8 sps:$4 sm:$0xff]  }
 0x140   :  { %2823 = vmatprep.subr.bf16.mxu0 %v3955_v38  ;;  %v4030_v38 = vld [vmem:[%s5403_s3 + $0x2e4] ss:$8 sps:$4 sm:$0xff]  }
 0x141   :  { %2813 = vmatpush2.bf16.msra.mxu1 %v3950_v40  ;;  %v3991_v40 = vld [vmem:[%s5403_s3 + $0x1b4] ss:$8 sps:$4 sm:$0xff]  }
 0x142   :  { %v1929_v44 = vpop.f32.mrf.mxu0  ;;  %2174 = vmatmul.mubr.bf16.vlgmr.msra.gmra.mxu0 %v4520_v13  ;;  %2864 = vmatprep.subr.bf16.mxu1 %v4003_v58 }
 0x143   :  { %v1930_v46 = vadd.f32 %v1929_v44, %v1889_v28  ;;  %2824 = vmatpush1.bf16.msra.mxu0 %v3953_v42  ;;  %v4033_v42 = vld [vmem:[%s5403_s3 + $0x2d4] ss:$8 sps:$4 sm:$0xff]   ;;  %v3994_v28 = vld [vmem:[%s5403_s3 + $0x1a4] ss:$8 sps:$4 sm:$0xff]   ;;  %v4031_v44 = vld [vmem:[%s5403_s3 + $0x2d0] ss:$8 sps:$4 sm:$0xff]  }
 0x144   :  { %v1931_v47 = vpop.f32.mrf.mxu0  ;;  %2825 = vmatprep.subr.bf16.mxu0 %v3958_v43  ;;  %v5149_v50 = vpop.f32.mrf.mxu1  ;;  %v3989_v43 = vld [vmem:[%s5403_s3 + $0x1b0] ss:$8 sps:$4 sm:$0xff]  }
 0x145   :  { %v1932_v30 = vadd.f32 %v1931_v47, %v1891_v45  ;;  %v2182_v51 = vmax.f32 %v1930_v46, 0.0  ;;  %v4036_v45 = vld [vmem:[%s5403_s3 + $0x2c4] ss:$8 sps:$4 sm:$0xff]   ;;  %v3992_v46 = vld [vmem:[%s5403_s3 + $0x1a0] ss:$8 sps:$4 sm:$0xff]  }
 0x146   :  { %v1933_v53 = vpop.f32.mrf.mxu0  ;;  %v5151_v13 = vpop.f32.mrf.mxu1  ;;  %v4034_v47 = vld [vmem:[%s5403_s3 + $0x2c0] ss:$8 sps:$4 sm:$0xff]  }
 0x147   :  { %v2183_v33 = vmax.f32 %v1932_v30, 0.0  ;;  %2826 = vmatpush1.bf16.msra.mxu0 %v3956_v52  ;;  %v2188_v61 = vpack.c.bf16 %v2182_v51, %v2182_v51  ;;  %v3997_v52 = vld [vmem:[%s5403_s3 + $0x194] ss:$8 sps:$4 sm:$0xff]   ;;  %v332_v30 = vsub.s32 2, %v5078_v21  ;;  %v3995_v51 = vld [vmem:[%s5403_s3 + $0x190] ss:$8 sps:$4 sm:$0xff]  }
 0x148   :  { %v1934_v55 = vpop.f32.mrf.mxu0  ;;  %2827 = vmatprep.subr.bf16.mxu0 %v3961_v49  ;;  %v1974_v57 = vpop.f32.mrf.mxu1  ;;  %v4039_v49 = vld [vmem:[%s5403_s3 + $0x2b4] ss:$8 sps:$4 sm:$0xff]   ;;  %v4000_v53 = vld [vmem:[%s5403_s3 + $0x184] ss:$8 sps:$4 sm:$0xff]  }
 0x149   :  { %v2189_v59 = vpack.c.bf16 %v2183_v33, %v2183_v33  ;;  %v336_v33 = vsub.s32 3, %v5078_v21  ;;  %v4042_v55 = vld [vmem:[%s5403_s3 + $0x2a4] ss:$8 sps:$4 sm:$0xff]   ;;  %v3998_v57 = vld [vmem:[%s5403_s3 + $0x180] ss:$8 sps:$4 sm:$0xff]  }
 0x14a   :  { %v1975_v62 = vpop.f32.mrf.mxu1 }
 0x14b   :  { %2814 = vmatprep.mubr.bf16.mxu1 %v2189_v59  ;;  %2828 = vmatpush1.bf16.msra.mxu0 %v3959_v54  ;;  %v4037_v54 = vld [vmem:[%s5403_s3 + $0x2b0] ss:$8 sps:$4 sm:$0xff]   ;;  %v337_v58 = vrot.slane %v5099_v48, %v336_v33  ;;  %v4040_v59 = vld [vmem:[%s5403_s3 + $0x2a0] ss:$8 sps:$4 sm:$0xff]  }
 0x14c   :  { %2815 = vmatmul.mubr.bf16.vlgmr.msra.gmra.mxu1 %v2188_v61  ;;  %2829 = vmatprep.subr.bf16.mxu0 %v3964_v56  ;;  %v333_v56 = vrot.slane %v5099_v48, %v332_v30 }
 0x14d   :  { %2865 = vmatpush1.bf16.msra.mxu1 %v4001_v60  ;;  %v1973_v61 = vadd.f32 %v5151_v13, %v337_v58  ;;  %v4048_v13 = vld [vmem:[%s5403_s3 + $0x284] ss:$8 sps:$4 sm:$0xff]  }
 0x14e   :  { %2866 = vmatprep.subr.bf16.mxu1 %v4006_v63  ;;  %v1971_v60 = vadd.f32 %v5149_v50, %v333_v56  ;;  %v4045_v63 = vld [vmem:[%s5403_s3 + $0x294] ss:$8 sps:$4 sm:$0xff]  }
 0x14f   :  { %2830 = vmatpush1.bf16.msra.mxu0 %v3962_v0 }
 0x150   :  { %2831 = vmatprep.subr.bf16.mxu0 %v3967_v1  ;;  %v4043_v1 = vld [vmem:[%s5403_s3 + $0x290] ss:$8 sps:$4 sm:$0xff]  }
 0x151   :  { %2867 = vmatpush1.bf16.msra.mxu1 %v4004_v2 }
 0x152   :  { %2868 = vmatprep.subr.bf16.mxu1 %v4009_v3 }
 0x153   :  { %2832 = vmatpush1.bf16.msra.mxu0 %v3965_v4 }
 0x154   :  { %2833 = vmatprep.subr.bf16.mxu0 %v3970_v6 }
 0x155   :  { %2869 = vmatpush1.bf16.msra.mxu1 %v4007_v7 }
 0x156   :  { %2870 = vmatprep.subr.bf16.mxu1 %v4012_v9 }
 0x157   :  { %2834 = vmatpush1.bf16.msra.mxu0 %v3968_v10  ;;  %v4046_v10 = vld [vmem:[%s5403_s3 + $0x280] ss:$8 sps:$4 sm:$0xff]  }
 0x158   :  { %2835 = vmatprep.subr.bf16.mxu0 %v3973_v11 }
 0x159   :  { %2871 = vmatpush1.bf16.msra.mxu1 %v4010_v12 }
 0x15a   :  { %2872 = vmatprep.subr.bf16.mxu1 %v4015_v14 }
 0x15b   :  { %2836 = vmatpush1.bf16.msra.mxu0 %v3971_v15 }
 0x15c   :  { %2837 = vmatprep.subr.bf16.mxu0 %v3976_v16 }
 0x15d   :  { %2873 = vmatpush1.bf16.msra.mxu1 %v4013_v17 }
 0x15e   :  { %2874 = vmatprep.subr.bf16.mxu1 %v4018_v18 }
 0x15f   :  { %2838 = vmatpush1.bf16.msra.mxu0 %v3974_v19 }
 0x160   :  { %2839 = vmatprep.subr.bf16.mxu0 %v3979_v20 }
 0x161   :  { %2875 = vmatpush1.bf16.msra.mxu1 %v4016_v22 }
 0x162   :  { %2876 = vmatprep.subr.bf16.mxu1 %v4021_v23 }
 0x163   :  { %2840 = vmatpush2.bf16.msra.mxu0 %v3977_v24 }
 0x164   :  { %2841 = vmatprep.subr.bf16.mxu0 %v3982_v25 }
 0x165   :  { %2877 = vmatpush1.bf16.msra.mxu1 %v4019_v27 }
 0x166   :  { %2878 = vmatprep.subr.bf16.mxu1 %v4024_v29 }
 0x167   :  { %2842 = vmatpush2.bf16.msra.mxu0 %v3980_v31  ;;  %v4061_v31 = vmov 0  }
 0x168   :  { %2843 = vmatprep.subr.bf16.mxu0 %v3985_v32  ;;  %v4049_v32 = vld [vmem:[%s5405_s5 + $0x38] sm:$0xff]  }
 0x169   :  { %2879 = vmatpush1.bf16.msra.mxu1 %v4022_v34  ;;  %v4050_v34 = vld [vmem:[%s5405_s5 + $0x30] sm:$0xff]  }
 0x16a   :  { %2880 = vmatprep.subr.bf16.mxu1 %v4027_v8  ;;  %v4051_v8 = vld [vmem:[%s5405_s5 + $0x28] sm:$0xff]  }
 0x16b   :  { %2844 = vmatpush2.bf16.msra.mxu0 %v3983_v35  ;;  %v4052_v35 = vld [vmem:[%s5405_s5 + $0x20] sm:$0xff]  }
 0x16c   :  { %2845 = vmatprep.subr.bf16.mxu0 %v3988_v36  ;;  %v4053_v36 = vld [vmem:[%s5405_s5 + $0x18] sm:$0xff]  }
 0x16d   :  { %2881 = vmatpush2.bf16.msra.mxu1 %v4025_v37  ;;  %v4054_v37 = vld [vmem:[%s5405_s5 + $0x10] sm:$0xff]  }
 0x16e   :  { %2882 = vmatprep.subr.bf16.mxu1 %v4030_v38  ;;  %v4055_v38 = vld [vmem:[%s5405_s5 + $0x8] sm:$0xff]  }
 0x16f   :  { %2846 = vmatpush2.bf16.msra.mxu0 %v3986_v39  ;;  %v4056_v39 = vld [vmem:[%s5405_s5] sm:$0xff]  }
 0x170   :  { %2847 = vmatprep.subr.bf16.mxu0 %v3991_v40  ;;  %v4057_v40 = vld [vmem:[%s5405_s5 + $0x58] sm:$0xff]  }
 0x171   :  { %2883 = vmatpush2.bf16.msra.mxu1 %v4028_v41  ;;  %v340_v41 = vsub.s32 4, %v5078_v21 }
 0x172   :  { %2884 = vmatprep.subr.bf16.mxu1 %v4033_v42  ;;  %v344_v42 = vsub.s32 5, %v5078_v21 }
 0x173   :  { %2848 = vmatpush2.bf16.msra.mxu0 %v3989_v43  ;;  %v4058_v43 = vld [vmem:[%s5405_s5 + $0x50] sm:$0xff]  }
 0x174   :  { %2849 = vmatprep.subr.bf16.mxu0 %v3994_v28  ;;  %v341_v28 = vrot.slane %v5099_v48, %v340_v41 }
 0x175   :  { %2885 = vmatpush2.bf16.msra.mxu1 %v4031_v44  ;;  %v345_v44 = vrot.slane %v5099_v48, %v344_v42 }
 0x176   :  { %2886 = vmatprep.subr.bf16.mxu1 %v4036_v45 }
 0x177   :  { %2850 = vmatpush2.bf16.msra.mxu0 %v3992_v46 }
 0x178   :  { %2851 = vmatprep.subr.bf16.mxu0 %v3997_v52 }
 0x179   :  { %2887 = vmatpush2.bf16.msra.mxu1 %v4034_v47 }
 0x17a   :  { %2888 = vmatprep.subr.bf16.mxu1 %v4039_v49 }
 0x17b   :  { %2852 = vmatpush2.bf16.msra.mxu0 %v3995_v51 }
 0x17c   :  { %2853 = vmatprep.subr.bf16.mxu0 %v4000_v53 }
 0x17d   :  { %2889 = vmatpush2.bf16.msra.mxu1 %v4037_v54 }
 0x17e   :  { %2890 = vmatprep.subr.bf16.mxu1 %v4042_v55 }
 0x17f   :  { %2854 = vmatpush2.bf16.msra.mxu0 %v3998_v57 }
 0x180   :  { %3016 = vmatprep.subr.bf16.mxu0 %v4061_v31 }
 0x181   :  { %2891 = vmatpush2.bf16.msra.mxu1 %v4040_v59 }
 0x182   :  { %v2011_v62 = vpop.f32.mrf.mxu0  ;;  %2892 = vmatprep.subr.bf16.mxu1 %v4045_v63 }
 0x183   :  { %v2012_v0 = vadd.f32 %v2011_v62, %v1971_v60  ;;  %v2290_v62 = vld [vmem:[%s5406_s4] sm:$0x3] }
 0x184   :  { %v2013_v2 = vpop.f32.mrf.mxu0  ;;  %v2052_v3 = vpop.f32.mrf.mxu1  ;;  %v2295_v63 = vrot.slane %v2290_v62, %v324_v26  ;;  %v4060_v26 = vld [vmem:[%s5405_s5 + $0x40] sm:$0xff]  }
 0x185   :  { %v2014_v4 = vadd.f32 %v2013_v2, %v1973_v61  ;;  %v2053_v6 = vadd.f32 %v2052_v3, %v2012_v0  ;;  %2893 = vmatpush2.bf16.msra.mxu1 %v4043_v1  ;;  %v2299_v0 = vrot.slane %v2290_v62, %v328_v5  ;;  %v4059_v2 = vld [vmem:[%s5405_s5 + $0x48] sm:$0xff]   ;;  %v12_v5 = vstv %s5407_s6 }
 0x186   :  { %v2015_v50 = vpop.f32.mrf.mxu0  ;;  %v2054_v7 = vpop.f32.mrf.mxu1  ;;  %2894 = vmatprep.subr.bf16.mxu1 %v4048_v13  ;;  %13 = vst [vmem:[#allocation2] sm:$0x1] %v12_v5 }
 0x187   :  { %v2055_v9 = vadd.f32 %v2054_v7, %v2014_v4  ;;  %v2184_v11 = vmax.f32 %v2053_v6, 0.0 }
 0x188   :  { %v2016_v12 = vpop.f32.mrf.mxu0  ;;  %v2056_v14 = vpop.f32.mrf.mxu1 }
 0x189   :  { %v2185_v15 = vmax.f32 %v2055_v9, 0.0  ;;  %2895 = vmatpush2.bf16.msra.mxu1 %v4046_v10  ;;  %v2190_v18 = vpack.c.bf16 %v2184_v11, %v2184_v11 }
 0x18a   :  { %v2057_v16 = vpop.f32.mrf.mxu1 }
 0x18b   :  { %v2191_v17 = vpack.c.bf16 %v2185_v15, %v2185_v15 }
 0x18d   :  { %2855 = vmatprep.mubr.bf16.mxu0 %v2191_v17 }
 0x18e   :  { %2856 = vmatmul.mubr.bf16.vlgmr.msra.gmra.mxu0 %v2190_v18 }
 0x18f   :  { %3017 = vmatpush1.bf16.msra.mxu0 %v4049_v32 }
 0x190   :  { %3018 = vmatprep.subr.bf16.mxu0 %v4061_v31 }
 0x193   :  { %3019 = vmatpush1.bf16.msra.mxu0 %v4050_v34 }
 0x194   :  { %3020 = vmatprep.subr.bf16.mxu0 %v4061_v31 }
 0x197   :  { %3021 = vmatpush1.bf16.msra.mxu0 %v4051_v8 }
 0x198   :  { %3022 = vmatprep.subr.bf16.mxu0 %v4061_v31 }
 0x19b   :  { %3023 = vmatpush1.bf16.msra.mxu0 %v4052_v35 }
 0x19c   :  { %3024 = vmatprep.subr.bf16.mxu0 %v4061_v31 }
 0x19f   :  { %3025 = vmatpush1.bf16.msra.mxu0 %v4053_v36 }
 0x1a0   :  { %3026 = vmatprep.subr.bf16.mxu0 %v4061_v31 }
 0x1a3   :  { %3027 = vmatpush1.bf16.msra.mxu0 %v4054_v37 }
 0x1a4   :  { %3028 = vmatprep.subr.bf16.mxu0 %v4061_v31 }
 0x1a7   :  { %3029 = vmatpush1.bf16.msra.mxu0 %v4055_v38 }
 0x1a8   :  { %3030 = vmatprep.subr.bf16.mxu0 %v4061_v31 }
 0x1ab   :  { %3031 = vmatpush1.bf16.msra.mxu0 %v4056_v39 }
 0x1ac   :  { %3040 = vmatprep.subr.bf16.mxu0 %v4061_v31 }
 0x1af   :  { %3041 = vmatpush2.bf16.msra.mxu0 %v4057_v40 }
 0x1b0   :  { %3042 = vmatprep.subr.bf16.mxu0 %v4061_v31 }
 0x1b3   :  { %3043 = vmatpush2.bf16.msra.mxu0 %v4058_v43 }
 0x1b4   :  { %3044 = vmatprep.subr.bf16.mxu0 %v4061_v31 }
 0x1b7   :  { %3045 = vmatpush2.bf16.msra.mxu0 %v4059_v2 }
 0x1b8   :  { %3046 = vmatprep.subr.bf16.mxu0 %v4061_v31 }
 0x1bb   :  { %3047 = vmatpush2.bf16.msra.mxu0 %v4060_v26 }
 0x1c2   :  { %v2093_v19 = vpop.f32.mrf.mxu0 }
 0x1c3   :  { %v2094_v45 = vadd.f32 %v2093_v19, %v341_v28 }
 0x1c4   :  { %v2095_v20 = vpop.f32.mrf.mxu0  ;;  %v2134_v22 = vpop.f32.mrf.mxu1 }
 0x1c5   :  { %v2096_v46 = vadd.f32 %v2095_v20, %v345_v44  ;;  %v2135_v52 = vadd.f32 %v2134_v22, %v2094_v45  ;;  %v3452_v20 = vld [vmem:[#allocation2] ss:$0 sm:$0xff] }
 0x1c6   :  { %v2097_v23 = vpop.f32.mrf.mxu0  ;;  %v2136_v24 = vpop.f32.mrf.mxu1 }
 0x1c7   :  { %v2137_v49 = vadd.f32 %v2136_v24, %v2096_v46 }
 0x1c8   :  { %v2098_v25 = vpop.f32.mrf.mxu0  ;;  %v2138_v27 = vpop.f32.mrf.mxu1 }
 0x1ca   :  { %v2139_v29 = vpop.f32.mrf.mxu1 }
 0x202   :  { %v2175_v47 = vpop.f32.mrf.mxu0 }
 0x203   :  { %v2176_v30 = vadd.f32 %v2175_v47, %v2135_v52 }
 0x204   :  { %v2177_v51 = vpop.f32.mrf.mxu0 }
 0x205   :  { %v2178_v53 = vadd.f32 %v2177_v51, %v2137_v49  ;;  %v2186_v33 = vmax.f32 %v2176_v30, 0.0 }
 0x206   :  { %v2179_v54 = vpop.f32.mrf.mxu0 }
 0x207   :  { %v2187_v55 = vmax.f32 %v2178_v53, 0.0  ;;  %v2192_v58 = vpack.c.bf16 %v2186_v33, %v2186_v33 }
 0x208   :  { %v2180_v56 = vpop.f32.mrf.mxu0 }
 0x209   :  { %v2193_v57 = vpack.c.bf16 %v2187_v55, %v2187_v55 }
 0x20b   :  { %2896 = vmatprep.mubr.bf16.mxu1 %v2193_v57 }
 0x20c   :  { %v2816_v59 = vpop.f32.mrf.mxu1  ;;  %2897 = vmatmul.mubr.bf16.vlgmr.msra.gmra.mxu1 %v2192_v58 }
 0x20d   :  { %v2817_v1 = vadd.f32 %v2816_v59, %v2295_v63 }
 0x20e   :  { %v2818_v48 = vpop.f32.mrf.mxu1 }
 0x20f   :  { %v2819_v4 = vadd.f32 %v2818_v48, %v2299_v0 }
 0x210   :  { %v2820_v60 = vpop.f32.mrf.mxu1 }
 0x212   :  { %v2821_v61 = vpop.f32.mrf.mxu1 }
 0x24e   :  { %v2857_v3 = vpop.f32.mrf.mxu0 }
 0x24f   :  { %v2858_v6 = vadd.f32 %v2857_v3, %v2817_v1 }
 0x250   :  { %v2859_v50 = vpop.f32.mrf.mxu0 }
 0x251   :  { %v2860_v7 = vadd.f32 %v2859_v50, %v2819_v4 }
 0x252   :  { %v2861_v13 = vpop.f32.mrf.mxu0 }
 0x254   :  { %v2862_v21 = vpop.f32.mrf.mxu0 }
 0x2cc   :  { %v2898_v9 = vpop.f32.mrf.mxu1 }
 0x2cd   :  { %v2899_v10 = vadd.f32 %v2898_v9, %v2858_v6 }
 0x2ce   :  { %v2900_v11 = vpop.f32.mrf.mxu1 }
 0x2cf   :  { %v2901_v12 = vadd.f32 %v2900_v11, %v2860_v7  ;;  %v2905_v14 = vmax.f32 %v2899_v10, 0.0 }
 0x2d0   :  { %v2902_v15 = vpop.f32.mrf.mxu1 }
 0x2d1   :  { %v2906_v16 = vmax.f32 %v2901_v12, 0.0  ;;  %v2907_v19 = vpack.c.bf16 %v2905_v14, %v2905_v14 }
 0x2d2   :  { %v2903_v17 = vpop.f32.mrf.mxu1 }
 0x2d3   :  { %v2908_v18 = vpack.c.bf16 %v2906_v16, %v2906_v16 }
 0x2d5   :  { %3465 = vmatprep.mubr.msk.bf16.mxu0 %vm3012_vm0, %v2908_v18 }
 0x2d6   :  { %3049 = vmatmul.mubr.bf16.vlgmr.msra.gmra.mxu0 %v2907_v19 }
 0x396   :  { %v3050_v22 = vpop.f32.mrf.mxu0 }
 0x397   :  { %v3051_v23 = vadd.f32 %v3452_v20, %v3050_v22 }
 0x398   :  { %v3052_v24 = vpop.f32.mrf.mxu0 }
 0x399   :  { %3057 = vst.msk [vmem:[%s5408_s7] sm:$0xff] %vm3056_vm1, %v3051_v23 }
 0x39a   :  { %v3053_v25 = vpop.f32.mrf.mxu0 }
 0x39c   :  { %v3054_v27 = vpop.f32.mrf.mxu0 }

</bundles_post_ra>
